<compile_context>
chip_gen: v7x
topology: tpu7x:2x2x1
jax: 0.10.0
libtpu: 0.0.40
codegen_flags: <defaults>
</compile_context>

<pallas_src>
import functools
import math

import jax
import jax.numpy as jnp
from jax import lax
from jax.experimental import pallas as pl
from jax.experimental.pallas import tpu as pltpu

_BN_EPS = 1e-5
_VMEM_LIMIT = 48 * 1024 * 1024        # explicit scoped-VMEM limit (safe on v5e/v6e/v7x)
_VMEM_TILE_BUDGET = 32 * 1024 * 1024  # per-grid-step working-set budget for tile picking


def _round_up(n, m):
    return -(-n // m) * m


def _pick_batch_tile(B, per_sample_bytes, batch_tile, vmem_budget=_VMEM_TILE_BUDGET):
    # >=2 grid steps whenever B >= 2 so the "parallel" batch axis can shard across v7x's
    # two TensorCores, then shrink until the per-step VMEM estimate fits the budget.
    tb = max(1, min(batch_tile, -(-B // 2)))
    while tb > 1 and tb * per_sample_bytes > vmem_budget:
        tb -= 1
    return tb


# ---------------------------------------------------------------------------
# Shared tail: conv_2 (+bn_2) over h, residual add with the shortcut, ReLU.
# ---------------------------------------------------------------------------
def _conv2_residual_tail(h, acc3, w2_ref, b23_ref, y_ref, hpad_ref):
    tb, Ho, Wo, cout = y_ref.shape
    rows = tb * Ho * Wo
    cdtype = y_ref.dtype
    Hp, Wp = hpad_ref.shape[1], hpad_ref.shape[2]

    # conv_2 needs a zero halo around h.  Zero ONLY the border (the interior is fully
    # rewritten below); done every step (not @pl.when(program_id==0)) so it stays correct
    # when the "parallel" batch axis is sharded across TensorCores.
    hpad_ref[:, 0:1, :, :] = jnp.zeros((tb, 1, Wp, cout), cdtype)
    hpad_ref[:, Ho + 1:Ho + 2, :, :] = jnp.zeros((tb, 1, Wp, cout), cdtype)
    hpad_ref[:, :, 0:1, :] = jnp.zeros((tb, Hp, 1, cout), cdtype)
    hpad_ref[:, :, Wo + 1:Wo + 2, :] = jnp.zeros((tb, Hp, 1, cout), cdtype)
    hpad_ref[:, 1:Ho + 1, 1:Wo + 1, :] = h.reshape(tb, Ho, Wo, cout).astype(cdtype)

    # conv_2 (+ folded bn_2): 9 taps, each a contiguous window feeding the MXU.
    # Weights are read per-tap via static ref views (no whole-weight value load).
    acc2 = jnp.zeros((rows, cout), jnp.float32)
    for dh in range(3):
        for dw in range(3):
            tap = hpad_ref[:, dh:dh + Ho, dw:dw + Wo, :].reshape(rows, cout)
            acc2 = acc2 + jnp.dot(tap, w2_ref[dh, dw],
                                  preferred_element_type=jnp.float32)

    # residual add with the shortcut (conv_3 + bn_3), fused bias b23 = b2 + b3, ReLU.
    y = jnp.maximum(acc2 + acc3 + b23_ref[...], 0.0)
    y_ref[...] = y.reshape(tb, Ho, Wo, cout).astype(cdtype)


# ---------------------------------------------------------------------------
# Generic Res_2d block (cin > 1): phase-split stride-2 convs, fused w13 matmuls.
# ---------------------------------------------------------------------------
def _res2d_kernel(p00_ref, p01_ref, p10_ref, p11_ref,
                  w13_ref, b1_ref, w2_ref, b23_ref, y_ref, hpad_ref):
    tb, Ho, Wo, cout = y_ref.shape
    cin = p00_ref.shape[-1]
    rows = tb * Ho * Wo
    phase = ((p00_ref, p01_ref), (p10_ref, p11_ref))

    # 3x3 / stride-2 conv over the phase-split, zero-padded input.  conv_1 and the
    # shortcut conv_3 share taps, so each tap is ONE matmul against the concatenated
    # (cin, 2*cout) weights -> half the MXU pushes, double the N-fill.
    acc13 = jnp.zeros((rows, 2 * cout), jnp.float32)
    for dh in range(3):
        py, oy = dh % 2, dh // 2
        for dw in range(3):
            px, ox = dw % 2, dw // 2
            tap = phase[py][px][:, oy:oy + Ho, ox:ox + Wo, :].reshape(rows, cin)
            acc13 = acc13 + jnp.dot(tap, w13_ref[dh, dw],
                                    preferred_element_type=jnp.float32)

    h = jnp.maximum(acc13[:, :cout] + b1_ref[...], 0.0)   # conv_1 + bn_1 + ReLU
    acc3 = acc13[:, cout:]                                 # shortcut conv_3 + bn_3 (pre-bias)
    _conv2_residual_tail(h, acc3, w2_ref, b23_ref, y_ref, hpad_ref)


def _res2d_block(x, lw, *, batch_tile, compute_dtype, vmem_limit):
    w1, b1, w2, b2, w3, b3 = lw
    B, H, W, cin = x.shape
    cout = w1.shape[-1]
    Ho, Wo = -(-H // 2), -(-W // 2)

    # Wrapper-side layout plumbing only: zero-pad + 2x2 phase split turns the stride-2
    # convs into contiguous static-window loads inside the kernel.
    xp = jnp.pad(x, ((0, 0), (1, 2 * Ho + 1 - H), (1, 2 * Wo + 1 - W), (0, 0)))
    p00, p01 = xp[:, 0::2, 0::2, :], xp[:, 0::2, 1::2, :]
    p10, p11 = xp[:, 1::2, 0::2, :], xp[:, 1::2, 1::2, :]

    w13 = jnp.concatenate([w1, w3], axis=-1).astype(compute_dtype)   # (3,3,cin,2*cout)
    w2c = w2.astype(compute_dtype)
    b23 = b2 + b3                                                    # (1, cout) f32

    itemsize = jnp.dtype(compute_dtype).itemsize
    Wp = _round_up(Wo + 2, 8)
    per_sample = (2 * 4 * (Ho + 1) * (Wo + 1) * cin * itemsize       # phases (dbl-buffered)
                  + 2 * Ho * Wo * cout * itemsize                    # output (dbl-buffered)
                  + (Ho + 2) * Wp * cout * itemsize                  # hpad scratch
                  + Ho * Wo * 4 * cout * 4)                          # live f32 accumulators
    tb = _pick_batch_tile(B, per_sample, batch_tile)

    bmap = lambda i: (i, 0, 0, 0)
    wmap4 = lambda i: (0, 0, 0, 0)
    wmap2 = lambda i: (0, 0)
    phase_spec = pl.BlockSpec((tb, Ho + 1, Wo + 1, cin), bmap)

    # TODO(synk): for production-size activations (n_channels=128, ~1000 frames) a spatial
    # grid axis (tiled Ho/Wo with halo) and Buffered(1) single-buffering of the constant
    # weight specs are still needed to fit v7x's 64 MiB VMEM.
    return pl.pallas_call(
        _res2d_kernel,
        out_shape=jax.ShapeDtypeStruct((B, Ho, Wo, cout), compute_dtype),
        grid=(pl.cdiv(B, tb),),
        in_specs=[phase_spec, phase_spec, phase_spec, phase_spec,
                  pl.BlockSpec((3, 3, cin, 2 * cout), wmap4),   # constant index maps ->
                  pl.BlockSpec((1, cout), wmap2),               # weights stay VMEM-resident
                  pl.BlockSpec((3, 3, cout, cout), wmap4),
                  pl.BlockSpec((1, cout), wmap2)],
        out_specs=pl.BlockSpec((tb, Ho, Wo, cout), bmap),
        scratch_shapes=[pltpu.VMEM((tb, Ho + 2, Wp, cout), compute_dtype)],
        compiler_params=pltpu.CompilerParams(
            dimension_semantics=("parallel",), vmem_limit_bytes=vmem_limit),
    )(p00, p01, p10, p11, w13, b1, w2c, b23)


# ---------------------------------------------------------------------------
# First Res_2d block (cin == 1): wrapper-side im2col, single K=9 matmul for conv1+conv3.
# spec_bn is folded in as a pre-padding scalar affine (no standalone HBM pass).
# ---------------------------------------------------------------------------
def _res2d_first_kernel(x9_ref, w13_ref, b1_ref, w2_ref, b23_ref, y_ref, hpad_ref):
    tb, Ho, Wo, cout = y_ref.shape
    rows = tb * Ho * Wo

    taps = x9_ref[...].reshape(rows, 9)
    acc13 = jnp.dot(taps, w13_ref[...], preferred_element_type=jnp.float32)

    h = jnp.maximum(acc13[:, :cout] + b1_ref[...], 0.0)
    acc3 = acc13[:, cout:]
    _conv2_residual_tail(h, acc3, w2_ref, b23_ref, y_ref, hpad_ref)


def _res2d_first_block(x_db, spec_affine, lw, *, batch_tile, compute_dtype, vmem_limit):
    w1, b1, w2, b2, w3, b3 = lw
    B, M, T = x_db.shape
    cout = w1.shape[-1]
    Ho, Wo = -(-M // 2), -(-T // 2)

    # spec_bn (eval-mode BatchNorm2d(1)) = scalar affine, applied BEFORE zero padding so
    # the padded border stays exactly zero (matches torch); fuses into the im2col below.
    x = x_db.astype(jnp.float32) * spec_affine[0] + spec_affine[1]

    # cin == 1: build the 9-tap im2col (B, Ho, Wo, 9) wrapper-side so conv_1 + conv_3
    # become one MXU matmul with K=9 / N=2*cout instead of 18 VPU broadcast-FMAs.
    xp = jnp.pad(x, ((0, 0), (1, 2 * Ho - M), (1, 2 * Wo - T)))
    taps = jnp.stack([xp[:, dh:dh + 2 * Ho:2, dw:dw + 2 * Wo:2]
                      for dh in range(3) for dw in range(3)], axis=-1)
    taps = taps.astype(compute_dtype)

    w13 = jnp.concatenate([w1, w3], axis=-1).reshape(9, 2 * cout).astype(compute_dtype)
    w2c = w2.astype(compute_dtype)
    b23 = b2 + b3

    itemsize = jnp.dtype(compute_dtype).itemsize
    Wp = _round_up(Wo + 2, 8)
    per_sample = (2 * Ho * Wo * 9 * itemsize + 2 * Ho * Wo * cout * itemsize
                  + (Ho + 2) * Wp * cout * itemsize + Ho * Wo * 4 * cout * 4)
    tb = _pick_batch_tile(B, per_sample, batch_tile)

    bmap = lambda i: (i, 0, 0, 0)
    return pl.pallas_call(
        _res2d_first_kernel,
        out_shape=jax.ShapeDtypeStruct((B, Ho, Wo, cout), compute_dtype),
        grid=(pl.cdiv(B, tb),),
        in_specs=[pl.BlockSpec((tb, Ho, Wo, 9), bmap),
                  pl.BlockSpec((9, 2 * cout), lambda i: (0, 0)),
                  pl.BlockSpec((1, cout), lambda i: (0, 0)),
                  pl.BlockSpec((3, 3, cout, cout), lambda i: (0, 0, 0, 0)),
                  pl.BlockSpec((1, cout), lambda i: (0, 0))],
        out_specs=pl.BlockSpec((tb, Ho, Wo, cout), bmap),
        scratch_shapes=[pltpu.VMEM((tb, Ho + 2, Wp, cout), compute_dtype)],
        compiler_params=pltpu.CompilerParams(
            dimension_semantics=("parallel",), vmem_limit_bytes=vmem_limit),
    )(taps, w13, b1, w2c, b23)


# ---------------------------------------------------------------------------
# Head: MaxPool1d over time + dense1 + ReLU (tiny; single un-gridded call).
# ---------------------------------------------------------------------------
def _head_kernel(f_ref, wd_ref, bd_ref, o_ref):
    # max is exact in the input dtype; only the (B, C) result feeds the f32-accum dot.
    m = jnp.max(f_ref[...], axis=1)
    y = jnp.dot(m, wd_ref[...], preferred_element_type=jnp.float32) + bd_ref[...]
    o_ref[...] = jnp.maximum(y, 0.0).astype(o_ref.dtype)


def _head(feat, wd, bd):
    B, _, C = feat.shape
    return pl.pallas_call(
        _head_kernel,
        out_shape=jax.ShapeDtypeStruct((B, C), jnp.float32),
    )(feat, wd, bd)


# ---------------------------------------------------------------------------
# Parameters, eval-mode BN folding, forward wrapper.
# ---------------------------------------------------------------------------
def init_params(key, n_channels=8):
    """Random parameters mimicking torch defaults; BN running stats randomized so the
    eval-mode BN folding is actually exercised.  NOTE: n_channels=8 is a test-only config;
    the real model uses n_channels=128 (lane-dense channels)."""
    cfg = [(1, n_channels),
           (n_channels, n_channels),
           (n_channels, 2 * n_channels),
           (2 * n_channels, 2 * n_channels),
           (2 * n_channels, 2 * n_channels),
           (2 * n_channels, 2 * n_channels),
           (2 * n_channels, 4 * n_channels)]
    keys = iter(jax.random.split(key, 160))

    def conv(cin, cout):
        k = 1.0 / math.sqrt(cin * 9)
        w = jax.random.uniform(next(keys), (3, 3, cin, cout), jnp.float32, -k, k)
        b = jax.random.uniform(next(keys), (cout,), jnp.float32, -k, k)
        return w, b

    def bn(c):
        gamma = jax.random.uniform(next(keys), (c,), jnp.float32, 0.5, 1.5)
        beta = 0.1 * jax.random.normal(next(keys), (c,), jnp.float32)
        mean = 0.5 * jax.random.normal(next(keys), (c,), jnp.float32)
        var = jax.random.uniform(next(keys), (c,), jnp.float32, 0.5, 1.5)
        return gamma, beta, mean, var

    layers = tuple(dict(conv1=conv(ci, co), bn1=bn(co),
                        conv2=conv(co, co), bn2=bn(co),
                        conv3=conv(ci, co), bn3=bn(co)) for ci, co in cfg)
    d = 4 * n_channels
    kd = 1.0 / math.sqrt(d)
    dense = (jax.random.uniform(next(keys), (d, d), jnp.float32, -kd, kd),
             jax.random.uniform(next(keys), (d,), jnp.float32, -kd, kd))
    return dict(layers=layers, spec_bn=bn(1), dense=dense)


def fold_params(params):
    """Fold eval-mode BatchNorms into the conv weights/biases (HWIO layout)."""
    def fold(conv_wb, bn_p):
        w, b = conv_wb
        gamma, beta, mean, var = bn_p
        s = gamma * lax.rsqrt(var + _BN_EPS)
        return w * s, ((b - mean) * s + beta).reshape(1, -1).astype(jnp.float32)

    layers = tuple(fold(lp["conv1"], lp["bn1"]) + fold(lp["conv2"], lp["bn2"])
                   + fold(lp["conv3"], lp["bn3"]) for lp in params["layers"])

    gamma, beta, mean, var = params["spec_bn"]
    s = (gamma * lax.rsqrt(var + _BN_EPS))[0]
    spec = jnp.stack([s, beta[0] - mean[0] * s]).astype(jnp.float32)   # [scale, shift]

    wd, bd = params["dense"]
    return dict(layers=layers, spec=spec, dense=(wd, bd.reshape(1, -1)))


@functools.partial(jax.jit, static_argnames=("compute_dtype", "batch_tile"))
def shortchunk_forward(x_db, params, *, compute_dtype=jnp.bfloat16, batch_tile=8):
    """x_db: (B, n_mels, frames) dB mel-spectrogram -> (B, 4*n_channels) embedding."""
    folded = fold_params(params)
    layers = folded["layers"]

    x = _res2d_first_block(x_db, folded["spec"], layers[0], batch_tile=batch_tile,
                           compute_dtype=compute_dtype, vmem_limit=_VMEM_LIMIT)
    for lw in layers[1:]:
        # TODO(synk): emitting the next block's 2x2 phase split directly from each kernel
        # would remove the pad / strided-slice HBM round-trip between blocks.
        x = _res2d_block(x, lw, batch_tile=batch_tile, compute_dtype=compute_dtype,
                         vmem_limit=_VMEM_LIMIT)

    B, Hn, Wn, Cn = x.shape       # Hn == 1 for the real model's n_mels (7 stride-2 layers)
    wd, bd = folded["dense"]
    return _head(x.reshape(B, Hn * Wn, Cn), wd.astype(compute_dtype), bd)


# ---------------------------------------------------------------------------
# Pure-JAX reference (same dtype-cast points as the Pallas path).
# ---------------------------------------------------------------------------
def _conv_ref(x, w, b, stride, cdtype):
    y = lax.conv_general_dilated(
        x.astype(cdtype), w.astype(cdtype), (stride, stride), ((1, 1), (1, 1)),
        dimension_numbers=("NHWC", "HWIO", "NHWC"),
        preferred_element_type=jnp.float32,
        precision=lax.Precision.HIGHEST)
    return y + b.reshape(1, 1, 1, -1)


def shortchunk_ref(x_db, params, compute_dtype=jnp.bfloat16):
    folded = fold_params(params)
    B, M, T = x_db.shape
    scale, shift = folded["spec"][0], folded["spec"][1]
    x = (x_db.astype(jnp.float32) * scale + shift).reshape(B, M, T, 1)
    x = x.astype(compute_dtype)
    for (w1, b1, w2, b2, w3, b3) in folded["layers"]:
        h = jax.nn.relu(_conv_ref(x, w1, b1, 2, compute_dtype)).astype(compute_dtype)
        out = _conv_ref(h, w2, b2, 1, compute_dtype)
        sc = _conv_ref(x, w3, b3, 2, compute_dtype)
        x = jax.nn.relu(out + sc).astype(compute_dtype)
    m = jnp.max(x, axis=(1, 2))
    wd, bd = folded["dense"]
    y = jnp.dot(m, wd.astype(compute_dtype),
                preferred_element_type=jnp.float32,
                precision=lax.Precision.HIGHEST) + bd
    return jax.nn.relu(y)


if __name__ == "__main__":
    key = jax.random.PRNGKey(0)
    k_param, k_x = jax.random.split(key)

    # Small test config consistent with the module: n_channels=8 -> d_embed=32,
    # n_mels=16 (reduced to 1 by the 7 stride-2 layers), 16 spectrogram frames, batch 2.
    B, n_channels, n_mels, frames = 2, 8, 16, 16
    params = init_params(k_param, n_channels=n_channels)
    x_db = 3.0 * jax.random.normal(k_x, (B, n_mels, frames), jnp.float32)  # dB-mel stand-in

    # float32 mode: strict numerics check against the pure-JAX reference.
    out_f32 = jax.block_until_ready(
        shortchunk_forward(x_db, params, compute_dtype=jnp.float32))
    ref_f32 = shortchunk_ref(x_db, params, compute_dtype=jnp.float32)
    assert out_f32.shape == (B, 4 * n_channels)
    assert bool(jnp.all(jnp.isfinite(out_f32)))
    assert jnp.allclose(out_f32, ref_f32, atol=2e-2, rtol=2e-2), "f32 mismatch vs reference"

    # bfloat16 MXU operands + f32 accumulation (default mode).
    out_bf16 = jax.block_until_ready(shortchunk_forward(x_db, params))
    ref_bf16 = shortchunk_ref(x_db, params, compute_dtype=jnp.bfloat16)
    assert out_bf16.shape == (B, 4 * n_channels)
    assert bool(jnp.all(jnp.isfinite(out_bf16.astype(jnp.float32))))
    assert jnp.allclose(out_bf16.astype(jnp.float32), ref_bf16.astype(jnp.float32),
                        atol=1e-1, rtol=1e-1), "bf16 mismatch vs reference"

    print("KERNEL_OK")
</pallas_src>

<mosaic_0001>
module attributes {stable_mosaic.version = 11 : i64} {
  func.func @_res2d_first_kernel(%arg0: i32, %arg1: memref<1x8x8x9xf32, #tpu.memory_space<vmem>>, %arg2: memref<9x16xf32, #tpu.memory_space<vmem>>, %arg3: memref<1x8xf32, #tpu.memory_space<vmem>>, %arg4: memref<3x3x8x8xf32, #tpu.memory_space<vmem>>, %arg5: memref<1x8xf32, #tpu.memory_space<vmem>>, %arg6: memref<1x8x8x8xf32, #tpu.memory_space<vmem>>, %arg7: memref<1x10x16x8xf32, #tpu.memory_space<vmem>>) attributes {dimension_semantics = [#tpu.dimension_semantics<parallel>], iteration_bounds = array<i64: 2>, scalar_prefetch = 0 : i64, scratch_operands = 1 : i64, tpu.core_type = #tpu.core_type<tc>, window_params = [{transform_indices = @transform_0, window_bounds = array<i64: 1, 8, 8, 9>}, {pipeline_mode = #tpu.pipeline_mode<synchronous>, transform_indices = @transform_1, window_bounds = array<i64: 9, 16>}, {pipeline_mode = #tpu.pipeline_mode<synchronous>, transform_indices = @transform_2, window_bounds = array<i64: 1, 8>}, {pipeline_mode = #tpu.pipeline_mode<synchronous>, transform_indices = @transform_3, window_bounds = array<i64: 3, 3, 8, 8>}, {pipeline_mode = #tpu.pipeline_mode<synchronous>, transform_indices = @transform_4, window_bounds = array<i64: 1, 8>}, {transform_indices = @transform_5, window_bounds = array<i64: 1, 8, 8, 8>}]} {
    %c0 = arith.constant 0 : index
    %c0_0 = arith.constant 0 : index
    %c0_1 = arith.constant 0 : index
    %c0_2 = arith.constant 0 : index
    %0 = vector.load %arg1[%c0, %c0_0, %c0_1, %c0_2] : memref<1x8x8x9xf32, #tpu.memory_space<vmem>>, vector<1x8x8x9xf32>
    %1 = vector.shape_cast %0 : vector<1x8x8x9xf32> to vector<64x9xf32>
    %c0_3 = arith.constant 0 : index
    %c0_4 = arith.constant 0 : index
    %2 = vector.load %arg2[%c0_3, %c0_4] : memref<9x16xf32, #tpu.memory_space<vmem>>, vector<9x16xf32>
    %cst = arith.constant dense<0.000000e+00> : vector<64x16xf32>
    %3 = tpu.matmul %1, %2, %cst {dimension_numbers = #tpu.dot_dimension_numbers<[1], [0], [0], [1], [0, 0, 1, 1], [], []>} : vector<64x9xf32>, vector<9x16xf32>, vector<64x16xf32> -> vector<64x16xf32>
    %4 = vector.extract_strided_slice %3 {offsets = [0, 0], sizes = [64, 8], strides = [1, 1]} : vector<64x16xf32> to vector<64x8xf32>
    %c0_5 = arith.constant 0 : index
    %c0_6 = arith.constant 0 : index
    %5 = vector.load %arg3[%c0_5, %c0_6] : memref<1x8xf32, #tpu.memory_space<vmem>>, vector<1x8xf32>
    %6 = vector.broadcast %5 : vector<1x8xf32> to vector<64x8xf32>
    %7 = arith.addf %4, %6 : vector<64x8xf32>
    %cst_7 = arith.constant 0.000000e+00 : f32
    %8 = vector.broadcast %cst_7 : f32 to vector<64x8xf32>
    %9 = arith.maximumf %7, %8 : vector<64x8xf32>
    %10 = vector.extract_strided_slice %3 {offsets = [0, 8], sizes = [64, 8], strides = [1, 1]} : vector<64x16xf32> to vector<64x8xf32>
    %cst_8 = arith.constant 0.000000e+00 : f32
    %11 = vector.broadcast %cst_8 : f32 to vector<1x1x16x8xf32>
    %c0_9 = arith.constant 0 : index
    %c0_10 = arith.constant 0 : index
    %c0_11 = arith.constant 0 : index
    %c0_12 = arith.constant 0 : index
    %12 = vector.load %arg7[%c0_9, %c0_10, %c0_11, %c0_12] : memref<1x10x16x8xf32, #tpu.memory_space<vmem>>, vector<1x1x16x8xf32>
    tpu.vector_store %arg7[%c0_9, %c0_10, %c0_11, %c0_12], %11 {strides = array<i32>} : memref<1x10x16x8xf32, #tpu.memory_space<vmem>>, vector<1x1x16x8xf32>,
    %cst_13 = arith.constant 0.000000e+00 : f32
    %13 = vector.broadcast %cst_13 : f32 to vector<1x1x16x8xf32>
    %c0_14 = arith.constant 0 : index
    %c9 = arith.constant 9 : index
    %c0_15 = arith.constant 0 : index
    %c0_16 = arith.constant 0 : index
    %14 = vector.load %arg7[%c0_14, %c9, %c0_15, %c0_16] : memref<1x10x16x8xf32, #tpu.memory_space<vmem>>, vector<1x1x16x8xf32>
    tpu.vector_store %arg7[%c0_14, %c9, %c0_15, %c0_16], %13 {strides = array<i32>} : memref<1x10x16x8xf32, #tpu.memory_space<vmem>>, vector<1x1x16x8xf32>,
    %cst_17 = arith.constant 0.000000e+00 : f32
    %15 = vector.broadcast %cst_17 : f32 to vector<1x10x1x8xf32>
    %c0_18 = arith.constant 0 : index
    %c0_19 = arith.constant 0 : index
    %c0_20 = arith.constant 0 : index
    %c0_21 = arith.constant 0 : index
    %16 = vector.load %arg7[%c0_18, %c0_19, %c0_20, %c0_21] : memref<1x10x16x8xf32, #tpu.memory_space<vmem>>, vector<1x10x1x8xf32>
    tpu.vector_store %arg7[%c0_18, %c0_19, %c0_20, %c0_21], %15 {strides = array<i32>} : memref<1x10x16x8xf32, #tpu.memory_space<vmem>>, vector<1x10x1x8xf32>,
    %cst_22 = arith.constant 0.000000e+00 : f32
    %17 = vector.broadcast %cst_22 : f32 to vector<1x10x1x8xf32>
    %c0_23 = arith.constant 0 : index
    %c0_24 = arith.constant 0 : index
    %c9_25 = arith.constant 9 : index
    %c0_26 = arith.constant 0 : index
    %18 = vector.load %arg7[%c0_23, %c0_24, %c9_25, %c0_26] : memref<1x10x16x8xf32, #tpu.memory_space<vmem>>, vector<1x10x1x8xf32>
    tpu.vector_store %arg7[%c0_23, %c0_24, %c9_25, %c0_26], %17 {strides = array<i32>} : memref<1x10x16x8xf32, #tpu.memory_space<vmem>>, vector<1x10x1x8xf32>,
    %19 = vector.shape_cast %9 : vector<64x8xf32> to vector<1x8x8x8xf32>
    %c0_27 = arith.constant 0 : index
    %c1 = arith.constant 1 : index
    %c1_28 = arith.constant 1 : index
    %c0_29 = arith.constant 0 : index
    %20 = vector.load %arg7[%c0_27, %c1, %c1_28, %c0_29] : memref<1x10x16x8xf32, #tpu.memory_space<vmem>>, vector<1x8x8x8xf32>
    tpu.vector_store %arg7[%c0_27, %c1, %c1_28, %c0_29], %19 {strides = array<i32>} : memref<1x10x16x8xf32, #tpu.memory_space<vmem>>, vector<1x8x8x8xf32>,
    %cst_30 = arith.constant 0.000000e+00 : f32
    %21 = vector.broadcast %cst_30 : f32 to vector<64x8xf32>
    %c0_31 = arith.constant 0 : index
    %c0_32 = arith.constant 0 : index
    %c0_33 = arith.constant 0 : index
    %c0_34 = arith.constant 0 : index
    %22 = vector.load %arg7[%c0_31, %c0_32, %c0_33, %c0_34] : memref<1x10x16x8xf32, #tpu.memory_space<vmem>>, vector<1x8x8x8xf32>
    %23 = vector.shape_cast %22 : vector<1x8x8x8xf32> to vector<64x8xf32>
    %c0_35 = arith.constant 0 : index
    %c0_36 = arith.constant 0 : index
    %c0_37 = arith.constant 0 : index
    %c0_38 = arith.constant 0 : index
    %24 = vector.load %arg4[%c0_35, %c0_36, %c0_37, %c0_38] : memref<3x3x8x8xf32, #tpu.memory_space<vmem>>, vector<1x1x8x8xf32>
    %25 = vector.shape_cast %24 : vector<1x1x8x8xf32> to vector<8x8xf32>
    %cst_39 = arith.constant dense<0.000000e+00> : vector<64x8xf32>
    %26 = tpu.matmul %23, %25, %cst_39 {dimension_numbers = #tpu.dot_dimension_numbers<[1], [0], [0], [1], [0, 0, 1, 1], [], []>} : vector<64x8xf32>, vector<8x8xf32>, vector<64x8xf32> -> vector<64x8xf32>
    %27 = arith.addf %21, %26 : vector<64x8xf32>
    %c0_40 = arith.constant 0 : index
    %c0_41 = arith.constant 0 : index
    %c1_42 = arith.constant 1 : index
    %c0_43 = arith.constant 0 : index
    %28 = vector.load %arg7[%c0_40, %c0_41, %c1_42, %c0_43] : memref<1x10x16x8xf32, #tpu.memory_space<vmem>>, vector<1x8x8x8xf32>
    %29 = vector.shape_cast %28 : vector<1x8x8x8xf32> to vector<64x8xf32>
    %c0_44 = arith.constant 0 : index
    %c1_45 = arith.constant 1 : index
    %c0_46 = arith.constant 0 : index
    %c0_47 = arith.constant 0 : index
    %30 = vector.load %arg4[%c0_44, %c1_45, %c0_46, %c0_47] : memref<3x3x8x8xf32, #tpu.memory_space<vmem>>, vector<1x1x8x8xf32>
    %31 = vector.shape_cast %30 : vector<1x1x8x8xf32> to vector<8x8xf32>
    %cst_48 = arith.constant dense<0.000000e+00> : vector<64x8xf32>
    %32 = tpu.matmul %29, %31, %cst_48 {dimension_numbers = #tpu.dot_dimension_numbers<[1], [0], [0], [1], [0, 0, 1, 1], [], []>} : vector<64x8xf32>, vector<8x8xf32>, vector<64x8xf32> -> vector<64x8xf32>
    %33 = arith.addf %27, %32 : vector<64x8xf32>
    %c0_49 = arith.constant 0 : index
    %c0_50 = arith.constant 0 : index
    %c2 = arith.constant 2 : index
    %c0_51 = arith.constant 0 : index
    %34 = vector.load %arg7[%c0_49, %c0_50, %c2, %c0_51] : memref<1x10x16x8xf32, #tpu.memory_space<vmem>>, vector<1x8x8x8xf32>
    %35 = vector.shape_cast %34 : vector<1x8x8x8xf32> to vector<64x8xf32>
    %c0_52 = arith.constant 0 : index
    %c2_53 = arith.constant 2 : index
    %c0_54 = arith.constant 0 : index
    %c0_55 = arith.constant 0 : index
    %36 = vector.load %arg4[%c0_52, %c2_53, %c0_54, %c0_55] : memref<3x3x8x8xf32, #tpu.memory_space<vmem>>, vector<1x1x8x8xf32>
    %37 = vector.shape_cast %36 : vector<1x1x8x8xf32> to vector<8x8xf32>
    %cst_56 = arith.constant dense<0.000000e+00> : vector<64x8xf32>
    %38 = tpu.matmul %35, %37, %cst_56 {dimension_numbers = #tpu.dot_dimension_numbers<[1], [0], [0], [1], [0, 0, 1, 1], [], []>} : vector<64x8xf32>, vector<8x8xf32>, vector<64x8xf32> -> vector<64x8xf32>
    %39 = arith.addf %33, %38 : vector<64x8xf32>
    %c0_57 = arith.constant 0 : index
    %c1_58 = arith.constant 1 : index
    %c0_59 = arith.constant 0 : index
    %c0_60 = arith.constant 0 : index
    %40 = vector.load %arg7[%c0_57, %c1_58, %c0_59, %c0_60] : memref<1x10x16x8xf32, #tpu.memory_space<vmem>>, vector<1x8x8x8xf32>
    %41 = vector.shape_cast %40 : vector<1x8x8x8xf32> to vector<64x8xf32>
    %c1_61 = arith.constant 1 : index
    %c0_62 = arith.constant 0 : index
    %c0_63 = arith.constant 0 : index
    %c0_64 = arith.constant 0 : index
    %42 = vector.load %arg4[%c1_61, %c0_62, %c0_63, %c0_64] : memref<3x3x8x8xf32, #tpu.memory_space<vmem>>, vector<1x1x8x8xf32>
    %43 = vector.shape_cast %42 : vector<1x1x8x8xf32> to vector<8x8xf32>
    %cst_65 = arith.constant dense<0.000000e+00> : vector<64x8xf32>
    %44 = tpu.matmul %41, %43, %cst_65 {dimension_numbers = #tpu.dot_dimension_numbers<[1], [0], [0], [1], [0, 0, 1, 1], [], []>} : vector<64x8xf32>, vector<8x8xf32>, vector<64x8xf32> -> vector<64x8xf32>
    %45 = arith.addf %39, %44 : vector<64x8xf32>
    %c0_66 = arith.constant 0 : index
    %c1_67 = arith.constant 1 : index
    %c1_68 = arith.constant 1 : index
    %c0_69 = arith.constant 0 : index
    %46 = vector.load %arg7[%c0_66, %c1_67, %c1_68, %c0_69] : memref<1x10x16x8xf32, #tpu.memory_space<vmem>>, vector<1x8x8x8xf32>
    %47 = vector.shape_cast %46 : vector<1x8x8x8xf32> to vector<64x8xf32>
    %c1_70 = arith.constant 1 : index
    %c1_71 = arith.constant 1 : index
    %c0_72 = arith.constant 0 : index
    %c0_73 = arith.constant 0 : index
    %48 = vector.load %arg4[%c1_70, %c1_71, %c0_72, %c0_73] : memref<3x3x8x8xf32, #tpu.memory_space<vmem>>, vector<1x1x8x8xf32>
    %49 = vector.shape_cast %48 : vector<1x1x8x8xf32> to vector<8x8xf32>
    %cst_74 = arith.constant dense<0.000000e+00> : vector<64x8xf32>
    %50 = tpu.matmul %47, %49, %cst_74 {dimension_numbers = #tpu.dot_dimension_numbers<[1], [0], [0], [1], [0, 0, 1, 1], [], []>} : vector<64x8xf32>, vector<8x8xf32>, vector<64x8xf32> -> vector<64x8xf32>
    %51 = arith.addf %45, %50 : vector<64x8xf32>
    %c0_75 = arith.constant 0 : index
    %c1_76 = arith.constant 1 : index
    %c2_77 = arith.constant 2 : index
    %c0_78 = arith.constant 0 : index
    %52 = vector.load %arg7[%c0_75, %c1_76, %c2_77, %c0_78] : memref<1x10x16x8xf32, #tpu.memory_space<vmem>>, vector<1x8x8x8xf32>
    %53 = vector.shape_cast %52 : vector<1x8x8x8xf32> to vector<64x8xf32>
    %c1_79 = arith.constant 1 : index
    %c2_80 = arith.constant 2 : index
    %c0_81 = arith.constant 0 : index
    %c0_82 = arith.constant 0 : index
    %54 = vector.load %arg4[%c1_79, %c2_80, %c0_81, %c0_82] : memref<3x3x8x8xf32, #tpu.memory_space<vmem>>, vector<1x1x8x8xf32>
    %55 = vector.shape_cast %54 : vector<1x1x8x8xf32> to vector<8x8xf32>
    %cst_83 = arith.constant dense<0.000000e+00> : vector<64x8xf32>
    %56 = tpu.matmul %53, %55, %cst_83 {dimension_numbers = #tpu.dot_dimension_numbers<[1], [0], [0], [1], [0, 0, 1, 1], [], []>} : vector<64x8xf32>, vector<8x8xf32>, vector<64x8xf32> -> vector<64x8xf32>
    %57 = arith.addf %51, %56 : vector<64x8xf32>
    %c0_84 = arith.constant 0 : index
    %c2_85 = arith.constant 2 : index
    %c0_86 = arith.constant 0 : index
    %c0_87 = arith.constant 0 : index
    %58 = vector.load %arg7[%c0_84, %c2_85, %c0_86, %c0_87] : memref<1x10x16x8xf32, #tpu.memory_space<vmem>>, vector<1x8x8x8xf32>
    %59 = vector.shape_cast %58 : vector<1x8x8x8xf32> to vector<64x8xf32>
    %c2_88 = arith.constant 2 : index
    %c0_89 = arith.constant 0 : index
    %c0_90 = arith.constant 0 : index
    %c0_91 = arith.constant 0 : index
    %60 = vector.load %arg4[%c2_88, %c0_89, %c0_90, %c0_91] : memref<3x3x8x8xf32, #tpu.memory_space<vmem>>, vector<1x1x8x8xf32>
    %61 = vector.shape_cast %60 : vector<1x1x8x8xf32> to vector<8x8xf32>
    %cst_92 = arith.constant dense<0.000000e+00> : vector<64x8xf32>
    %62 = tpu.matmul %59, %61, %cst_92 {dimension_numbers = #tpu.dot_dimension_numbers<[1], [0], [0], [1], [0, 0, 1, 1], [], []>} : vector<64x8xf32>, vector<8x8xf32>, vector<64x8xf32> -> vector<64x8xf32>
    %63 = arith.addf %57, %62 : vector<64x8xf32>
    %c0_93 = arith.constant 0 : index
    %c2_94 = arith.constant 2 : index
    %c1_95 = arith.constant 1 : index
    %c0_96 = arith.constant 0 : index
    %64 = vector.load %arg7[%c0_93, %c2_94, %c1_95, %c0_96] : memref<1x10x16x8xf32, #tpu.memory_space<vmem>>, vector<1x8x8x8xf32>
    %65 = vector.shape_cast %64 : vector<1x8x8x8xf32> to vector<64x8xf32>
    %c2_97 = arith.constant 2 : index
    %c1_98 = arith.constant 1 : index
    %c0_99 = arith.constant 0 : index
    %c0_100 = arith.constant 0 : index
    %66 = vector.load %arg4[%c2_97, %c1_98, %c0_99, %c0_100] : memref<3x3x8x8xf32, #tpu.memory_space<vmem>>, vector<1x1x8x8xf32>
    %67 = vector.shape_cast %66 : vector<1x1x8x8xf32> to vector<8x8xf32>
    %cst_101 = arith.constant dense<0.000000e+00> : vector<64x8xf32>
    %68 = tpu.matmul %65, %67, %cst_101 {dimension_numbers = #tpu.dot_dimension_numbers<[1], [0], [0], [1], [0, 0, 1, 1], [], []>} : vector<64x8xf32>, vector<8x8xf32>, vector<64x8xf32> -> vector<64x8xf32>
    %69 = arith.addf %63, %68 : vector<64x8xf32>
    %c0_102 = arith.constant 0 : index
    %c2_103 = arith.constant 2 : index
    %c2_104 = arith.constant 2 : index
    %c0_105 = arith.constant 0 : index
    %70 = vector.load %arg7[%c0_102, %c2_103, %c2_104, %c0_105] : memref<1x10x16x8xf32, #tpu.memory_space<vmem>>, vector<1x8x8x8xf32>
    %71 = vector.shape_cast %70 : vector<1x8x8x8xf32> to vector<64x8xf32>
    %c2_106 = arith.constant 2 : index
    %c2_107 = arith.constant 2 : index
    %c0_108 = arith.constant 0 : index
    %c0_109 = arith.constant 0 : index
    %72 = vector.load %arg4[%c2_106, %c2_107, %c0_108, %c0_109] : memref<3x3x8x8xf32, #tpu.memory_space<vmem>>, vector<1x1x8x8xf32>
    %73 = vector.shape_cast %72 : vector<1x1x8x8xf32> to vector<8x8xf32>
    %cst_110 = arith.constant dense<0.000000e+00> : vector<64x8xf32>
    %74 = tpu.matmul %71, %73, %cst_110 {dimension_numbers = #tpu.dot_dimension_numbers<[1], [0], [0], [1], [0, 0, 1, 1], [], []>} : vector<64x8xf32>, vector<8x8xf32>, vector<64x8xf32> -> vector<64x8xf32>
    %75 = arith.addf %69, %74 : vector<64x8xf32>
    %76 = arith.addf %75, %10 : vector<64x8xf32>
    %c0_111 = arith.constant 0 : index
    %c0_112 = arith.constant 0 : index
    %77 = vector.load %arg5[%c0_111, %c0_112] : memref<1x8xf32, #tpu.memory_space<vmem>>, vector<1x8xf32>
    %78 = vector.broadcast %77 : vector<1x8xf32> to vector<64x8xf32>
    %79 = arith.addf %76, %78 : vector<64x8xf32>
    %cst_113 = arith.constant 0.000000e+00 : f32
    %80 = vector.broadcast %cst_113 : f32 to vector<64x8xf32>
    %81 = arith.maximumf %79, %80 : vector<64x8xf32>
    %82 = vector.shape_cast %81 : vector<64x8xf32> to vector<1x8x8x8xf32>
    %c0_114 = arith.constant 0 : index
    %c0_115 = arith.constant 0 : index
    %c0_116 = arith.constant 0 : index
    %c0_117 = arith.constant 0 : index
    %83 = vector.load %arg6[%c0_114, %c0_115, %c0_116, %c0_117] : memref<1x8x8x8xf32, #tpu.memory_space<vmem>>, vector<1x8x8x8xf32>
    tpu.vector_store %arg6[%c0_114, %c0_115, %c0_116, %c0_117], %82 {strides = array<i32>} : memref<1x8x8x8xf32, #tpu.memory_space<vmem>>, vector<1x8x8x8xf32>,
    return
  }
  func.func @transform_0(%arg0: i32) -> (i32, i32, i32, i32) {
    %c0_i32 = arith.constant 0 : i32
    %c0_i32_0 = arith.constant 0 : i32
    %c0_i32_1 = arith.constant 0 : i32
    %c0_i32_2 = arith.constant 0 : i32
    return %arg0, %c0_i32, %c0_i32_0, %c0_i32_1 : i32, i32, i32, i32
  }
  func.func @transform_1(%arg0: i32) -> (i32, i32) {
    %c0_i32 = arith.constant 0 : i32
    %c0_i32_0 = arith.constant 0 : i32
    %c0_i32_1 = arith.constant 0 : i32
    return %c0_i32, %c0_i32_0 : i32, i32
  }
  func.func @transform_2(%arg0: i32) -> (i32, i32) {
    %c0_i32 = arith.constant 0 : i32
    %c0_i32_0 = arith.constant 0 : i32
    %c0_i32_1 = arith.constant 0 : i32
    return %c0_i32, %c0_i32_0 : i32, i32
  }
  func.func @transform_3(%arg0: i32) -> (i32, i32, i32, i32) {
    %c0_i32 = arith.constant 0 : i32
    %c0_i32_0 = arith.constant 0 : i32
    %c0_i32_1 = arith.constant 0 : i32
    %c0_i32_2 = arith.constant 0 : i32
    %c0_i32_3 = arith.constant 0 : i32
    return %c0_i32, %c0_i32_0, %c0_i32_1, %c0_i32_2 : i32, i32, i32, i32
  }
  func.func @transform_4(%arg0: i32) -> (i32, i32) {
    %c0_i32 = arith.constant 0 : i32
    %c0_i32_0 = arith.constant 0 : i32
    %c0_i32_1 = arith.constant 0 : i32
    return %c0_i32, %c0_i32_0 : i32, i32
  }
  func.func @transform_5(%arg0: i32) -> (i32, i32, i32, i32) {
    %c0_i32 = arith.constant 0 : i32
    %c0_i32_0 = arith.constant 0 : i32
    %c0_i32_1 = arith.constant 0 : i32
    %c0_i32_2 = arith.constant 0 : i32
    return %arg0, %c0_i32, %c0_i32_0, %c0_i32_1 : i32, i32, i32, i32
  }
}

module attributes {stable_mosaic.version = 11 : i64} {
  func.func @_res2d_kernel(%arg0: i32, %arg1: memref<1x5x5x8xf32, #tpu.memory_space<vmem>>, %arg2: memref<1x5x5x8xf32, #tpu.memory_space<vmem>>, %arg3: memref<1x5x5x8xf32, #tpu.memory_space<vmem>>, %arg4: memref<1x5x5x8xf32, #tpu.memory_space<vmem>>, %arg5: memref<3x3x8x16xf32, #tpu.memory_space<vmem>>, %arg6: memref<1x8xf32, #tpu.memory_space<vmem>>, %arg7: memref<3x3x8x8xf32, #tpu.memory_space<vmem>>, %arg8: memref<1x8xf32, #tpu.memory_space<vmem>>, %arg9: memref<1x4x4x8xf32, #tpu.memory_space<vmem>>, %arg10: memref<1x6x8x8xf32, #tpu.memory_space<vmem>>) attributes {dimension_semantics = [#tpu.dimension_semantics<parallel>], iteration_bounds = array<i64: 2>, scalar_prefetch = 0 : i64, scratch_operands = 1 : i64, tpu.core_type = #tpu.core_type<tc>, window_params = [{transform_indices = @transform_0, window_bounds = array<i64: 1, 5, 5, 8>}, {transform_indices = @transform_1, window_bounds = array<i64: 1, 5, 5, 8>}, {transform_indices = @transform_2, window_bounds = array<i64: 1, 5, 5, 8>}, {transform_indices = @transform_3, window_bounds = array<i64: 1, 5, 5, 8>}, {pipeline_mode = #tpu.pipeline_mode<synchronous>, transform_indices = @transform_4, window_bounds = array<i64: 3, 3, 8, 16>}, {pipeline_mode = #tpu.pipeline_mode<synchronous>, transform_indices = @transform_5, window_bounds = array<i64: 1, 8>}, {pipeline_mode = #tpu.pipeline_mode<synchronous>, transform_indices = @transform_6, window_bounds = array<i64: 3, 3, 8, 8>}, {pipeline_mode = #tpu.pipeline_mode<synchronous>, transform_indices = @transform_7, window_bounds = array<i64: 1, 8>}, {transform_indices = @transform_8, window_bounds = array<i64: 1, 4, 4, 8>}]} {
    %cst = arith.constant 0.000000e+00 : f32
    %0 = vector.broadcast %cst : f32 to vector<16x16xf32>
    %c0 = arith.constant 0 : index
    %c0_0 = arith.constant 0 : index
    %c0_1 = arith.constant 0 : index
    %c0_2 = arith.constant 0 : index
    %1 = vector.load %arg1[%c0, %c0_0, %c0_1, %c0_2] : memref<1x5x5x8xf32, #tpu.memory_space<vmem>>, vector<1x4x4x8xf32>
    %2 = vector.shape_cast %1 : vector<1x4x4x8xf32> to vector<16x8xf32>
    %c0_3 = arith.constant 0 : index
    %c0_4 = arith.constant 0 : index
    %c0_5 = arith.constant 0 : index
    %c0_6 = arith.constant 0 : index
    %3 = vector.load %arg5[%c0_3, %c0_4, %c0_5, %c0_6] : memref<3x3x8x16xf32, #tpu.memory_space<vmem>>, vector<1x1x8x16xf32>
    %4 = vector.shape_cast %3 : vector<1x1x8x16xf32> to vector<8x16xf32>
    %cst_7 = arith.constant dense<0.000000e+00> : vector<16x16xf32>
    %5 = tpu.matmul %2, %4, %cst_7 {dimension_numbers = #tpu.dot_dimension_numbers<[1], [0], [0], [1], [0, 0, 1, 1], [], []>} : vector<16x8xf32>, vector<8x16xf32>, vector<16x16xf32> -> vector<16x16xf32>
    %6 = arith.addf %0, %5 : vector<16x16xf32>
    %c0_8 = arith.constant 0 : index
    %c0_9 = arith.constant 0 : index
    %c0_10 = arith.constant 0 : index
    %c0_11 = arith.constant 0 : index
    %7 = vector.load %arg2[%c0_8, %c0_9, %c0_10, %c0_11] : memref<1x5x5x8xf32, #tpu.memory_space<vmem>>, vector<1x4x4x8xf32>
    %8 = vector.shape_cast %7 : vector<1x4x4x8xf32> to vector<16x8xf32>
    %c0_12 = arith.constant 0 : index
    %c1 = arith.constant 1 : index
    %c0_13 = arith.constant 0 : index
    %c0_14 = arith.constant 0 : index
    %9 = vector.load %arg5[%c0_12, %c1, %c0_13, %c0_14] : memref<3x3x8x16xf32, #tpu.memory_space<vmem>>, vector<1x1x8x16xf32>
    %10 = vector.shape_cast %9 : vector<1x1x8x16xf32> to vector<8x16xf32>
    %cst_15 = arith.constant dense<0.000000e+00> : vector<16x16xf32>
    %11 = tpu.matmul %8, %10, %cst_15 {dimension_numbers = #tpu.dot_dimension_numbers<[1], [0], [0], [1], [0, 0, 1, 1], [], []>} : vector<16x8xf32>, vector<8x16xf32>, vector<16x16xf32> -> vector<16x16xf32>
    %12 = arith.addf %6, %11 : vector<16x16xf32>
    %c0_16 = arith.constant 0 : index
    %c0_17 = arith.constant 0 : index
    %c1_18 = arith.constant 1 : index
    %c0_19 = arith.constant 0 : index
    %13 = vector.load %arg1[%c0_16, %c0_17, %c1_18, %c0_19] : memref<1x5x5x8xf32, #tpu.memory_space<vmem>>, vector<1x4x4x8xf32>
    %14 = vector.shape_cast %13 : vector<1x4x4x8xf32> to vector<16x8xf32>
    %c0_20 = arith.constant 0 : index
    %c2 = arith.constant 2 : index
    %c0_21 = arith.constant 0 : index
    %c0_22 = arith.constant 0 : index
    %15 = vector.load %arg5[%c0_20, %c2, %c0_21, %c0_22] : memref<3x3x8x16xf32, #tpu.memory_space<vmem>>, vector<1x1x8x16xf32>
    %16 = vector.shape_cast %15 : vector<1x1x8x16xf32> to vector<8x16xf32>
    %cst_23 = arith.constant dense<0.000000e+00> : vector<16x16xf32>
    %17 = tpu.matmul %14, %16, %cst_23 {dimension_numbers = #tpu.dot_dimension_numbers<[1], [0], [0], [1], [0, 0, 1, 1], [], []>} : vector<16x8xf32>, vector<8x16xf32>, vector<16x16xf32> -> vector<16x16xf32>
    %18 = arith.addf %12, %17 : vector<16x16xf32>
    %c0_24 = arith.constant 0 : index
    %c0_25 = arith.constant 0 : index
    %c0_26 = arith.constant 0 : index
    %c0_27 = arith.constant 0 : index
    %19 = vector.load %arg3[%c0_24, %c0_25, %c0_26, %c0_27] : memref<1x5x5x8xf32, #tpu.memory_space<vmem>>, vector<1x4x4x8xf32>
    %20 = vector.shape_cast %19 : vector<1x4x4x8xf32> to vector<16x8xf32>
    %c1_28 = arith.constant 1 : index
    %c0_29 = arith.constant 0 : index
    %c0_30 = arith.constant 0 : index
    %c0_31 = arith.constant 0 : index
    %21 = vector.load %arg5[%c1_28, %c0_29, %c0_30, %c0_31] : memref<3x3x8x16xf32, #tpu.memory_space<vmem>>, vector<1x1x8x16xf32>
    %22 = vector.shape_cast %21 : vector<1x1x8x16xf32> to vector<8x16xf32>
    %cst_32 = arith.constant dense<0.000000e+00> : vector<16x16xf32>
    %23 = tpu.matmul %20, %22, %cst_32 {dimension_numbers = #tpu.dot_dimension_numbers<[1], [0], [0], [1], [0, 0, 1, 1], [], []>} : vector<16x8xf32>, vector<8x16xf32>, vector<16x16xf32> -> vector<16x16xf32>
    %24 = arith.addf %18, %23 : vector<16x16xf32>
    %c0_33 = arith.constant 0 : index
    %c0_34 = arith.constant 0 : index
    %c0_35 = arith.constant 0 : index
    %c0_36 = arith.constant 0 : index
    %25 = vector.load %arg4[%c0_33, %c0_34, %c0_35, %c0_36] : memref<1x5x5x8xf32, #tpu.memory_space<vmem>>, vector<1x4x4x8xf32>
    %26 = vector.shape_cast %25 : vector<1x4x4x8xf32> to vector<16x8xf32>
    %c1_37 = arith.constant 1 : index
    %c1_38 = arith.constant 1 : index
    %c0_39 = arith.constant 0 : index
    %c0_40 = arith.constant 0 : index
    %27 = vector.load %arg5[%c1_37, %c1_38, %c0_39, %c0_40] : memref<3x3x8x16xf32, #tpu.memory_space<vmem>>, vector<1x1x8x16xf32>
    %28 = vector.shape_cast %27 : vector<1x1x8x16xf32> to vector<8x16xf32>
    %cst_41 = arith.constant dense<0.000000e+00> : vector<16x16xf32>
    %29 = tpu.matmul %26, %28, %cst_41 {dimension_numbers = #tpu.dot_dimension_numbers<[1], [0], [0], [1], [0, 0, 1, 1], [], []>} : vector<16x8xf32>, vector<8x16xf32>, vector<16x16xf32> -> vector<16x16xf32>
    %30 = arith.addf %24, %29 : vector<16x16xf32>
    %c0_42 = arith.constant 0 : index
    %c0_43 = arith.constant 0 : index
    %c1_44 = arith.constant 1 : index
    %c0_45 = arith.constant 0 : index
    %31 = vector.load %arg3[%c0_42, %c0_43, %c1_44, %c0_45] : memref<1x5x5x8xf32, #tpu.memory_space<vmem>>, vector<1x4x4x8xf32>
    %32 = vector.shape_cast %31 : vector<1x4x4x8xf32> to vector<16x8xf32>
    %c1_46 = arith.constant 1 : index
    %c2_47 = arith.constant 2 : index
    %c0_48 = arith.constant 0 : index
    %c0_49 = arith.constant 0 : index
    %33 = vector.load %arg5[%c1_46, %c2_47, %c0_48, %c0_49] : memref<3x3x8x16xf32, #tpu.memory_space<vmem>>, vector<1x1x8x16xf32>
    %34 = vector.shape_cast %33 : vector<1x1x8x16xf32> to vector<8x16xf32>
    %cst_50 = arith.constant dense<0.000000e+00> : vector<16x16xf32>
    %35 = tpu.matmul %32, %34, %cst_50 {dimension_numbers = #tpu.dot_dimension_numbers<[1], [0], [0], [1], [0, 0, 1, 1], [], []>} : vector<16x8xf32>, vector<8x16xf32>, vector<16x16xf32> -> vector<16x16xf32>
    %36 = arith.addf %30, %35 : vector<16x16xf32>
    %c0_51 = arith.constant 0 : index
    %c1_52 = arith.constant 1 : index
    %c0_53 = arith.constant 0 : index
    %c0_54 = arith.constant 0 : index
    %37 = vector.load %arg1[%c0_51, %c1_52, %c0_53, %c0_54] : memref<1x5x5x8xf32, #tpu.memory_space<vmem>>, vector<1x4x4x8xf32>
    %38 = vector.shape_cast %37 : vector<1x4x4x8xf32> to vector<16x8xf32>
    %c2_55 = arith.constant 2 : index
    %c0_56 = arith.constant 0 : index
    %c0_57 = arith.constant 0 : index
    %c0_58 = arith.constant 0 : index
    %39 = vector.load %arg5[%c2_55, %c0_56, %c0_57, %c0_58] : memref<3x3x8x16xf32, #tpu.memory_space<vmem>>, vector<1x1x8x16xf32>
    %40 = vector.shape_cast %39 : vector<1x1x8x16xf32> to vector<8x16xf32>
    %cst_59 = arith.constant dense<0.000000e+00> : vector<16x16xf32>
    %41 = tpu.matmul %38, %40, %cst_59 {dimension_numbers = #tpu.dot_dimension_numbers<[1], [0], [0], [1], [0, 0, 1, 1], [], []>} : vector<16x8xf32>, vector<8x16xf32>, vector<16x16xf32> -> vector<16x16xf32>
    %42 = arith.addf %36, %41 : vector<16x16xf32>
    %c0_60 = arith.constant 0 : index
    %c1_61 = arith.constant 1 : index
    %c0_62 = arith.constant 0 : index
    %c0_63 = arith.constant 0 : index
    %43 = vector.load %arg2[%c0_60, %c1_61, %c0_62, %c0_63] : memref<1x5x5x8xf32, #tpu.memory_space<vmem>>, vector<1x4x4x8xf32>
    %44 = vector.shape_cast %43 : vector<1x4x4x8xf32> to vector<16x8xf32>
    %c2_64 = arith.constant 2 : index
    %c1_65 = arith.constant 1 : index
    %c0_66 = arith.constant 0 : index
    %c0_67 = arith.constant 0 : index
    %45 = vector.load %arg5[%c2_64, %c1_65, %c0_66, %c0_67] : memref<3x3x8x16xf32, #tpu.memory_space<vmem>>, vector<1x1x8x16xf32>
    %46 = vector.shape_cast %45 : vector<1x1x8x16xf32> to vector<8x16xf32>
    %cst_68 = arith.constant dense<0.000000e+00> : vector<16x16xf32>
    %47 = tpu.matmul %44, %46, %cst_68 {dimension_numbers = #tpu.dot_dimension_numbers<[1], [0], [0], [1], [0, 0, 1, 1], [], []>} : vector<16x8xf32>, vector<8x16xf32>, vector<16x16xf32> -> vector<16x16xf32>
    %48 = arith.addf %42, %47 : vector<16x16xf32>
    %c0_69 = arith.constant 0 : index
    %c1_70 = arith.constant 1 : index
    %c1_71 = arith.constant 1 : index
    %c0_72 = arith.constant 0 : index
    %49 = vector.load %arg1[%c0_69, %c1_70, %c1_71, %c0_72] : memref<1x5x5x8xf32, #tpu.memory_space<vmem>>, vector<1x4x4x8xf32>
    %50 = vector.shape_cast %49 : vector<1x4x4x8xf32> to vector<16x8xf32>
    %c2_73 = arith.constant 2 : index
    %c2_74 = arith.constant 2 : index
    %c0_75 = arith.constant 0 : index
    %c0_76 = arith.constant 0 : index
    %51 = vector.load %arg5[%c2_73, %c2_74, %c0_75, %c0_76] : memref<3x3x8x16xf32, #tpu.memory_space<vmem>>, vector<1x1x8x16xf32>
    %52 = vector.shape_cast %51 : vector<1x1x8x16xf32> to vector<8x16xf32>
    %cst_77 = arith.constant dense<0.000000e+00> : vector<16x16xf32>
    %53 = tpu.matmul %50, %52, %cst_77 {dimension_numbers = #tpu.dot_dimension_numbers<[1], [0], [0], [1], [0, 0, 1, 1], [], []>} : vector<16x8xf32>, vector<8x16xf32>, vector<16x16xf32> -> vector<16x16xf32>
    %54 = arith.addf %48, %53 : vector<16x16xf32>
    %55 = vector.extract_strided_slice %54 {offsets = [0, 0], sizes = [16, 8], strides = [1, 1]} : vector<16x16xf32> to vector<16x8xf32>
    %c0_78 = arith.constant 0 : index
    %c0_79 = arith.constant 0 : index
    %56 = vector.load %arg6[%c0_78, %c0_79] : memref<1x8xf32, #tpu.memory_space<vmem>>, vector<1x8xf32>
    %57 = vector.broadcast %56 : vector<1x8xf32> to vector<16x8xf32>
    %58 = arith.addf %55, %57 : vector<16x8xf32>
    %cst_80 = arith.constant 0.000000e+00 : f32
    %59 = vector.broadcast %cst_80 : f32 to vector<16x8xf32>
    %60 = arith.maximumf %58, %59 : vector<16x8xf32>
    %61 = vector.extract_strided_slice %54 {offsets = [0, 8], sizes = [16, 8], strides = [1, 1]} : vector<16x16xf32> to vector<16x8xf32>
    %cst_81 = arith.constant 0.000000e+00 : f32
    %62 = vector.broadcast %cst_81 : f32 to vector<1x1x8x8xf32>
    %c0_82 = arith.constant 0 : index
    %c0_83 = arith.constant 0 : index
    %c0_84 = arith.constant 0 : index
    %c0_85 = arith.constant 0 : index
    %63 = vector.load %arg10[%c0_82, %c0_83, %c0_84, %c0_85] : memref<1x6x8x8xf32, #tpu.memory_space<vmem>>, vector<1x1x8x8xf32>
    tpu.vector_store %arg10[%c0_82, %c0_83, %c0_84, %c0_85], %62 {strides = array<i32>} : memref<1x6x8x8xf32, #tpu.memory_space<vmem>>, vector<1x1x8x8xf32>,
    %cst_86 = arith.constant 0.000000e+00 : f32
    %64 = vector.broadcast %cst_86 : f32 to vector<1x1x8x8xf32>
    %c0_87 = arith.constant 0 : index
    %c5 = arith.constant 5 : index
    %c0_88 = arith.constant 0 : index
    %c0_89 = arith.constant 0 : index
    %65 = vector.load %arg10[%c0_87, %c5, %c0_88, %c0_89] : memref<1x6x8x8xf32, #tpu.memory_space<vmem>>, vector<1x1x8x8xf32>
    tpu.vector_store %arg10[%c0_87, %c5, %c0_88, %c0_89], %64 {strides = array<i32>} : memref<1x6x8x8xf32, #tpu.memory_space<vmem>>, vector<1x1x8x8xf32>,
    %cst_90 = arith.constant 0.000000e+00 : f32
    %66 = vector.broadcast %cst_90 : f32 to vector<1x6x1x8xf32>
    %c0_91 = arith.constant 0 : index
    %c0_92 = arith.constant 0 : index
    %c0_93 = arith.constant 0 : index
    %c0_94 = arith.constant 0 : index
    %67 = vector.load %arg10[%c0_91, %c0_92, %c0_93, %c0_94] : memref<1x6x8x8xf32, #tpu.memory_space<vmem>>, vector<1x6x1x8xf32>
    tpu.vector_store %arg10[%c0_91, %c0_92, %c0_93, %c0_94], %66 {strides = array<i32>} : memref<1x6x8x8xf32, #tpu.memory_space<vmem>>, vector<1x6x1x8xf32>,
    %cst_95 = arith.constant 0.000000e+00 : f32
    %68 = vector.broadcast %cst_95 : f32 to vector<1x6x1x8xf32>
    %c0_96 = arith.constant 0 : index
    %c0_97 = arith.constant 0 : index
    %c5_98 = arith.constant 5 : index
    %c0_99 = arith.constant 0 : index
    %69 = vector.load %arg10[%c0_96, %c0_97, %c5_98, %c0_99] : memref<1x6x8x8xf32, #tpu.memory_space<vmem>>, vector<1x6x1x8xf32>
    tpu.vector_store %arg10[%c0_96, %c0_97, %c5_98, %c0_99], %68 {strides = array<i32>} : memref<1x6x8x8xf32, #tpu.memory_space<vmem>>, vector<1x6x1x8xf32>,
    %70 = vector.shape_cast %60 : vector<16x8xf32> to vector<1x4x4x8xf32>
    %c0_100 = arith.constant 0 : index
    %c1_101 = arith.constant 1 : index
    %c1_102 = arith.constant 1 : index
    %c0_103 = arith.constant 0 : index
    %71 = vector.load %arg10[%c0_100, %c1_101, %c1_102, %c0_103] : memref<1x6x8x8xf32, #tpu.memory_space<vmem>>, vector<1x4x4x8xf32>
    tpu.vector_store %arg10[%c0_100, %c1_101, %c1_102, %c0_103], %70 {strides = array<i32>} : memref<1x6x8x8xf32, #tpu.memory_space<vmem>>, vector<1x4x4x8xf32>,
    %cst_104 = arith.constant 0.000000e+00 : f32
    %72 = vector.broadcast %cst_104 : f32 to vector<16x8xf32>
    %c0_105 = arith.constant 0 : index
    %c0_106 = arith.constant 0 : index
    %c0_107 = arith.constant 0 : index
    %c0_108 = arith.constant 0 : index
    %73 = vector.load %arg10[%c0_105, %c0_106, %c0_107, %c0_108] : memref<1x6x8x8xf32, #tpu.memory_space<vmem>>, vector<1x4x4x8xf32>
    %74 = vector.shape_cast %73 : vector<1x4x4x8xf32> to vector<16x8xf32>
    %c0_109 = arith.constant 0 : index
    %c0_110 = arith.constant 0 : index
    %c0_111 = arith.constant 0 : index
    %c0_112 = arith.constant 0 : index
    %75 = vector.load %arg7[%c0_109, %c0_110, %c0_111, %c0_112] : memref<3x3x8x8xf32, #tpu.memory_space<vmem>>, vector<1x1x8x8xf32>
    %76 = vector.shape_cast %75 : vector<1x1x8x8xf32> to vector<8x8xf32>
    %cst_113 = arith.constant dense<0.000000e+00> : vector<16x8xf32>
    %77 = tpu.matmul %74, %76, %cst_113 {dimension_numbers = #tpu.dot_dimension_numbers<[1], [0], [0], [1], [0, 0, 1, 1], [], []>} : vector<16x8xf32>, vector<8x8xf32>, vector<16x8xf32> -> vector<16x8xf32>
    %78 = arith.addf %72, %77 : vector<16x8xf32>
    %c0_114 = arith.constant 0 : index
    %c0_115 = arith.constant 0 : index
    %c1_116 = arith.constant 1 : index
    %c0_117 = arith.constant 0 : index
    %79 = vector.load %arg10[%c0_114, %c0_115, %c1_116, %c0_117] : memref<1x6x8x8xf32, #tpu.memory_space<vmem>>, vector<1x4x4x8xf32>
    %80 = vector.shape_cast %79 : vector<1x4x4x8xf32> to vector<16x8xf32>
    %c0_118 = arith.constant 0 : index
    %c1_119 = arith.constant 1 : index
    %c0_120 = arith.constant 0 : index
    %c0_121 = arith.constant 0 : index
    %81 = vector.load %arg7[%c0_118, %c1_119, %c0_120, %c0_121] : memref<3x3x8x8xf32, #tpu.memory_space<vmem>>, vector<1x1x8x8xf32>
    %82 = vector.shape_cast %81 : vector<1x1x8x8xf32> to vector<8x8xf32>
    %cst_122 = arith.constant dense<0.000000e+00> : vector<16x8xf32>
    %83 = tpu.matmul %80, %82, %cst_122 {dimension_numbers = #tpu.dot_dimension_numbers<[1], [0], [0], [1], [0, 0, 1, 1], [], []>} : vector<16x8xf32>, vector<8x8xf32>, vector<16x8xf32> -> vector<16x8xf32>
    %84 = arith.addf %78, %83 : vector<16x8xf32>
    %c0_123 = arith.constant 0 : index
    %c0_124 = arith.constant 0 : index
    %c2_125 = arith.constant 2 : index
    %c0_126 = arith.constant 0 : index
    %85 = vector.load %arg10[%c0_123, %c0_124, %c2_125, %c0_126] : memref<1x6x8x8xf32, #tpu.memory_space<vmem>>, vector<1x4x4x8xf32>
    %86 = vector.shape_cast %85 : vector<1x4x4x8xf32> to vector<16x8xf32>
    %c0_127 = arith.constant 0 : index
    %c2_128 = arith.constant 2 : index
    %c0_129 = arith.constant 0 : index
    %c0_130 = arith.constant 0 : index
    %87 = vector.load %arg7[%c0_127, %c2_128, %c0_129, %c0_130] : memref<3x3x8x8xf32, #tpu.memory_space<vmem>>, vector<1x1x8x8xf32>
    %88 = vector.shape_cast %87 : vector<1x1x8x8xf32> to vector<8x8xf32>
    %cst_131 = arith.constant dense<0.000000e+00> : vector<16x8xf32>
    %89 = tpu.matmul %86, %88, %cst_131 {dimension_numbers = #tpu.dot_dimension_numbers<[1], [0], [0], [1], [0, 0, 1, 1], [], []>} : vector<16x8xf32>, vector<8x8xf32>, vector<16x8xf32> -> vector<16x8xf32>
    %90 = arith.addf %84, %89 : vector<16x8xf32>
    %c0_132 = arith.constant 0 : index
    %c1_133 = arith.constant 1 : index
    %c0_134 = arith.constant 0 : index
    %c0_135 = arith.constant 0 : index
    %91 = vector.load %arg10[%c0_132, %c1_133, %c0_134, %c0_135] : memref<1x6x8x8xf32, #tpu.memory_space<vmem>>, vector<1x4x4x8xf32>
    %92 = vector.shape_cast %91 : vector<1x4x4x8xf32> to vector<16x8xf32>
    %c1_136 = arith.constant 1 : index
    %c0_137 = arith.constant 0 : index
    %c0_138 = arith.constant 0 : index
    %c0_139 = arith.constant 0 : index
    %93 = vector.load %arg7[%c1_136, %c0_137, %c0_138, %c0_139] : memref<3x3x8x8xf32, #tpu.memory_space<vmem>>, vector<1x1x8x8xf32>
    %94 = vector.shape_cast %93 : vector<1x1x8x8xf32> to vector<8x8xf32>
    %cst_140 = arith.constant dense<0.000000e+00> : vector<16x8xf32>
    %95 = tpu.matmul %92, %94, %cst_140 {dimension_numbers = #tpu.dot_dimension_numbers<[1], [0], [0], [1], [0, 0, 1, 1], [], []>} : vector<16x8xf32>, vector<8x8xf32>, vector<16x8xf32> -> vector<16x8xf32>
    %96 = arith.addf %90, %95 : vector<16x8xf32>
    %c0_141 = arith.constant 0 : index
    %c1_142 = arith.constant 1 : index
    %c1_143 = arith.constant 1 : index
    %c0_144 = arith.constant 0 : index
    %97 = vector.load %arg10[%c0_141, %c1_142, %c1_143, %c0_144] : memref<1x6x8x8xf32, #tpu.memory_space<vmem>>, vector<1x4x4x8xf32>
    %98 = vector.shape_cast %97 : vector<1x4x4x8xf32> to vector<16x8xf32>
    %c1_145 = arith.constant 1 : index
    %c1_146 = arith.constant 1 : index
    %c0_147 = arith.constant 0 : index
    %c0_148 = arith.constant 0 : index
    %99 = vector.load %arg7[%c1_145, %c1_146, %c0_147, %c0_148] : memref<3x3x8x8xf32, #tpu.memory_space<vmem>>, vector<1x1x8x8xf32>
    %100 = vector.shape_cast %99 : vector<1x1x8x8xf32> to vector<8x8xf32>
    %cst_149 = arith.constant dense<0.000000e+00> : vector<16x8xf32>
    %101 = tpu.matmul %98, %100, %cst_149 {dimension_numbers = #tpu.dot_dimension_numbers<[1], [0], [0], [1], [0, 0, 1, 1], [], []>} : vector<16x8xf32>, vector<8x8xf32>, vector<16x8xf32> -> vector<16x8xf32>
    %102 = arith.addf %96, %101 : vector<16x8xf32>
    %c0_150 = arith.constant 0 : index
    %c1_151 = arith.constant 1 : index
    %c2_152 = arith.constant 2 : index
    %c0_153 = arith.constant 0 : index
    %103 = vector.load %arg10[%c0_150, %c1_151, %c2_152, %c0_153] : memref<1x6x8x8xf32, #tpu.memory_space<vmem>>, vector<1x4x4x8xf32>
    %104 = vector.shape_cast %103 : vector<1x4x4x8xf32> to vector<16x8xf32>
    %c1_154 = arith.constant 1 : index
    %c2_155 = arith.constant 2 : index
    %c0_156 = arith.constant 0 : index
    %c0_157 = arith.constant 0 : index
    %105 = vector.load %arg7[%c1_154, %c2_155, %c0_156, %c0_157] : memref<3x3x8x8xf32, #tpu.memory_space<vmem>>, vector<1x1x8x8xf32>
    %106 = vector.shape_cast %105 : vector<1x1x8x8xf32> to vector<8x8xf32>
    %cst_158 = arith.constant dense<0.000000e+00> : vector<16x8xf32>
    %107 = tpu.matmul %104, %106, %cst_158 {dimension_numbers = #tpu.dot_dimension_numbers<[1], [0], [0], [1], [0, 0, 1, 1], [], []>} : vector<16x8xf32>, vector<8x8xf32>, vector<16x8xf32> -> vector<16x8xf32>
    %108 = arith.addf %102, %107 : vector<16x8xf32>
    %c0_159 = arith.constant 0 : index
    %c2_160 = arith.constant 2 : index
    %c0_161 = arith.constant 0 : index
    %c0_162 = arith.constant 0 : index
    %109 = vector.load %arg10[%c0_159, %c2_160, %c0_161, %c0_162] : memref<1x6x8x8xf32, #tpu.memory_space<vmem>>, vector<1x4x4x8xf32>
    %110 = vector.shape_cast %109 : vector<1x4x4x8xf32> to vector<16x8xf32>
    %c2_163 = arith.constant 2 : index
    %c0_164 = arith.constant 0 : index
    %c0_165 = arith.constant 0 : index
    %c0_166 = arith.constant 0 : index
    %111 = vector.load %arg7[%c2_163, %c0_164, %c0_165, %c0_166] : memref<3x3x8x8xf32, #tpu.memory_space<vmem>>, vector<1x1x8x8xf32>
    %112 = vector.shape_cast %111 : vector<1x1x8x8xf32> to vector<8x8xf32>
    %cst_167 = arith.constant dense<0.000000e+00> : vector<16x8xf32>
    %113 = tpu.matmul %110, %112, %cst_167 {dimension_numbers = #tpu.dot_dimension_numbers<[1], [0], [0], [1], [0, 0, 1, 1], [], []>} : vector<16x8xf32>, vector<8x8xf32>, vector<16x8xf32> -> vector<16x8xf32>
    %114 = arith.addf %108, %113 : vector<16x8xf32>
    %c0_168 = arith.constant 0 : index
    %c2_169 = arith.constant 2 : index
    %c1_170 = arith.constant 1 : index
    %c0_171 = arith.constant 0 : index
    %115 = vector.load %arg10[%c0_168, %c2_169, %c1_170, %c0_171] : memref<1x6x8x8xf32, #tpu.memory_space<vmem>>, vector<1x4x4x8xf32>
    %116 = vector.shape_cast %115 : vector<1x4x4x8xf32> to vector<16x8xf32>
    %c2_172 = arith.constant 2 : index
    %c1_173 = arith.constant 1 : index
    %c0_174 = arith.constant 0 : index
    %c0_175 = arith.constant 0 : index
    %117 = vector.load %arg7[%c2_172, %c1_173, %c0_174, %c0_175] : memref<3x3x8x8xf32, #tpu.memory_space<vmem>>, vector<1x1x8x8xf32>
    %118 = vector.shape_cast %117 : vector<1x1x8x8xf32> to vector<8x8xf32>
    %cst_176 = arith.constant dense<0.000000e+00> : vector<16x8xf32>
    %119 = tpu.matmul %116, %118, %cst_176 {dimension_numbers = #tpu.dot_dimension_numbers<[1], [0], [0], [1], [0, 0, 1, 1], [], []>} : vector<16x8xf32>, vector<8x8xf32>, vector<16x8xf32> -> vector<16x8xf32>
    %120 = arith.addf %114, %119 : vector<16x8xf32>
    %c0_177 = arith.constant 0 : index
    %c2_178 = arith.constant 2 : index
    %c2_179 = arith.constant 2 : index
    %c0_180 = arith.constant 0 : index
    %121 = vector.load %arg10[%c0_177, %c2_178, %c2_179, %c0_180] : memref<1x6x8x8xf32, #tpu.memory_space<vmem>>, vector<1x4x4x8xf32>
    %122 = vector.shape_cast %121 : vector<1x4x4x8xf32> to vector<16x8xf32>
    %c2_181 = arith.constant 2 : index
    %c2_182 = arith.constant 2 : index
    %c0_183 = arith.constant 0 : index
    %c0_184 = arith.constant 0 : index
    %123 = vector.load %arg7[%c2_181, %c2_182, %c0_183, %c0_184] : memref<3x3x8x8xf32, #tpu.memory_space<vmem>>, vector<1x1x8x8xf32>
    %124 = vector.shape_cast %123 : vector<1x1x8x8xf32> to vector<8x8xf32>
    %cst_185 = arith.constant dense<0.000000e+00> : vector<16x8xf32>
    %125 = tpu.matmul %122, %124, %cst_185 {dimension_numbers = #tpu.dot_dimension_numbers<[1], [0], [0], [1], [0, 0, 1, 1], [], []>} : vector<16x8xf32>, vector<8x8xf32>, vector<16x8xf32> -> vector<16x8xf32>
    %126 = arith.addf %120, %125 : vector<16x8xf32>
    %127 = arith.addf %126, %61 : vector<16x8xf32>
    %c0_186 = arith.constant 0 : index
    %c0_187 = arith.constant 0 : index
    %128 = vector.load %arg8[%c0_186, %c0_187] : memref<1x8xf32, #tpu.memory_space<vmem>>, vector<1x8xf32>
    %129 = vector.broadcast %128 : vector<1x8xf32> to vector<16x8xf32>
    %130 = arith.addf %127, %129 : vector<16x8xf32>
    %cst_188 = arith.constant 0.000000e+00 : f32
    %131 = vector.broadcast %cst_188 : f32 to vector<16x8xf32>
    %132 = arith.maximumf %130, %131 : vector<16x8xf32>
    %133 = vector.shape_cast %132 : vector<16x8xf32> to vector<1x4x4x8xf32>
    %c0_189 = arith.constant 0 : index
    %c0_190 = arith.constant 0 : index
    %c0_191 = arith.constant 0 : index
    %c0_192 = arith.constant 0 : index
    %134 = vector.load %arg9[%c0_189, %c0_190, %c0_191, %c0_192] : memref<1x4x4x8xf32, #tpu.memory_space<vmem>>, vector<1x4x4x8xf32>
    tpu.vector_store %arg9[%c0_189, %c0_190, %c0_191, %c0_192], %133 {strides = array<i32>} : memref<1x4x4x8xf32, #tpu.memory_space<vmem>>, vector<1x4x4x8xf32>,
    return
  }
  func.func @transform_0(%arg0: i32) -> (i32, i32, i32, i32) {
    %c0_i32 = arith.constant 0 : i32
    %c0_i32_0 = arith.constant 0 : i32
    %c0_i32_1 = arith.constant 0 : i32
    %c0_i32_2 = arith.constant 0 : i32
    return %arg0, %c0_i32, %c0_i32_0, %c0_i32_1 : i32, i32, i32, i32
  }
  func.func @transform_1(%arg0: i32) -> (i32, i32, i32, i32) {
    %c0_i32 = arith.constant 0 : i32
    %c0_i32_0 = arith.constant 0 : i32
    %c0_i32_1 = arith.constant 0 : i32
    %c0_i32_2 = arith.constant 0 : i32
    return %arg0, %c0_i32, %c0_i32_0, %c0_i32_1 : i32, i32, i32, i32
  }
  func.func @transform_2(%arg0: i32) -> (i32, i32, i32, i32) {
    %c0_i32 = arith.constant 0 : i32
    %c0_i32_0 = arith.constant 0 : i32
    %c0_i32_1 = arith.constant 0 : i32
    %c0_i32_2 = arith.constant 0 : i32
    return %arg0, %c0_i32, %c0_i32_0, %c0_i32_1 : i32, i32, i32, i32
  }
  func.func @transform_3(%arg0: i32) -> (i32, i32, i32, i32) {
    %c0_i32 = arith.constant 0 : i32
    %c0_i32_0 = arith.constant 0 : i32
    %c0_i32_1 = arith.constant 0 : i32
    %c0_i32_2 = arith.constant 0 : i32
    return %arg0, %c0_i32, %c0_i32_0, %c0_i32_1 : i32, i32, i32, i32
  }
  func.func @transform_4(%arg0: i32) -> (i32, i32, i32, i32) {
    %c0_i32 = arith.constant 0 : i32
    %c0_i32_0 = arith.constant 0 : i32
    %c0_i32_1 = arith.constant 0 : i32
    %c0_i32_2 = arith.constant 0 : i32
    %c0_i32_3 = arith.constant 0 : i32
    return %c0_i32, %c0_i32_0, %c0_i32_1, %c0_i32_2 : i32, i32, i32, i32
  }
  func.func @transform_5(%arg0: i32) -> (i32, i32) {
    %c0_i32 = arith.constant 0 : i32
    %c0_i32_0 = arith.constant 0 : i32
    %c0_i32_1 = arith.constant 0 : i32
    return %c0_i32, %c0_i32_0 : i32, i32
  }
  func.func @transform_6(%arg0: i32) -> (i32, i32, i32, i32) {
    %c0_i32 = arith.constant 0 : i32
    %c0_i32_0 = arith.constant 0 : i32
    %c0_i32_1 = arith.constant 0 : i32
    %c0_i32_2 = arith.constant 0 : i32
    %c0_i32_3 = arith.constant 0 : i32
    return %c0_i32, %c0_i32_0, %c0_i32_1, %c0_i32_2 : i32, i32, i32, i32
  }
  func.func @transform_7(%arg0: i32) -> (i32, i32) {
    %c0_i32 = arith.constant 0 : i32
    %c0_i32_0 = arith.constant 0 : i32
    %c0_i32_1 = arith.constant 0 : i32
    return %c0_i32, %c0_i32_0 : i32, i32
  }
  func.func @transform_8(%arg0: i32) -> (i32, i32, i32, i32) {
    %c0_i32 = arith.constant 0 : i32
    %c0_i32_0 = arith.constant 0 : i32
    %c0_i32_1 = arith.constant 0 : i32
    %c0_i32_2 = arith.constant 0 : i32
    return %arg0, %c0_i32, %c0_i32_0, %c0_i32_1 : i32, i32, i32, i32
  }
}

module attributes {stable_mosaic.version = 11 : i64} {
  func.func @_res2d_kernel(%arg0: i32, %arg1: memref<1x3x3x8xf32, #tpu.memory_space<vmem>>, %arg2: memref<1x3x3x8xf32, #tpu.memory_space<vmem>>, %arg3: memref<1x3x3x8xf32, #tpu.memory_space<vmem>>, %arg4: memref<1x3x3x8xf32, #tpu.memory_space<vmem>>, %arg5: memref<3x3x8x32xf32, #tpu.memory_space<vmem>>, %arg6: memref<1x16xf32, #tpu.memory_space<vmem>>, %arg7: memref<3x3x16x16xf32, #tpu.memory_space<vmem>>, %arg8: memref<1x16xf32, #tpu.memory_space<vmem>>, %arg9: memref<1x2x2x16xf32, #tpu.memory_space<vmem>>, %arg10: memref<1x4x8x16xf32, #tpu.memory_space<vmem>>) attributes {dimension_semantics = [#tpu.dimension_semantics<parallel>], iteration_bounds = array<i64: 2>, scalar_prefetch = 0 : i64, scratch_operands = 1 : i64, tpu.core_type = #tpu.core_type<tc>, window_params = [{transform_indices = @transform_0, window_bounds = array<i64: 1, 3, 3, 8>}, {transform_indices = @transform_1, window_bounds = array<i64: 1, 3, 3, 8>}, {transform_indices = @transform_2, window_bounds = array<i64: 1, 3, 3, 8>}, {transform_indices = @transform_3, window_bounds = array<i64: 1, 3, 3, 8>}, {pipeline_mode = #tpu.pipeline_mode<synchronous>, transform_indices = @transform_4, window_bounds = array<i64: 3, 3, 8, 32>}, {pipeline_mode = #tpu.pipeline_mode<synchronous>, transform_indices = @transform_5, window_bounds = array<i64: 1, 16>}, {pipeline_mode = #tpu.pipeline_mode<synchronous>, transform_indices = @transform_6, window_bounds = array<i64: 3, 3, 16, 16>}, {pipeline_mode = #tpu.pipeline_mode<synchronous>, transform_indices = @transform_7, window_bounds = array<i64: 1, 16>}, {transform_indices = @transform_8, window_bounds = array<i64: 1, 2, 2, 16>}]} {
    %cst = arith.constant 0.000000e+00 : f32
    %0 = vector.broadcast %cst : f32 to vector<4x32xf32>
    %c0 = arith.constant 0 : index
    %c0_0 = arith.constant 0 : index
    %c0_1 = arith.constant 0 : index
    %c0_2 = arith.constant 0 : index
    %1 = vector.load %arg1[%c0, %c0_0, %c0_1, %c0_2] : memref<1x3x3x8xf32, #tpu.memory_space<vmem>>, vector<1x2x2x8xf32>
    %2 = vector.shape_cast %1 : vector<1x2x2x8xf32> to vector<4x8xf32>
    %c0_3 = arith.constant 0 : index
    %c0_4 = arith.constant 0 : index
    %c0_5 = arith.constant 0 : index
    %c0_6 = arith.constant 0 : index
    %3 = vector.load %arg5[%c0_3, %c0_4, %c0_5, %c0_6] : memref<3x3x8x32xf32, #tpu.memory_space<vmem>>, vector<1x1x8x32xf32>
    %4 = vector.shape_cast %3 : vector<1x1x8x32xf32> to vector<8x32xf32>
    %cst_7 = arith.constant dense<0.000000e+00> : vector<4x32xf32>
    %5 = tpu.matmul %2, %4, %cst_7 {dimension_numbers = #tpu.dot_dimension_numbers<[1], [0], [0], [1], [0, 0, 1, 1], [], []>} : vector<4x8xf32>, vector<8x32xf32>, vector<4x32xf32> -> vector<4x32xf32>
    %6 = arith.addf %0, %5 : vector<4x32xf32>
    %c0_8 = arith.constant 0 : index
    %c0_9 = arith.constant 0 : index
    %c0_10 = arith.constant 0 : index
    %c0_11 = arith.constant 0 : index
    %7 = vector.load %arg2[%c0_8, %c0_9, %c0_10, %c0_11] : memref<1x3x3x8xf32, #tpu.memory_space<vmem>>, vector<1x2x2x8xf32>
    %8 = vector.shape_cast %7 : vector<1x2x2x8xf32> to vector<4x8xf32>
    %c0_12 = arith.constant 0 : index
    %c1 = arith.constant 1 : index
    %c0_13 = arith.constant 0 : index
    %c0_14 = arith.constant 0 : index
    %9 = vector.load %arg5[%c0_12, %c1, %c0_13, %c0_14] : memref<3x3x8x32xf32, #tpu.memory_space<vmem>>, vector<1x1x8x32xf32>
    %10 = vector.shape_cast %9 : vector<1x1x8x32xf32> to vector<8x32xf32>
    %cst_15 = arith.constant dense<0.000000e+00> : vector<4x32xf32>
    %11 = tpu.matmul %8, %10, %cst_15 {dimension_numbers = #tpu.dot_dimension_numbers<[1], [0], [0], [1], [0, 0, 1, 1], [], []>} : vector<4x8xf32>, vector<8x32xf32>, vector<4x32xf32> -> vector<4x32xf32>
    %12 = arith.addf %6, %11 : vector<4x32xf32>
    %c0_16 = arith.constant 0 : index
    %c0_17 = arith.constant 0 : index
    %c1_18 = arith.constant 1 : index
    %c0_19 = arith.constant 0 : index
    %13 = vector.load %arg1[%c0_16, %c0_17, %c1_18, %c0_19] : memref<1x3x3x8xf32, #tpu.memory_space<vmem>>, vector<1x2x2x8xf32>
    %14 = vector.shape_cast %13 : vector<1x2x2x8xf32> to vector<4x8xf32>
    %c0_20 = arith.constant 0 : index
    %c2 = arith.constant 2 : index
    %c0_21 = arith.constant 0 : index
    %c0_22 = arith.constant 0 : index
    %15 = vector.load %arg5[%c0_20, %c2, %c0_21, %c0_22] : memref<3x3x8x32xf32, #tpu.memory_space<vmem>>, vector<1x1x8x32xf32>
    %16 = vector.shape_cast %15 : vector<1x1x8x32xf32> to vector<8x32xf32>
    %cst_23 = arith.constant dense<0.000000e+00> : vector<4x32xf32>
    %17 = tpu.matmul %14, %16, %cst_23 {dimension_numbers = #tpu.dot_dimension_numbers<[1], [0], [0], [1], [0, 0, 1, 1], [], []>} : vector<4x8xf32>, vector<8x32xf32>, vector<4x32xf32> -> vector<4x32xf32>
    %18 = arith.addf %12, %17 : vector<4x32xf32>
    %c0_24 = arith.constant 0 : index
    %c0_25 = arith.constant 0 : index
    %c0_26 = arith.constant 0 : index
    %c0_27 = arith.constant 0 : index
    %19 = vector.load %arg3[%c0_24, %c0_25, %c0_26, %c0_27] : memref<1x3x3x8xf32, #tpu.memory_space<vmem>>, vector<1x2x2x8xf32>
    %20 = vector.shape_cast %19 : vector<1x2x2x8xf32> to vector<4x8xf32>
    %c1_28 = arith.constant 1 : index
    %c0_29 = arith.constant 0 : index
    %c0_30 = arith.constant 0 : index
    %c0_31 = arith.constant 0 : index
    %21 = vector.load %arg5[%c1_28, %c0_29, %c0_30, %c0_31] : memref<3x3x8x32xf32, #tpu.memory_space<vmem>>, vector<1x1x8x32xf32>
    %22 = vector.shape_cast %21 : vector<1x1x8x32xf32> to vector<8x32xf32>
    %cst_32 = arith.constant dense<0.000000e+00> : vector<4x32xf32>
    %23 = tpu.matmul %20, %22, %cst_32 {dimension_numbers = #tpu.dot_dimension_numbers<[1], [0], [0], [1], [0, 0, 1, 1], [], []>} : vector<4x8xf32>, vector<8x32xf32>, vector<4x32xf32> -> vector<4x32xf32>
    %24 = arith.addf %18, %23 : vector<4x32xf32>
    %c0_33 = arith.constant 0 : index
    %c0_34 = arith.constant 0 : index
    %c0_35 = arith.constant 0 : index
    %c0_36 = arith.constant 0 : index
    %25 = vector.load %arg4[%c0_33, %c0_34, %c0_35, %c0_36] : memref<1x3x3x8xf32, #tpu.memory_space<vmem>>, vector<1x2x2x8xf32>
    %26 = vector.shape_cast %25 : vector<1x2x2x8xf32> to vector<4x8xf32>
    %c1_37 = arith.constant 1 : index
    %c1_38 = arith.constant 1 : index
    %c0_39 = arith.constant 0 : index
    %c0_40 = arith.constant 0 : index
    %27 = vector.load %arg5[%c1_37, %c1_38, %c0_39, %c0_40] : memref<3x3x8x32xf32, #tpu.memory_space<vmem>>, vector<1x1x8x32xf32>
    %28 = vector.shape_cast %27 : vector<1x1x8x32xf32> to vector<8x32xf32>
    %cst_41 = arith.constant dense<0.000000e+00> : vector<4x32xf32>
    %29 = tpu.matmul %26, %28, %cst_41 {dimension_numbers = #tpu.dot_dimension_numbers<[1], [0], [0], [1], [0, 0, 1, 1], [], []>} : vector<4x8xf32>, vector<8x32xf32>, vector<4x32xf32> -> vector<4x32xf32>
    %30 = arith.addf %24, %29 : vector<4x32xf32>
    %c0_42 = arith.constant 0 : index
    %c0_43 = arith.constant 0 : index
    %c1_44 = arith.constant 1 : index
    %c0_45 = arith.constant 0 : index
    %31 = vector.load %arg3[%c0_42, %c0_43, %c1_44, %c0_45] : memref<1x3x3x8xf32, #tpu.memory_space<vmem>>, vector<1x2x2x8xf32>
    %32 = vector.shape_cast %31 : vector<1x2x2x8xf32> to vector<4x8xf32>
    %c1_46 = arith.constant 1 : index
    %c2_47 = arith.constant 2 : index
    %c0_48 = arith.constant 0 : index
    %c0_49 = arith.constant 0 : index
    %33 = vector.load %arg5[%c1_46, %c2_47, %c0_48, %c0_49] : memref<3x3x8x32xf32, #tpu.memory_space<vmem>>, vector<1x1x8x32xf32>
    %34 = vector.shape_cast %33 : vector<1x1x8x32xf32> to vector<8x32xf32>
    %cst_50 = arith.constant dense<0.000000e+00> : vector<4x32xf32>
    %35 = tpu.matmul %32, %34, %cst_50 {dimension_numbers = #tpu.dot_dimension_numbers<[1], [0], [0], [1], [0, 0, 1, 1], [], []>} : vector<4x8xf32>, vector<8x32xf32>, vector<4x32xf32> -> vector<4x32xf32>
    %36 = arith.addf %30, %35 : vector<4x32xf32>
    %c0_51 = arith.constant 0 : index
    %c1_52 = arith.constant 1 : index
    %c0_53 = arith.constant 0 : index
    %c0_54 = arith.constant 0 : index
    %37 = vector.load %arg1[%c0_51, %c1_52, %c0_53, %c0_54] : memref<1x3x3x8xf32, #tpu.memory_space<vmem>>, vector<1x2x2x8xf32>
    %38 = vector.shape_cast %37 : vector<1x2x2x8xf32> to vector<4x8xf32>
    %c2_55 = arith.constant 2 : index
    %c0_56 = arith.constant 0 : index
    %c0_57 = arith.constant 0 : index
    %c0_58 = arith.constant 0 : index
    %39 = vector.load %arg5[%c2_55, %c0_56, %c0_57, %c0_58] : memref<3x3x8x32xf32, #tpu.memory_space<vmem>>, vector<1x1x8x32xf32>
    %40 = vector.shape_cast %39 : vector<1x1x8x32xf32> to vector<8x32xf32>
    %cst_59 = arith.constant dense<0.000000e+00> : vector<4x32xf32>
    %41 = tpu.matmul %38, %40, %cst_59 {dimension_numbers = #tpu.dot_dimension_numbers<[1], [0], [0], [1], [0, 0, 1, 1], [], []>} : vector<4x8xf32>, vector<8x32xf32>, vector<4x32xf32> -> vector<4x32xf32>
    %42 = arith.addf %36, %41 : vector<4x32xf32>
    %c0_60 = arith.constant 0 : index
    %c1_61 = arith.constant 1 : index
    %c0_62 = arith.constant 0 : index
    %c0_63 = arith.constant 0 : index
    %43 = vector.load %arg2[%c0_60, %c1_61, %c0_62, %c0_63] : memref<1x3x3x8xf32, #tpu.memory_space<vmem>>, vector<1x2x2x8xf32>
    %44 = vector.shape_cast %43 : vector<1x2x2x8xf32> to vector<4x8xf32>
    %c2_64 = arith.constant 2 : index
    %c1_65 = arith.constant 1 : index
    %c0_66 = arith.constant 0 : index
    %c0_67 = arith.constant 0 : index
    %45 = vector.load %arg5[%c2_64, %c1_65, %c0_66, %c0_67] : memref<3x3x8x32xf32, #tpu.memory_space<vmem>>, vector<1x1x8x32xf32>
    %46 = vector.shape_cast %45 : vector<1x1x8x32xf32> to vector<8x32xf32>
    %cst_68 = arith.constant dense<0.000000e+00> : vector<4x32xf32>
    %47 = tpu.matmul %44, %46, %cst_68 {dimension_numbers = #tpu.dot_dimension_numbers<[1], [0], [0], [1], [0, 0, 1, 1], [], []>} : vector<4x8xf32>, vector<8x32xf32>, vector<4x32xf32> -> vector<4x32xf32>
    %48 = arith.addf %42, %47 : vector<4x32xf32>
    %c0_69 = arith.constant 0 : index
    %c1_70 = arith.constant 1 : index
    %c1_71 = arith.constant 1 : index
    %c0_72 = arith.constant 0 : index
    %49 = vector.load %arg1[%c0_69, %c1_70, %c1_71, %c0_72] : memref<1x3x3x8xf32, #tpu.memory_space<vmem>>, vector<1x2x2x8xf32>
    %50 = vector.shape_cast %49 : vector<1x2x2x8xf32> to vector<4x8xf32>
    %c2_73 = arith.constant 2 : index
    %c2_74 = arith.constant 2 : index
    %c0_75 = arith.constant 0 : index
    %c0_76 = arith.constant 0 : index
    %51 = vector.load %arg5[%c2_73, %c2_74, %c0_75, %c0_76] : memref<3x3x8x32xf32, #tpu.memory_space<vmem>>, vector<1x1x8x32xf32>
    %52 = vector.shape_cast %51 : vector<1x1x8x32xf32> to vector<8x32xf32>
    %cst_77 = arith.constant dense<0.000000e+00> : vector<4x32xf32>
    %53 = tpu.matmul %50, %52, %cst_77 {dimension_numbers = #tpu.dot_dimension_numbers<[1], [0], [0], [1], [0, 0, 1, 1], [], []>} : vector<4x8xf32>, vector<8x32xf32>, vector<4x32xf32> -> vector<4x32xf32>
    %54 = arith.addf %48, %53 : vector<4x32xf32>
    %55 = vector.extract_strided_slice %54 {offsets = [0, 0], sizes = [4, 16], strides = [1, 1]} : vector<4x32xf32> to vector<4x16xf32>
    %c0_78 = arith.constant 0 : index
    %c0_79 = arith.constant 0 : index
    %56 = vector.load %arg6[%c0_78, %c0_79] : memref<1x16xf32, #tpu.memory_space<vmem>>, vector<1x16xf32>
    %57 = vector.broadcast %56 : vector<1x16xf32> to vector<4x16xf32>
    %58 = arith.addf %55, %57 : vector<4x16xf32>
    %cst_80 = arith.constant 0.000000e+00 : f32
    %59 = vector.broadcast %cst_80 : f32 to vector<4x16xf32>
    %60 = arith.maximumf %58, %59 : vector<4x16xf32>
    %61 = vector.extract_strided_slice %54 {offsets = [0, 16], sizes = [4, 16], strides = [1, 1]} : vector<4x32xf32> to vector<4x16xf32>
    %cst_81 = arith.constant 0.000000e+00 : f32
    %62 = vector.broadcast %cst_81 : f32 to vector<1x1x8x16xf32>
    %c0_82 = arith.constant 0 : index
    %c0_83 = arith.constant 0 : index
    %c0_84 = arith.constant 0 : index
    %c0_85 = arith.constant 0 : index
    %63 = vector.load %arg10[%c0_82, %c0_83, %c0_84, %c0_85] : memref<1x4x8x16xf32, #tpu.memory_space<vmem>>, vector<1x1x8x16xf32>
    tpu.vector_store %arg10[%c0_82, %c0_83, %c0_84, %c0_85], %62 {strides = array<i32>} : memref<1x4x8x16xf32, #tpu.memory_space<vmem>>, vector<1x1x8x16xf32>,
    %cst_86 = arith.constant 0.000000e+00 : f32
    %64 = vector.broadcast %cst_86 : f32 to vector<1x1x8x16xf32>
    %c0_87 = arith.constant 0 : index
    %c3 = arith.constant 3 : index
    %c0_88 = arith.constant 0 : index
    %c0_89 = arith.constant 0 : index
    %65 = vector.load %arg10[%c0_87, %c3, %c0_88, %c0_89] : memref<1x4x8x16xf32, #tpu.memory_space<vmem>>, vector<1x1x8x16xf32>
    tpu.vector_store %arg10[%c0_87, %c3, %c0_88, %c0_89], %64 {strides = array<i32>} : memref<1x4x8x16xf32, #tpu.memory_space<vmem>>, vector<1x1x8x16xf32>,
    %cst_90 = arith.constant 0.000000e+00 : f32
    %66 = vector.broadcast %cst_90 : f32 to vector<1x4x1x16xf32>
    %c0_91 = arith.constant 0 : index
    %c0_92 = arith.constant 0 : index
    %c0_93 = arith.constant 0 : index
    %c0_94 = arith.constant 0 : index
    %67 = vector.load %arg10[%c0_91, %c0_92, %c0_93, %c0_94] : memref<1x4x8x16xf32, #tpu.memory_space<vmem>>, vector<1x4x1x16xf32>
    tpu.vector_store %arg10[%c0_91, %c0_92, %c0_93, %c0_94], %66 {strides = array<i32>} : memref<1x4x8x16xf32, #tpu.memory_space<vmem>>, vector<1x4x1x16xf32>,
    %cst_95 = arith.constant 0.000000e+00 : f32
    %68 = vector.broadcast %cst_95 : f32 to vector<1x4x1x16xf32>
    %c0_96 = arith.constant 0 : index
    %c0_97 = arith.constant 0 : index
    %c3_98 = arith.constant 3 : index
    %c0_99 = arith.constant 0 : index
    %69 = vector.load %arg10[%c0_96, %c0_97, %c3_98, %c0_99] : memref<1x4x8x16xf32, #tpu.memory_space<vmem>>, vector<1x4x1x16xf32>
    tpu.vector_store %arg10[%c0_96, %c0_97, %c3_98, %c0_99], %68 {strides = array<i32>} : memref<1x4x8x16xf32, #tpu.memory_space<vmem>>, vector<1x4x1x16xf32>,
    %70 = vector.shape_cast %60 : vector<4x16xf32> to vector<1x2x2x16xf32>
    %c0_100 = arith.constant 0 : index
    %c1_101 = arith.constant 1 : index
    %c1_102 = arith.constant 1 : index
    %c0_103 = arith.constant 0 : index
    %71 = vector.load %arg10[%c0_100, %c1_101, %c1_102, %c0_103] : memref<1x4x8x16xf32, #tpu.memory_space<vmem>>, vector<1x2x2x16xf32>
    tpu.vector_store %arg10[%c0_100, %c1_101, %c1_102, %c0_103], %70 {strides = array<i32>} : memref<1x4x8x16xf32, #tpu.memory_space<vmem>>, vector<1x2x2x16xf32>,
    %cst_104 = arith.constant 0.000000e+00 : f32
    %72 = vector.broadcast %cst_104 : f32 to vector<4x16xf32>
    %c0_105 = arith.constant 0 : index
    %c0_106 = arith.constant 0 : index
    %c0_107 = arith.constant 0 : index
    %c0_108 = arith.constant 0 : index
    %73 = vector.load %arg10[%c0_105, %c0_106, %c0_107, %c0_108] : memref<1x4x8x16xf32, #tpu.memory_space<vmem>>, vector<1x2x2x16xf32>
    %74 = vector.shape_cast %73 : vector<1x2x2x16xf32> to vector<4x16xf32>
    %c0_109 = arith.constant 0 : index
    %c0_110 = arith.constant 0 : index
    %c0_111 = arith.constant 0 : index
    %c0_112 = arith.constant 0 : index
    %75 = vector.load %arg7[%c0_109, %c0_110, %c0_111, %c0_112] : memref<3x3x16x16xf32, #tpu.memory_space<vmem>>, vector<1x1x16x16xf32>
    %76 = vector.shape_cast %75 : vector<1x1x16x16xf32> to vector<16x16xf32>
    %cst_113 = arith.constant dense<0.000000e+00> : vector<4x16xf32>
    %77 = tpu.matmul %74, %76, %cst_113 {dimension_numbers = #tpu.dot_dimension_numbers<[1], [0], [0], [1], [0, 0, 1, 1], [], []>} : vector<4x16xf32>, vector<16x16xf32>, vector<4x16xf32> -> vector<4x16xf32>
    %78 = arith.addf %72, %77 : vector<4x16xf32>
    %c0_114 = arith.constant 0 : index
    %c0_115 = arith.constant 0 : index
    %c1_116 = arith.constant 1 : index
    %c0_117 = arith.constant 0 : index
    %79 = vector.load %arg10[%c0_114, %c0_115, %c1_116, %c0_117] : memref<1x4x8x16xf32, #tpu.memory_space<vmem>>, vector<1x2x2x16xf32>
    %80 = vector.shape_cast %79 : vector<1x2x2x16xf32> to vector<4x16xf32>
    %c0_118 = arith.constant 0 : index
    %c1_119 = arith.constant 1 : index
    %c0_120 = arith.constant 0 : index
    %c0_121 = arith.constant 0 : index
    %81 = vector.load %arg7[%c0_118, %c1_119, %c0_120, %c0_121] : memref<3x3x16x16xf32, #tpu.memory_space<vmem>>, vector<1x1x16x16xf32>
    %82 = vector.shape_cast %81 : vector<1x1x16x16xf32> to vector<16x16xf32>
    %cst_122 = arith.constant dense<0.000000e+00> : vector<4x16xf32>
    %83 = tpu.matmul %80, %82, %cst_122 {dimension_numbers = #tpu.dot_dimension_numbers<[1], [0], [0], [1], [0, 0, 1, 1], [], []>} : vector<4x16xf32>, vector<16x16xf32>, vector<4x16xf32> -> vector<4x16xf32>
    %84 = arith.addf %78, %83 : vector<4x16xf32>
    %c0_123 = arith.constant 0 : index
    %c0_124 = arith.constant 0 : index
    %c2_125 = arith.constant 2 : index
    %c0_126 = arith.constant 0 : index
    %85 = vector.load %arg10[%c0_123, %c0_124, %c2_125, %c0_126] : memref<1x4x8x16xf32, #tpu.memory_space<vmem>>, vector<1x2x2x16xf32>
    %86 = vector.shape_cast %85 : vector<1x2x2x16xf32> to vector<4x16xf32>
    %c0_127 = arith.constant 0 : index
    %c2_128 = arith.constant 2 : index
    %c0_129 = arith.constant 0 : index
    %c0_130 = arith.constant 0 : index
    %87 = vector.load %arg7[%c0_127, %c2_128, %c0_129, %c0_130] : memref<3x3x16x16xf32, #tpu.memory_space<vmem>>, vector<1x1x16x16xf32>
    %88 = vector.shape_cast %87 : vector<1x1x16x16xf32> to vector<16x16xf32>
    %cst_131 = arith.constant dense<0.000000e+00> : vector<4x16xf32>
    %89 = tpu.matmul %86, %88, %cst_131 {dimension_numbers = #tpu.dot_dimension_numbers<[1], [0], [0], [1], [0, 0, 1, 1], [], []>} : vector<4x16xf32>, vector<16x16xf32>, vector<4x16xf32> -> vector<4x16xf32>
    %90 = arith.addf %84, %89 : vector<4x16xf32>
    %c0_132 = arith.constant 0 : index
    %c1_133 = arith.constant 1 : index
    %c0_134 = arith.constant 0 : index
    %c0_135 = arith.constant 0 : index
    %91 = vector.load %arg10[%c0_132, %c1_133, %c0_134, %c0_135] : memref<1x4x8x16xf32, #tpu.memory_space<vmem>>, vector<1x2x2x16xf32>
    %92 = vector.shape_cast %91 : vector<1x2x2x16xf32> to vector<4x16xf32>
    %c1_136 = arith.constant 1 : index
    %c0_137 = arith.constant 0 : index
    %c0_138 = arith.constant 0 : index
    %c0_139 = arith.constant 0 : index
    %93 = vector.load %arg7[%c1_136, %c0_137, %c0_138, %c0_139] : memref<3x3x16x16xf32, #tpu.memory_space<vmem>>, vector<1x1x16x16xf32>
    %94 = vector.shape_cast %93 : vector<1x1x16x16xf32> to vector<16x16xf32>
    %cst_140 = arith.constant dense<0.000000e+00> : vector<4x16xf32>
    %95 = tpu.matmul %92, %94, %cst_140 {dimension_numbers = #tpu.dot_dimension_numbers<[1], [0], [0], [1], [0, 0, 1, 1], [], []>} : vector<4x16xf32>, vector<16x16xf32>, vector<4x16xf32> -> vector<4x16xf32>
    %96 = arith.addf %90, %95 : vector<4x16xf32>
    %c0_141 = arith.constant 0 : index
    %c1_142 = arith.constant 1 : index
    %c1_143 = arith.constant 1 : index
    %c0_144 = arith.constant 0 : index
    %97 = vector.load %arg10[%c0_141, %c1_142, %c1_143, %c0_144] : memref<1x4x8x16xf32, #tpu.memory_space<vmem>>, vector<1x2x2x16xf32>
    %98 = vector.shape_cast %97 : vector<1x2x2x16xf32> to vector<4x16xf32>
    %c1_145 = arith.constant 1 : index
    %c1_146 = arith.constant 1 : index
    %c0_147 = arith.constant 0 : index
    %c0_148 = arith.constant 0 : index
    %99 = vector.load %arg7[%c1_145, %c1_146, %c0_147, %c0_148] : memref<3x3x16x16xf32, #tpu.memory_space<vmem>>, vector<1x1x16x16xf32>
    %100 = vector.shape_cast %99 : vector<1x1x16x16xf32> to vector<16x16xf32>
    %cst_149 = arith.constant dense<0.000000e+00> : vector<4x16xf32>
    %101 = tpu.matmul %98, %100, %cst_149 {dimension_numbers = #tpu.dot_dimension_numbers<[1], [0], [0], [1], [0, 0, 1, 1], [], []>} : vector<4x16xf32>, vector<16x16xf32>, vector<4x16xf32> -> vector<4x16xf32>
    %102 = arith.addf %96, %101 : vector<4x16xf32>
    %c0_150 = arith.constant 0 : index
    %c1_151 = arith.constant 1 : index
    %c2_152 = arith.constant 2 : index
    %c0_153 = arith.constant 0 : index
    %103 = vector.load %arg10[%c0_150, %c1_151, %c2_152, %c0_153] : memref<1x4x8x16xf32, #tpu.memory_space<vmem>>, vector<1x2x2x16xf32>
    %104 = vector.shape_cast %103 : vector<1x2x2x16xf32> to vector<4x16xf32>
    %c1_154 = arith.constant 1 : index
    %c2_155 = arith.constant 2 : index
    %c0_156 = arith.constant 0 : index
    %c0_157 = arith.constant 0 : index
    %105 = vector.load %arg7[%c1_154, %c2_155, %c0_156, %c0_157] : memref<3x3x16x16xf32, #tpu.memory_space<vmem>>, vector<1x1x16x16xf32>
    %106 = vector.shape_cast %105 : vector<1x1x16x16xf32> to vector<16x16xf32>
    %cst_158 = arith.constant dense<0.000000e+00> : vector<4x16xf32>
    %107 = tpu.matmul %104, %106, %cst_158 {dimension_numbers = #tpu.dot_dimension_numbers<[1], [0], [0], [1], [0, 0, 1, 1], [], []>} : vector<4x16xf32>, vector<16x16xf32>, vector<4x16xf32> -> vector<4x16xf32>
    %108 = arith.addf %102, %107 : vector<4x16xf32>
    %c0_159 = arith.constant 0 : index
    %c2_160 = arith.constant 2 : index
    %c0_161 = arith.constant 0 : index
    %c0_162 = arith.constant 0 : index
    %109 = vector.load %arg10[%c0_159, %c2_160, %c0_161, %c0_162] : memref<1x4x8x16xf32, #tpu.memory_space<vmem>>, vector<1x2x2x16xf32>
    %110 = vector.shape_cast %109 : vector<1x2x2x16xf32> to vector<4x16xf32>
    %c2_163 = arith.constant 2 : index
    %c0_164 = arith.constant 0 : index
    %c0_165 = arith.constant 0 : index
    %c0_166 = arith.constant 0 : index
    %111 = vector.load %arg7[%c2_163, %c0_164, %c0_165, %c0_166] : memref<3x3x16x16xf32, #tpu.memory_space<vmem>>, vector<1x1x16x16xf32>
    %112 = vector.shape_cast %111 : vector<1x1x16x16xf32> to vector<16x16xf32>
    %cst_167 = arith.constant dense<0.000000e+00> : vector<4x16xf32>
    %113 = tpu.matmul %110, %112, %cst_167 {dimension_numbers = #tpu.dot_dimension_numbers<[1], [0], [0], [1], [0, 0, 1, 1], [], []>} : vector<4x16xf32>, vector<16x16xf32>, vector<4x16xf32> -> vector<4x16xf32>
    %114 = arith.addf %108, %113 : vector<4x16xf32>
    %c0_168 = arith.constant 0 : index
    %c2_169 = arith.constant 2 : index
    %c1_170 = arith.constant 1 : index
    %c0_171 = arith.constant 0 : index
    %115 = vector.load %arg10[%c0_168, %c2_169, %c1_170, %c0_171] : memref<1x4x8x16xf32, #tpu.memory_space<vmem>>, vector<1x2x2x16xf32>
    %116 = vector.shape_cast %115 : vector<1x2x2x16xf32> to vector<4x16xf32>
    %c2_172 = arith.constant 2 : index
    %c1_173 = arith.constant 1 : index
    %c0_174 = arith.constant 0 : index
    %c0_175 = arith.constant 0 : index
    %117 = vector.load %arg7[%c2_172, %c1_173, %c0_174, %c0_175] : memref<3x3x16x16xf32, #tpu.memory_space<vmem>>, vector<1x1x16x16xf32>
    %118 = vector.shape_cast %117 : vector<1x1x16x16xf32> to vector<16x16xf32>
    %cst_176 = arith.constant dense<0.000000e+00> : vector<4x16xf32>
    %119 = tpu.matmul %116, %118, %cst_176 {dimension_numbers = #tpu.dot_dimension_numbers<[1], [0], [0], [1], [0, 0, 1, 1], [], []>} : vector<4x16xf32>, vector<16x16xf32>, vector<4x16xf32> -> vector<4x16xf32>
    %120 = arith.addf %114, %119 : vector<4x16xf32>
    %c0_177 = arith.constant 0 : index
    %c2_178 = arith.constant 2 : index
    %c2_179 = arith.constant 2 : index
    %c0_180 = arith.constant 0 : index
    %121 = vector.load %arg10[%c0_177, %c2_178, %c2_179, %c0_180] : memref<1x4x8x16xf32, #tpu.memory_space<vmem>>, vector<1x2x2x16xf32>
    %122 = vector.shape_cast %121 : vector<1x2x2x16xf32> to vector<4x16xf32>
    %c2_181 = arith.constant 2 : index
    %c2_182 = arith.constant 2 : index
    %c0_183 = arith.constant 0 : index
    %c0_184 = arith.constant 0 : index
    %123 = vector.load %arg7[%c2_181, %c2_182, %c0_183, %c0_184] : memref<3x3x16x16xf32, #tpu.memory_space<vmem>>, vector<1x1x16x16xf32>
    %124 = vector.shape_cast %123 : vector<1x1x16x16xf32> to vector<16x16xf32>
    %cst_185 = arith.constant dense<0.000000e+00> : vector<4x16xf32>
    %125 = tpu.matmul %122, %124, %cst_185 {dimension_numbers = #tpu.dot_dimension_numbers<[1], [0], [0], [1], [0, 0, 1, 1], [], []>} : vector<4x16xf32>, vector<16x16xf32>, vector<4x16xf32> -> vector<4x16xf32>
    %126 = arith.addf %120, %125 : vector<4x16xf32>
    %127 = arith.addf %126, %61 : vector<4x16xf32>
    %c0_186 = arith.constant 0 : index
    %c0_187 = arith.constant 0 : index
    %128 = vector.load %arg8[%c0_186, %c0_187] : memref<1x16xf32, #tpu.memory_space<vmem>>, vector<1x16xf32>
    %129 = vector.broadcast %128 : vector<1x16xf32> to vector<4x16xf32>
    %130 = arith.addf %127, %129 : vector<4x16xf32>
    %cst_188 = arith.constant 0.000000e+00 : f32
    %131 = vector.broadcast %cst_188 : f32 to vector<4x16xf32>
    %132 = arith.maximumf %130, %131 : vector<4x16xf32>
    %133 = vector.shape_cast %132 : vector<4x16xf32> to vector<1x2x2x16xf32>
    %c0_189 = arith.constant 0 : index
    %c0_190 = arith.constant 0 : index
    %c0_191 = arith.constant 0 : index
    %c0_192 = arith.constant 0 : index
    %134 = vector.load %arg9[%c0_189, %c0_190, %c0_191, %c0_192] : memref<1x2x2x16xf32, #tpu.memory_space<vmem>>, vector<1x2x2x16xf32>
    tpu.vector_store %arg9[%c0_189, %c0_190, %c0_191, %c0_192], %133 {strides = array<i32>} : memref<1x2x2x16xf32, #tpu.memory_space<vmem>>, vector<1x2x2x16xf32>,
    return
  }
  func.func @transform_0(%arg0: i32) -> (i32, i32, i32, i32) {
    %c0_i32 = arith.constant 0 : i32
    %c0_i32_0 = arith.constant 0 : i32
    %c0_i32_1 = arith.constant 0 : i32
    %c0_i32_2 = arith.constant 0 : i32
    return %arg0, %c0_i32, %c0_i32_0, %c0_i32_1 : i32, i32, i32, i32
  }
  func.func @transform_1(%arg0: i32) -> (i32, i32, i32, i32) {
    %c0_i32 = arith.constant 0 : i32
    %c0_i32_0 = arith.constant 0 : i32
    %c0_i32_1 = arith.constant 0 : i32
    %c0_i32_2 = arith.constant 0 : i32
    return %arg0, %c0_i32, %c0_i32_0, %c0_i32_1 : i32, i32, i32, i32
  }
  func.func @transform_2(%arg0: i32) -> (i32, i32, i32, i32) {
    %c0_i32 = arith.constant 0 : i32
    %c0_i32_0 = arith.constant 0 : i32
    %c0_i32_1 = arith.constant 0 : i32
    %c0_i32_2 = arith.constant 0 : i32
    return %arg0, %c0_i32, %c0_i32_0, %c0_i32_1 : i32, i32, i32, i32
  }
  func.func @transform_3(%arg0: i32) -> (i32, i32, i32, i32) {
    %c0_i32 = arith.constant 0 : i32
    %c0_i32_0 = arith.constant 0 : i32
    %c0_i32_1 = arith.constant 0 : i32
    %c0_i32_2 = arith.constant 0 : i32
    return %arg0, %c0_i32, %c0_i32_0, %c0_i32_1 : i32, i32, i32, i32
  }
  func.func @transform_4(%arg0: i32) -> (i32, i32, i32, i32) {
    %c0_i32 = arith.constant 0 : i32
    %c0_i32_0 = arith.constant 0 : i32
    %c0_i32_1 = arith.constant 0 : i32
    %c0_i32_2 = arith.constant 0 : i32
    %c0_i32_3 = arith.constant 0 : i32
    return %c0_i32, %c0_i32_0, %c0_i32_1, %c0_i32_2 : i32, i32, i32, i32
  }
  func.func @transform_5(%arg0: i32) -> (i32, i32) {
    %c0_i32 = arith.constant 0 : i32
    %c0_i32_0 = arith.constant 0 : i32
    %c0_i32_1 = arith.constant 0 : i32
    return %c0_i32, %c0_i32_0 : i32, i32
  }
  func.func @transform_6(%arg0: i32) -> (i32, i32, i32, i32) {
    %c0_i32 = arith.constant 0 : i32
    %c0_i32_0 = arith.constant 0 : i32
    %c0_i32_1 = arith.constant 0 : i32
    %c0_i32_2 = arith.constant 0 : i32
    %c0_i32_3 = arith.constant 0 : i32
    return %c0_i32, %c0_i32_0, %c0_i32_1, %c0_i32_2 : i32, i32, i32, i32
  }
  func.func @transform_7(%arg0: i32) -> (i32, i32) {
    %c0_i32 = arith.constant 0 : i32
    %c0_i32_0 = arith.constant 0 : i32
    %c0_i32_1 = arith.constant 0 : i32
    return %c0_i32, %c0_i32_0 : i32, i32
  }
  func.func @transform_8(%arg0: i32) -> (i32, i32, i32, i32) {
    %c0_i32 = arith.constant 0 : i32
    %c0_i32_0 = arith.constant 0 : i32
    %c0_i32_1 = arith.constant 0 : i32
    %c0_i32_2 = arith.constant 0 : i32
    return %arg0, %c0_i32, %c0_i32_0, %c0_i32_1 : i32, i32, i32, i32
  }
}

module attributes {stable_mosaic.version = 11 : i64} {
  func.func @_res2d_kernel(%arg0: i32, %arg1: memref<1x2x2x16xf32, #tpu.memory_space<vmem>>, %arg2: memref<1x2x2x16xf32, #tpu.memory_space<vmem>>, %arg3: memref<1x2x2x16xf32, #tpu.memory_space<vmem>>, %arg4: memref<1x2x2x16xf32, #tpu.memory_space<vmem>>, %arg5: memref<3x3x16x32xf32, #tpu.memory_space<vmem>>, %arg6: memref<1x16xf32, #tpu.memory_space<vmem>>, %arg7: memref<3x3x16x16xf32, #tpu.memory_space<vmem>>, %arg8: memref<1x16xf32, #tpu.memory_space<vmem>>, %arg9: memref<1x1x1x16xf32, #tpu.memory_space<vmem>>, %arg10: memref<1x3x8x16xf32, #tpu.memory_space<vmem>>) attributes {dimension_semantics = [#tpu.dimension_semantics<parallel>], iteration_bounds = array<i64: 2>, scalar_prefetch = 0 : i64, scratch_operands = 1 : i64, tpu.core_type = #tpu.core_type<tc>, window_params = [{transform_indices = @transform_0, window_bounds = array<i64: 1, 2, 2, 16>}, {transform_indices = @transform_1, window_bounds = array<i64: 1, 2, 2, 16>}, {transform_indices = @transform_2, window_bounds = array<i64: 1, 2, 2, 16>}, {transform_indices = @transform_3, window_bounds = array<i64: 1, 2, 2, 16>}, {pipeline_mode = #tpu.pipeline_mode<synchronous>, transform_indices = @transform_4, window_bounds = array<i64: 3, 3, 16, 32>}, {pipeline_mode = #tpu.pipeline_mode<synchronous>, transform_indices = @transform_5, window_bounds = array<i64: 1, 16>}, {pipeline_mode = #tpu.pipeline_mode<synchronous>, transform_indices = @transform_6, window_bounds = array<i64: 3, 3, 16, 16>}, {pipeline_mode = #tpu.pipeline_mode<synchronous>, transform_indices = @transform_7, window_bounds = array<i64: 1, 16>}, {transform_indices = @transform_8, window_bounds = array<i64: 1, 1, 1, 16>}]} {
    %cst = arith.constant 0.000000e+00 : f32
    %0 = vector.broadcast %cst : f32 to vector<1x32xf32>
    %c0 = arith.constant 0 : index
    %c0_0 = arith.constant 0 : index
    %c0_1 = arith.constant 0 : index
    %c0_2 = arith.constant 0 : index
    %1 = vector.load %arg1[%c0, %c0_0, %c0_1, %c0_2] : memref<1x2x2x16xf32, #tpu.memory_space<vmem>>, vector<1x1x1x16xf32>
    %2 = vector.shape_cast %1 : vector<1x1x1x16xf32> to vector<1x16xf32>
    %c0_3 = arith.constant 0 : index
    %c0_4 = arith.constant 0 : index
    %c0_5 = arith.constant 0 : index
    %c0_6 = arith.constant 0 : index
    %3 = vector.load %arg5[%c0_3, %c0_4, %c0_5, %c0_6] : memref<3x3x16x32xf32, #tpu.memory_space<vmem>>, vector<1x1x16x32xf32>
    %4 = vector.shape_cast %3 : vector<1x1x16x32xf32> to vector<16x32xf32>
    %cst_7 = arith.constant dense<0.000000e+00> : vector<1x32xf32>
    %5 = tpu.matmul %2, %4, %cst_7 {dimension_numbers = #tpu.dot_dimension_numbers<[1], [0], [0], [1], [0, 0, 1, 1], [], []>} : vector<1x16xf32>, vector<16x32xf32>, vector<1x32xf32> -> vector<1x32xf32>
    %6 = arith.addf %0, %5 : vector<1x32xf32>
    %c0_8 = arith.constant 0 : index
    %c0_9 = arith.constant 0 : index
    %c0_10 = arith.constant 0 : index
    %c0_11 = arith.constant 0 : index
    %7 = vector.load %arg2[%c0_8, %c0_9, %c0_10, %c0_11] : memref<1x2x2x16xf32, #tpu.memory_space<vmem>>, vector<1x1x1x16xf32>
    %8 = vector.shape_cast %7 : vector<1x1x1x16xf32> to vector<1x16xf32>
    %c0_12 = arith.constant 0 : index
    %c1 = arith.constant 1 : index
    %c0_13 = arith.constant 0 : index
    %c0_14 = arith.constant 0 : index
    %9 = vector.load %arg5[%c0_12, %c1, %c0_13, %c0_14] : memref<3x3x16x32xf32, #tpu.memory_space<vmem>>, vector<1x1x16x32xf32>
    %10 = vector.shape_cast %9 : vector<1x1x16x32xf32> to vector<16x32xf32>
    %cst_15 = arith.constant dense<0.000000e+00> : vector<1x32xf32>
    %11 = tpu.matmul %8, %10, %cst_15 {dimension_numbers = #tpu.dot_dimension_numbers<[1], [0], [0], [1], [0, 0, 1, 1], [], []>} : vector<1x16xf32>, vector<16x32xf32>, vector<1x32xf32> -> vector<1x32xf32>
    %12 = arith.addf %6, %11 : vector<1x32xf32>
    %c0_16 = arith.constant 0 : index
    %c0_17 = arith.constant 0 : index
    %c1_18 = arith.constant 1 : index
    %c0_19 = arith.constant 0 : index
    %13 = vector.load %arg1[%c0_16, %c0_17, %c1_18, %c0_19] : memref<1x2x2x16xf32, #tpu.memory_space<vmem>>, vector<1x1x1x16xf32>
    %14 = vector.shape_cast %13 : vector<1x1x1x16xf32> to vector<1x16xf32>
    %c0_20 = arith.constant 0 : index
    %c2 = arith.constant 2 : index
    %c0_21 = arith.constant 0 : index
    %c0_22 = arith.constant 0 : index
    %15 = vector.load %arg5[%c0_20, %c2, %c0_21, %c0_22] : memref<3x3x16x32xf32, #tpu.memory_space<vmem>>, vector<1x1x16x32xf32>
    %16 = vector.shape_cast %15 : vector<1x1x16x32xf32> to vector<16x32xf32>
    %cst_23 = arith.constant dense<0.000000e+00> : vector<1x32xf32>
    %17 = tpu.matmul %14, %16, %cst_23 {dimension_numbers = #tpu.dot_dimension_numbers<[1], [0], [0], [1], [0, 0, 1, 1], [], []>} : vector<1x16xf32>, vector<16x32xf32>, vector<1x32xf32> -> vector<1x32xf32>
    %18 = arith.addf %12, %17 : vector<1x32xf32>
    %c0_24 = arith.constant 0 : index
    %c0_25 = arith.constant 0 : index
    %c0_26 = arith.constant 0 : index
    %c0_27 = arith.constant 0 : index
    %19 = vector.load %arg3[%c0_24, %c0_25, %c0_26, %c0_27] : memref<1x2x2x16xf32, #tpu.memory_space<vmem>>, vector<1x1x1x16xf32>
    %20 = vector.shape_cast %19 : vector<1x1x1x16xf32> to vector<1x16xf32>
    %c1_28 = arith.constant 1 : index
    %c0_29 = arith.constant 0 : index
    %c0_30 = arith.constant 0 : index
    %c0_31 = arith.constant 0 : index
    %21 = vector.load %arg5[%c1_28, %c0_29, %c0_30, %c0_31] : memref<3x3x16x32xf32, #tpu.memory_space<vmem>>, vector<1x1x16x32xf32>
    %22 = vector.shape_cast %21 : vector<1x1x16x32xf32> to vector<16x32xf32>
    %cst_32 = arith.constant dense<0.000000e+00> : vector<1x32xf32>
    %23 = tpu.matmul %20, %22, %cst_32 {dimension_numbers = #tpu.dot_dimension_numbers<[1], [0], [0], [1], [0, 0, 1, 1], [], []>} : vector<1x16xf32>, vector<16x32xf32>, vector<1x32xf32> -> vector<1x32xf32>
    %24 = arith.addf %18, %23 : vector<1x32xf32>
    %c0_33 = arith.constant 0 : index
    %c0_34 = arith.constant 0 : index
    %c0_35 = arith.constant 0 : index
    %c0_36 = arith.constant 0 : index
    %25 = vector.load %arg4[%c0_33, %c0_34, %c0_35, %c0_36] : memref<1x2x2x16xf32, #tpu.memory_space<vmem>>, vector<1x1x1x16xf32>
    %26 = vector.shape_cast %25 : vector<1x1x1x16xf32> to vector<1x16xf32>
    %c1_37 = arith.constant 1 : index
    %c1_38 = arith.constant 1 : index
    %c0_39 = arith.constant 0 : index
    %c0_40 = arith.constant 0 : index
    %27 = vector.load %arg5[%c1_37, %c1_38, %c0_39, %c0_40] : memref<3x3x16x32xf32, #tpu.memory_space<vmem>>, vector<1x1x16x32xf32>
    %28 = vector.shape_cast %27 : vector<1x1x16x32xf32> to vector<16x32xf32>
    %cst_41 = arith.constant dense<0.000000e+00> : vector<1x32xf32>
    %29 = tpu.matmul %26, %28, %cst_41 {dimension_numbers = #tpu.dot_dimension_numbers<[1], [0], [0], [1], [0, 0, 1, 1], [], []>} : vector<1x16xf32>, vector<16x32xf32>, vector<1x32xf32> -> vector<1x32xf32>
    %30 = arith.addf %24, %29 : vector<1x32xf32>
    %c0_42 = arith.constant 0 : index
    %c0_43 = arith.constant 0 : index
    %c1_44 = arith.constant 1 : index
    %c0_45 = arith.constant 0 : index
    %31 = vector.load %arg3[%c0_42, %c0_43, %c1_44, %c0_45] : memref<1x2x2x16xf32, #tpu.memory_space<vmem>>, vector<1x1x1x16xf32>
    %32 = vector.shape_cast %31 : vector<1x1x1x16xf32> to vector<1x16xf32>
    %c1_46 = arith.constant 1 : index
    %c2_47 = arith.constant 2 : index
    %c0_48 = arith.constant 0 : index
    %c0_49 = arith.constant 0 : index
    %33 = vector.load %arg5[%c1_46, %c2_47, %c0_48, %c0_49] : memref<3x3x16x32xf32, #tpu.memory_space<vmem>>, vector<1x1x16x32xf32>
    %34 = vector.shape_cast %33 : vector<1x1x16x32xf32> to vector<16x32xf32>
    %cst_50 = arith.constant dense<0.000000e+00> : vector<1x32xf32>
    %35 = tpu.matmul %32, %34, %cst_50 {dimension_numbers = #tpu.dot_dimension_numbers<[1], [0], [0], [1], [0, 0, 1, 1], [], []>} : vector<1x16xf32>, vector<16x32xf32>, vector<1x32xf32> -> vector<1x32xf32>
    %36 = arith.addf %30, %35 : vector<1x32xf32>
    %c0_51 = arith.constant 0 : index
    %c1_52 = arith.constant 1 : index
    %c0_53 = arith.constant 0 : index
    %c0_54 = arith.constant 0 : index
    %37 = vector.load %arg1[%c0_51, %c1_52, %c0_53, %c0_54] : memref<1x2x2x16xf32, #tpu.memory_space<vmem>>, vector<1x1x1x16xf32>
    %38 = vector.shape_cast %37 : vector<1x1x1x16xf32> to vector<1x16xf32>
    %c2_55 = arith.constant 2 : index
    %c0_56 = arith.constant 0 : index
    %c0_57 = arith.constant 0 : index
    %c0_58 = arith.constant 0 : index
    %39 = vector.load %arg5[%c2_55, %c0_56, %c0_57, %c0_58] : memref<3x3x16x32xf32, #tpu.memory_space<vmem>>, vector<1x1x16x32xf32>
    %40 = vector.shape_cast %39 : vector<1x1x16x32xf32> to vector<16x32xf32>
    %cst_59 = arith.constant dense<0.000000e+00> : vector<1x32xf32>
    %41 = tpu.matmul %38, %40, %cst_59 {dimension_numbers = #tpu.dot_dimension_numbers<[1], [0], [0], [1], [0, 0, 1, 1], [], []>} : vector<1x16xf32>, vector<16x32xf32>, vector<1x32xf32> -> vector<1x32xf32>
    %42 = arith.addf %36, %41 : vector<1x32xf32>
    %c0_60 = arith.constant 0 : index
    %c1_61 = arith.constant 1 : index
    %c0_62 = arith.constant 0 : index
    %c0_63 = arith.constant 0 : index
    %43 = vector.load %arg2[%c0_60, %c1_61, %c0_62, %c0_63] : memref<1x2x2x16xf32, #tpu.memory_space<vmem>>, vector<1x1x1x16xf32>
    %44 = vector.shape_cast %43 : vector<1x1x1x16xf32> to vector<1x16xf32>
    %c2_64 = arith.constant 2 : index
    %c1_65 = arith.constant 1 : index
    %c0_66 = arith.constant 0 : index
    %c0_67 = arith.constant 0 : index
    %45 = vector.load %arg5[%c2_64, %c1_65, %c0_66, %c0_67] : memref<3x3x16x32xf32, #tpu.memory_space<vmem>>, vector<1x1x16x32xf32>
    %46 = vector.shape_cast %45 : vector<1x1x16x32xf32> to vector<16x32xf32>
    %cst_68 = arith.constant dense<0.000000e+00> : vector<1x32xf32>
    %47 = tpu.matmul %44, %46, %cst_68 {dimension_numbers = #tpu.dot_dimension_numbers<[1], [0], [0], [1], [0, 0, 1, 1], [], []>} : vector<1x16xf32>, vector<16x32xf32>, vector<1x32xf32> -> vector<1x32xf32>
    %48 = arith.addf %42, %47 : vector<1x32xf32>
    %c0_69 = arith.constant 0 : index
    %c1_70 = arith.constant 1 : index
    %c1_71 = arith.constant 1 : index
    %c0_72 = arith.constant 0 : index
    %49 = vector.load %arg1[%c0_69, %c1_70, %c1_71, %c0_72] : memref<1x2x2x16xf32, #tpu.memory_space<vmem>>, vector<1x1x1x16xf32>
    %50 = vector.shape_cast %49 : vector<1x1x1x16xf32> to vector<1x16xf32>
    %c2_73 = arith.constant 2 : index
    %c2_74 = arith.constant 2 : index
    %c0_75 = arith.constant 0 : index
    %c0_76 = arith.constant 0 : index
    %51 = vector.load %arg5[%c2_73, %c2_74, %c0_75, %c0_76] : memref<3x3x16x32xf32, #tpu.memory_space<vmem>>, vector<1x1x16x32xf32>
    %52 = vector.shape_cast %51 : vector<1x1x16x32xf32> to vector<16x32xf32>
    %cst_77 = arith.constant dense<0.000000e+00> : vector<1x32xf32>
    %53 = tpu.matmul %50, %52, %cst_77 {dimension_numbers = #tpu.dot_dimension_numbers<[1], [0], [0], [1], [0, 0, 1, 1], [], []>} : vector<1x16xf32>, vector<16x32xf32>, vector<1x32xf32> -> vector<1x32xf32>
    %54 = arith.addf %48, %53 : vector<1x32xf32>
    %55 = vector.extract_strided_slice %54 {offsets = [0, 0], sizes = [1, 16], strides = [1, 1]} : vector<1x32xf32> to vector<1x16xf32>
    %c0_78 = arith.constant 0 : index
    %c0_79 = arith.constant 0 : index
    %56 = vector.load %arg6[%c0_78, %c0_79] : memref<1x16xf32, #tpu.memory_space<vmem>>, vector<1x16xf32>
    %57 = arith.addf %55, %56 : vector<1x16xf32>
    %cst_80 = arith.constant 0.000000e+00 : f32
    %58 = vector.broadcast %cst_80 : f32 to vector<1x16xf32>
    %59 = arith.maximumf %57, %58 : vector<1x16xf32>
    %60 = vector.extract_strided_slice %54 {offsets = [0, 16], sizes = [1, 16], strides = [1, 1]} : vector<1x32xf32> to vector<1x16xf32>
    %cst_81 = arith.constant 0.000000e+00 : f32
    %61 = vector.broadcast %cst_81 : f32 to vector<1x1x8x16xf32>
    %c0_82 = arith.constant 0 : index
    %c0_83 = arith.constant 0 : index
    %c0_84 = arith.constant 0 : index
    %c0_85 = arith.constant 0 : index
    %62 = vector.load %arg10[%c0_82, %c0_83, %c0_84, %c0_85] : memref<1x3x8x16xf32, #tpu.memory_space<vmem>>, vector<1x1x8x16xf32>
    tpu.vector_store %arg10[%c0_82, %c0_83, %c0_84, %c0_85], %61 {strides = array<i32>} : memref<1x3x8x16xf32, #tpu.memory_space<vmem>>, vector<1x1x8x16xf32>,
    %cst_86 = arith.constant 0.000000e+00 : f32
    %63 = vector.broadcast %cst_86 : f32 to vector<1x1x8x16xf32>
    %c0_87 = arith.constant 0 : index
    %c2_88 = arith.constant 2 : index
    %c0_89 = arith.constant 0 : index
    %c0_90 = arith.constant 0 : index
    %64 = vector.load %arg10[%c0_87, %c2_88, %c0_89, %c0_90] : memref<1x3x8x16xf32, #tpu.memory_space<vmem>>, vector<1x1x8x16xf32>
    tpu.vector_store %arg10[%c0_87, %c2_88, %c0_89, %c0_90], %63 {strides = array<i32>} : memref<1x3x8x16xf32, #tpu.memory_space<vmem>>, vector<1x1x8x16xf32>,
    %cst_91 = arith.constant 0.000000e+00 : f32
    %65 = vector.broadcast %cst_91 : f32 to vector<1x3x1x16xf32>
    %c0_92 = arith.constant 0 : index
    %c0_93 = arith.constant 0 : index
    %c0_94 = arith.constant 0 : index
    %c0_95 = arith.constant 0 : index
    %66 = vector.load %arg10[%c0_92, %c0_93, %c0_94, %c0_95] : memref<1x3x8x16xf32, #tpu.memory_space<vmem>>, vector<1x3x1x16xf32>
    tpu.vector_store %arg10[%c0_92, %c0_93, %c0_94, %c0_95], %65 {strides = array<i32>} : memref<1x3x8x16xf32, #tpu.memory_space<vmem>>, vector<1x3x1x16xf32>,
    %cst_96 = arith.constant 0.000000e+00 : f32
    %67 = vector.broadcast %cst_96 : f32 to vector<1x3x1x16xf32>
    %c0_97 = arith.constant 0 : index
    %c0_98 = arith.constant 0 : index
    %c2_99 = arith.constant 2 : index
    %c0_100 = arith.constant 0 : index
    %68 = vector.load %arg10[%c0_97, %c0_98, %c2_99, %c0_100] : memref<1x3x8x16xf32, #tpu.memory_space<vmem>>, vector<1x3x1x16xf32>
    tpu.vector_store %arg10[%c0_97, %c0_98, %c2_99, %c0_100], %67 {strides = array<i32>} : memref<1x3x8x16xf32, #tpu.memory_space<vmem>>, vector<1x3x1x16xf32>,
    %69 = vector.shape_cast %59 : vector<1x16xf32> to vector<1x1x1x16xf32>
    %c0_101 = arith.constant 0 : index
    %c1_102 = arith.constant 1 : index
    %c1_103 = arith.constant 1 : index
    %c0_104 = arith.constant 0 : index
    %70 = vector.load %arg10[%c0_101, %c1_102, %c1_103, %c0_104] : memref<1x3x8x16xf32, #tpu.memory_space<vmem>>, vector<1x1x1x16xf32>
    tpu.vector_store %arg10[%c0_101, %c1_102, %c1_103, %c0_104], %69 {strides = array<i32>} : memref<1x3x8x16xf32, #tpu.memory_space<vmem>>, vector<1x1x1x16xf32>,
    %cst_105 = arith.constant 0.000000e+00 : f32
    %71 = vector.broadcast %cst_105 : f32 to vector<1x16xf32>
    %c0_106 = arith.constant 0 : index
    %c0_107 = arith.constant 0 : index
    %c0_108 = arith.constant 0 : index
    %c0_109 = arith.constant 0 : index
    %72 = vector.load %arg10[%c0_106, %c0_107, %c0_108, %c0_109] : memref<1x3x8x16xf32, #tpu.memory_space<vmem>>, vector<1x1x1x16xf32>
    %73 = vector.shape_cast %72 : vector<1x1x1x16xf32> to vector<1x16xf32>
    %c0_110 = arith.constant 0 : index
    %c0_111 = arith.constant 0 : index
    %c0_112 = arith.constant 0 : index
    %c0_113 = arith.constant 0 : index
    %74 = vector.load %arg7[%c0_110, %c0_111, %c0_112, %c0_113] : memref<3x3x16x16xf32, #tpu.memory_space<vmem>>, vector<1x1x16x16xf32>
    %75 = vector.shape_cast %74 : vector<1x1x16x16xf32> to vector<16x16xf32>
    %cst_114 = arith.constant dense<0.000000e+00> : vector<1x16xf32>
    %76 = tpu.matmul %73, %75, %cst_114 {dimension_numbers = #tpu.dot_dimension_numbers<[1], [0], [0], [1], [0, 0, 1, 1], [], []>} : vector<1x16xf32>, vector<16x16xf32>, vector<1x16xf32> -> vector<1x16xf32>
    %77 = arith.addf %71, %76 : vector<1x16xf32>
    %c0_115 = arith.constant 0 : index
    %c0_116 = arith.constant 0 : index
    %c1_117 = arith.constant 1 : index
    %c0_118 = arith.constant 0 : index
    %78 = vector.load %arg10[%c0_115, %c0_116, %c1_117, %c0_118] : memref<1x3x8x16xf32, #tpu.memory_space<vmem>>, vector<1x1x1x16xf32>
    %79 = vector.shape_cast %78 : vector<1x1x1x16xf32> to vector<1x16xf32>
    %c0_119 = arith.constant 0 : index
    %c1_120 = arith.constant 1 : index
    %c0_121 = arith.constant 0 : index
    %c0_122 = arith.constant 0 : index
    %80 = vector.load %arg7[%c0_119, %c1_120, %c0_121, %c0_122] : memref<3x3x16x16xf32, #tpu.memory_space<vmem>>, vector<1x1x16x16xf32>
    %81 = vector.shape_cast %80 : vector<1x1x16x16xf32> to vector<16x16xf32>
    %cst_123 = arith.constant dense<0.000000e+00> : vector<1x16xf32>
    %82 = tpu.matmul %79, %81, %cst_123 {dimension_numbers = #tpu.dot_dimension_numbers<[1], [0], [0], [1], [0, 0, 1, 1], [], []>} : vector<1x16xf32>, vector<16x16xf32>, vector<1x16xf32> -> vector<1x16xf32>
    %83 = arith.addf %77, %82 : vector<1x16xf32>
    %c0_124 = arith.constant 0 : index
    %c0_125 = arith.constant 0 : index
    %c2_126 = arith.constant 2 : index
    %c0_127 = arith.constant 0 : index
    %84 = vector.load %arg10[%c0_124, %c0_125, %c2_126, %c0_127] : memref<1x3x8x16xf32, #tpu.memory_space<vmem>>, vector<1x1x1x16xf32>
    %85 = vector.shape_cast %84 : vector<1x1x1x16xf32> to vector<1x16xf32>
    %c0_128 = arith.constant 0 : index
    %c2_129 = arith.constant 2 : index
    %c0_130 = arith.constant 0 : index
    %c0_131 = arith.constant 0 : index
    %86 = vector.load %arg7[%c0_128, %c2_129, %c0_130, %c0_131] : memref<3x3x16x16xf32, #tpu.memory_space<vmem>>, vector<1x1x16x16xf32>
    %87 = vector.shape_cast %86 : vector<1x1x16x16xf32> to vector<16x16xf32>
    %cst_132 = arith.constant dense<0.000000e+00> : vector<1x16xf32>
    %88 = tpu.matmul %85, %87, %cst_132 {dimension_numbers = #tpu.dot_dimension_numbers<[1], [0], [0], [1], [0, 0, 1, 1], [], []>} : vector<1x16xf32>, vector<16x16xf32>, vector<1x16xf32> -> vector<1x16xf32>
    %89 = arith.addf %83, %88 : vector<1x16xf32>
    %c0_133 = arith.constant 0 : index
    %c1_134 = arith.constant 1 : index
    %c0_135 = arith.constant 0 : index
    %c0_136 = arith.constant 0 : index
    %90 = vector.load %arg10[%c0_133, %c1_134, %c0_135, %c0_136] : memref<1x3x8x16xf32, #tpu.memory_space<vmem>>, vector<1x1x1x16xf32>
    %91 = vector.shape_cast %90 : vector<1x1x1x16xf32> to vector<1x16xf32>
    %c1_137 = arith.constant 1 : index
    %c0_138 = arith.constant 0 : index
    %c0_139 = arith.constant 0 : index
    %c0_140 = arith.constant 0 : index
    %92 = vector.load %arg7[%c1_137, %c0_138, %c0_139, %c0_140] : memref<3x3x16x16xf32, #tpu.memory_space<vmem>>, vector<1x1x16x16xf32>
    %93 = vector.shape_cast %92 : vector<1x1x16x16xf32> to vector<16x16xf32>
    %cst_141 = arith.constant dense<0.000000e+00> : vector<1x16xf32>
    %94 = tpu.matmul %91, %93, %cst_141 {dimension_numbers = #tpu.dot_dimension_numbers<[1], [0], [0], [1], [0, 0, 1, 1], [], []>} : vector<1x16xf32>, vector<16x16xf32>, vector<1x16xf32> -> vector<1x16xf32>
    %95 = arith.addf %89, %94 : vector<1x16xf32>
    %c0_142 = arith.constant 0 : index
    %c1_143 = arith.constant 1 : index
    %c1_144 = arith.constant 1 : index
    %c0_145 = arith.constant 0 : index
    %96 = vector.load %arg10[%c0_142, %c1_143, %c1_144, %c0_145] : memref<1x3x8x16xf32, #tpu.memory_space<vmem>>, vector<1x1x1x16xf32>
    %97 = vector.shape_cast %96 : vector<1x1x1x16xf32> to vector<1x16xf32>
    %c1_146 = arith.constant 1 : index
    %c1_147 = arith.constant 1 : index
    %c0_148 = arith.constant 0 : index
    %c0_149 = arith.constant 0 : index
    %98 = vector.load %arg7[%c1_146, %c1_147, %c0_148, %c0_149] : memref<3x3x16x16xf32, #tpu.memory_space<vmem>>, vector<1x1x16x16xf32>
    %99 = vector.shape_cast %98 : vector<1x1x16x16xf32> to vector<16x16xf32>
    %cst_150 = arith.constant dense<0.000000e+00> : vector<1x16xf32>
    %100 = tpu.matmul %97, %99, %cst_150 {dimension_numbers = #tpu.dot_dimension_numbers<[1], [0], [0], [1], [0, 0, 1, 1], [], []>} : vector<1x16xf32>, vector<16x16xf32>, vector<1x16xf32> -> vector<1x16xf32>
    %101 = arith.addf %95, %100 : vector<1x16xf32>
    %c0_151 = arith.constant 0 : index
    %c1_152 = arith.constant 1 : index
    %c2_153 = arith.constant 2 : index
    %c0_154 = arith.constant 0 : index
    %102 = vector.load %arg10[%c0_151, %c1_152, %c2_153, %c0_154] : memref<1x3x8x16xf32, #tpu.memory_space<vmem>>, vector<1x1x1x16xf32>
    %103 = vector.shape_cast %102 : vector<1x1x1x16xf32> to vector<1x16xf32>
    %c1_155 = arith.constant 1 : index
    %c2_156 = arith.constant 2 : index
    %c0_157 = arith.constant 0 : index
    %c0_158 = arith.constant 0 : index
    %104 = vector.load %arg7[%c1_155, %c2_156, %c0_157, %c0_158] : memref<3x3x16x16xf32, #tpu.memory_space<vmem>>, vector<1x1x16x16xf32>
    %105 = vector.shape_cast %104 : vector<1x1x16x16xf32> to vector<16x16xf32>
    %cst_159 = arith.constant dense<0.000000e+00> : vector<1x16xf32>
    %106 = tpu.matmul %103, %105, %cst_159 {dimension_numbers = #tpu.dot_dimension_numbers<[1], [0], [0], [1], [0, 0, 1, 1], [], []>} : vector<1x16xf32>, vector<16x16xf32>, vector<1x16xf32> -> vector<1x16xf32>
    %107 = arith.addf %101, %106 : vector<1x16xf32>
    %c0_160 = arith.constant 0 : index
    %c2_161 = arith.constant 2 : index
    %c0_162 = arith.constant 0 : index
    %c0_163 = arith.constant 0 : index
    %108 = vector.load %arg10[%c0_160, %c2_161, %c0_162, %c0_163] : memref<1x3x8x16xf32, #tpu.memory_space<vmem>>, vector<1x1x1x16xf32>
    %109 = vector.shape_cast %108 : vector<1x1x1x16xf32> to vector<1x16xf32>
    %c2_164 = arith.constant 2 : index
    %c0_165 = arith.constant 0 : index
    %c0_166 = arith.constant 0 : index
    %c0_167 = arith.constant 0 : index
    %110 = vector.load %arg7[%c2_164, %c0_165, %c0_166, %c0_167] : memref<3x3x16x16xf32, #tpu.memory_space<vmem>>, vector<1x1x16x16xf32>
    %111 = vector.shape_cast %110 : vector<1x1x16x16xf32> to vector<16x16xf32>
    %cst_168 = arith.constant dense<0.000000e+00> : vector<1x16xf32>
    %112 = tpu.matmul %109, %111, %cst_168 {dimension_numbers = #tpu.dot_dimension_numbers<[1], [0], [0], [1], [0, 0, 1, 1], [], []>} : vector<1x16xf32>, vector<16x16xf32>, vector<1x16xf32> -> vector<1x16xf32>
    %113 = arith.addf %107, %112 : vector<1x16xf32>
    %c0_169 = arith.constant 0 : index
    %c2_170 = arith.constant 2 : index
    %c1_171 = arith.constant 1 : index
    %c0_172 = arith.constant 0 : index
    %114 = vector.load %arg10[%c0_169, %c2_170, %c1_171, %c0_172] : memref<1x3x8x16xf32, #tpu.memory_space<vmem>>, vector<1x1x1x16xf32>
    %115 = vector.shape_cast %114 : vector<1x1x1x16xf32> to vector<1x16xf32>
    %c2_173 = arith.constant 2 : index
    %c1_174 = arith.constant 1 : index
    %c0_175 = arith.constant 0 : index
    %c0_176 = arith.constant 0 : index
    %116 = vector.load %arg7[%c2_173, %c1_174, %c0_175, %c0_176] : memref<3x3x16x16xf32, #tpu.memory_space<vmem>>, vector<1x1x16x16xf32>
    %117 = vector.shape_cast %116 : vector<1x1x16x16xf32> to vector<16x16xf32>
    %cst_177 = arith.constant dense<0.000000e+00> : vector<1x16xf32>
    %118 = tpu.matmul %115, %117, %cst_177 {dimension_numbers = #tpu.dot_dimension_numbers<[1], [0], [0], [1], [0, 0, 1, 1], [], []>} : vector<1x16xf32>, vector<16x16xf32>, vector<1x16xf32> -> vector<1x16xf32>
    %119 = arith.addf %113, %118 : vector<1x16xf32>
    %c0_178 = arith.constant 0 : index
    %c2_179 = arith.constant 2 : index
    %c2_180 = arith.constant 2 : index
    %c0_181 = arith.constant 0 : index
    %120 = vector.load %arg10[%c0_178, %c2_179, %c2_180, %c0_181] : memref<1x3x8x16xf32, #tpu.memory_space<vmem>>, vector<1x1x1x16xf32>
    %121 = vector.shape_cast %120 : vector<1x1x1x16xf32> to vector<1x16xf32>
    %c2_182 = arith.constant 2 : index
    %c2_183 = arith.constant 2 : index
    %c0_184 = arith.constant 0 : index
    %c0_185 = arith.constant 0 : index
    %122 = vector.load %arg7[%c2_182, %c2_183, %c0_184, %c0_185] : memref<3x3x16x16xf32, #tpu.memory_space<vmem>>, vector<1x1x16x16xf32>
    %123 = vector.shape_cast %122 : vector<1x1x16x16xf32> to vector<16x16xf32>
    %cst_186 = arith.constant dense<0.000000e+00> : vector<1x16xf32>
    %124 = tpu.matmul %121, %123, %cst_186 {dimension_numbers = #tpu.dot_dimension_numbers<[1], [0], [0], [1], [0, 0, 1, 1], [], []>} : vector<1x16xf32>, vector<16x16xf32>, vector<1x16xf32> -> vector<1x16xf32>
    %125 = arith.addf %119, %124 : vector<1x16xf32>
    %126 = arith.addf %125, %60 : vector<1x16xf32>
    %c0_187 = arith.constant 0 : index
    %c0_188 = arith.constant 0 : index
    %127 = vector.load %arg8[%c0_187, %c0_188] : memref<1x16xf32, #tpu.memory_space<vmem>>, vector<1x16xf32>
    %128 = arith.addf %126, %127 : vector<1x16xf32>
    %cst_189 = arith.constant 0.000000e+00 : f32
    %129 = vector.broadcast %cst_189 : f32 to vector<1x16xf32>
    %130 = arith.maximumf %128, %129 : vector<1x16xf32>
    %131 = vector.shape_cast %130 : vector<1x16xf32> to vector<1x1x1x16xf32>
    %c0_190 = arith.constant 0 : index
    %c0_191 = arith.constant 0 : index
    %c0_192 = arith.constant 0 : index
    %c0_193 = arith.constant 0 : index
    %132 = vector.load %arg9[%c0_190, %c0_191, %c0_192, %c0_193] : memref<1x1x1x16xf32, #tpu.memory_space<vmem>>, vector<1x1x1x16xf32>
    tpu.vector_store %arg9[%c0_190, %c0_191, %c0_192, %c0_193], %131 {strides = array<i32>} : memref<1x1x1x16xf32, #tpu.memory_space<vmem>>, vector<1x1x1x16xf32>,
    return
  }
  func.func @transform_0(%arg0: i32) -> (i32, i32, i32, i32) {
    %c0_i32 = arith.constant 0 : i32
    %c0_i32_0 = arith.constant 0 : i32
    %c0_i32_1 = arith.constant 0 : i32
    %c0_i32_2 = arith.constant 0 : i32
    return %arg0, %c0_i32, %c0_i32_0, %c0_i32_1 : i32, i32, i32, i32
  }
  func.func @transform_1(%arg0: i32) -> (i32, i32, i32, i32) {
    %c0_i32 = arith.constant 0 : i32
    %c0_i32_0 = arith.constant 0 : i32
    %c0_i32_1 = arith.constant 0 : i32
    %c0_i32_2 = arith.constant 0 : i32
    return %arg0, %c0_i32, %c0_i32_0, %c0_i32_1 : i32, i32, i32, i32
  }
  func.func @transform_2(%arg0: i32) -> (i32, i32, i32, i32) {
    %c0_i32 = arith.constant 0 : i32
    %c0_i32_0 = arith.constant 0 : i32
    %c0_i32_1 = arith.constant 0 : i32
    %c0_i32_2 = arith.constant 0 : i32
    return %arg0, %c0_i32, %c0_i32_0, %c0_i32_1 : i32, i32, i32, i32
  }
  func.func @transform_3(%arg0: i32) -> (i32, i32, i32, i32) {
    %c0_i32 = arith.constant 0 : i32
    %c0_i32_0 = arith.constant 0 : i32
    %c0_i32_1 = arith.constant 0 : i32
    %c0_i32_2 = arith.constant 0 : i32
    return %arg0, %c0_i32, %c0_i32_0, %c0_i32_1 : i32, i32, i32, i32
  }
  func.func @transform_4(%arg0: i32) -> (i32, i32, i32, i32) {
    %c0_i32 = arith.constant 0 : i32
    %c0_i32_0 = arith.constant 0 : i32
    %c0_i32_1 = arith.constant 0 : i32
    %c0_i32_2 = arith.constant 0 : i32
    %c0_i32_3 = arith.constant 0 : i32
    return %c0_i32, %c0_i32_0, %c0_i32_1, %c0_i32_2 : i32, i32, i32, i32
  }
  func.func @transform_5(%arg0: i32) -> (i32, i32) {
    %c0_i32 = arith.constant 0 : i32
    %c0_i32_0 = arith.constant 0 : i32
    %c0_i32_1 = arith.constant 0 : i32
    return %c0_i32, %c0_i32_0 : i32, i32
  }
  func.func @transform_6(%arg0: i32) -> (i32, i32, i32, i32) {
    %c0_i32 = arith.constant 0 : i32
    %c0_i32_0 = arith.constant 0 : i32
    %c0_i32_1 = arith.constant 0 : i32
    %c0_i32_2 = arith.constant 0 : i32
    %c0_i32_3 = arith.constant 0 : i32
    return %c0_i32, %c0_i32_0, %c0_i32_1, %c0_i32_2 : i32, i32, i32, i32
  }
  func.func @transform_7(%arg0: i32) -> (i32, i32) {
    %c0_i32 = arith.constant 0 : i32
    %c0_i32_0 = arith.constant 0 : i32
    %c0_i32_1 = arith.constant 0 : i32
    return %c0_i32, %c0_i32_0 : i32, i32
  }
  func.func @transform_8(%arg0: i32) -> (i32, i32, i32, i32) {
    %c0_i32 = arith.constant 0 : i32
    %c0_i32_0 = arith.constant 0 : i32
    %c0_i32_1 = arith.constant 0 : i32
    %c0_i32_2 = arith.constant 0 : i32
    return %arg0, %c0_i32, %c0_i32_0, %c0_i32_1 : i32, i32, i32, i32
  }
}

module attributes {stable_mosaic.version = 11 : i64} {
  func.func @_res2d_kernel(%arg0: i32, %arg1: memref<1x2x2x16xf32, #tpu.memory_space<vmem>>, %arg2: memref<1x2x2x16xf32, #tpu.memory_space<vmem>>, %arg3: memref<1x2x2x16xf32, #tpu.memory_space<vmem>>, %arg4: memref<1x2x2x16xf32, #tpu.memory_space<vmem>>, %arg5: memref<3x3x16x64xf32, #tpu.memory_space<vmem>>, %arg6: memref<1x32xf32, #tpu.memory_space<vmem>>, %arg7: memref<3x3x32x32xf32, #tpu.memory_space<vmem>>, %arg8: memref<1x32xf32, #tpu.memory_space<vmem>>, %arg9: memref<1x1x1x32xf32, #tpu.memory_space<vmem>>, %arg10: memref<1x3x8x32xf32, #tpu.memory_space<vmem>>) attributes {dimension_semantics = [#tpu.dimension_semantics<parallel>], iteration_bounds = array<i64: 2>, scalar_prefetch = 0 : i64, scratch_operands = 1 : i64, tpu.core_type = #tpu.core_type<tc>, window_params = [{transform_indices = @transform_0, window_bounds = array<i64: 1, 2, 2, 16>}, {transform_indices = @transform_1, window_bounds = array<i64: 1, 2, 2, 16>}, {transform_indices = @transform_2, window_bounds = array<i64: 1, 2, 2, 16>}, {transform_indices = @transform_3, window_bounds = array<i64: 1, 2, 2, 16>}, {pipeline_mode = #tpu.pipeline_mode<synchronous>, transform_indices = @transform_4, window_bounds = array<i64: 3, 3, 16, 64>}, {pipeline_mode = #tpu.pipeline_mode<synchronous>, transform_indices = @transform_5, window_bounds = array<i64: 1, 32>}, {pipeline_mode = #tpu.pipeline_mode<synchronous>, transform_indices = @transform_6, window_bounds = array<i64: 3, 3, 32, 32>}, {pipeline_mode = #tpu.pipeline_mode<synchronous>, transform_indices = @transform_7, window_bounds = array<i64: 1, 32>}, {transform_indices = @transform_8, window_bounds = array<i64: 1, 1, 1, 32>}]} {
    %cst = arith.constant 0.000000e+00 : f32
    %0 = vector.broadcast %cst : f32 to vector<1x64xf32>
    %c0 = arith.constant 0 : index
    %c0_0 = arith.constant 0 : index
    %c0_1 = arith.constant 0 : index
    %c0_2 = arith.constant 0 : index
    %1 = vector.load %arg1[%c0, %c0_0, %c0_1, %c0_2] : memref<1x2x2x16xf32, #tpu.memory_space<vmem>>, vector<1x1x1x16xf32>
    %2 = vector.shape_cast %1 : vector<1x1x1x16xf32> to vector<1x16xf32>
    %c0_3 = arith.constant 0 : index
    %c0_4 = arith.constant 0 : index
    %c0_5 = arith.constant 0 : index
    %c0_6 = arith.constant 0 : index
    %3 = vector.load %arg5[%c0_3, %c0_4, %c0_5, %c0_6] : memref<3x3x16x64xf32, #tpu.memory_space<vmem>>, vector<1x1x16x64xf32>
    %4 = vector.shape_cast %3 : vector<1x1x16x64xf32> to vector<16x64xf32>
    %cst_7 = arith.constant dense<0.000000e+00> : vector<1x64xf32>
    %5 = tpu.matmul %2, %4, %cst_7 {dimension_numbers = #tpu.dot_dimension_numbers<[1], [0], [0], [1], [0, 0, 1, 1], [], []>} : vector<1x16xf32>, vector<16x64xf32>, vector<1x64xf32> -> vector<1x64xf32>
    %6 = arith.addf %0, %5 : vector<1x64xf32>
    %c0_8 = arith.constant 0 : index
    %c0_9 = arith.constant 0 : index
    %c0_10 = arith.constant 0 : index
    %c0_11 = arith.constant 0 : index
    %7 = vector.load %arg2[%c0_8, %c0_9, %c0_10, %c0_11] : memref<1x2x2x16xf32, #tpu.memory_space<vmem>>, vector<1x1x1x16xf32>
    %8 = vector.shape_cast %7 : vector<1x1x1x16xf32> to vector<1x16xf32>
    %c0_12 = arith.constant 0 : index
    %c1 = arith.constant 1 : index
    %c0_13 = arith.constant 0 : index
    %c0_14 = arith.constant 0 : index
    %9 = vector.load %arg5[%c0_12, %c1, %c0_13, %c0_14] : memref<3x3x16x64xf32, #tpu.memory_space<vmem>>, vector<1x1x16x64xf32>
    %10 = vector.shape_cast %9 : vector<1x1x16x64xf32> to vector<16x64xf32>
    %cst_15 = arith.constant dense<0.000000e+00> : vector<1x64xf32>
    %11 = tpu.matmul %8, %10, %cst_15 {dimension_numbers = #tpu.dot_dimension_numbers<[1], [0], [0], [1], [0, 0, 1, 1], [], []>} : vector<1x16xf32>, vector<16x64xf32>, vector<1x64xf32> -> vector<1x64xf32>
    %12 = arith.addf %6, %11 : vector<1x64xf32>
    %c0_16 = arith.constant 0 : index
    %c0_17 = arith.constant 0 : index
    %c1_18 = arith.constant 1 : index
    %c0_19 = arith.constant 0 : index
    %13 = vector.load %arg1[%c0_16, %c0_17, %c1_18, %c0_19] : memref<1x2x2x16xf32, #tpu.memory_space<vmem>>, vector<1x1x1x16xf32>
    %14 = vector.shape_cast %13 : vector<1x1x1x16xf32> to vector<1x16xf32>
    %c0_20 = arith.constant 0 : index
    %c2 = arith.constant 2 : index
    %c0_21 = arith.constant 0 : index
    %c0_22 = arith.constant 0 : index
    %15 = vector.load %arg5[%c0_20, %c2, %c0_21, %c0_22] : memref<3x3x16x64xf32, #tpu.memory_space<vmem>>, vector<1x1x16x64xf32>
    %16 = vector.shape_cast %15 : vector<1x1x16x64xf32> to vector<16x64xf32>
    %cst_23 = arith.constant dense<0.000000e+00> : vector<1x64xf32>
    %17 = tpu.matmul %14, %16, %cst_23 {dimension_numbers = #tpu.dot_dimension_numbers<[1], [0], [0], [1], [0, 0, 1, 1], [], []>} : vector<1x16xf32>, vector<16x64xf32>, vector<1x64xf32> -> vector<1x64xf32>
    %18 = arith.addf %12, %17 : vector<1x64xf32>
    %c0_24 = arith.constant 0 : index
    %c0_25 = arith.constant 0 : index
    %c0_26 = arith.constant 0 : index
    %c0_27 = arith.constant 0 : index
    %19 = vector.load %arg3[%c0_24, %c0_25, %c0_26, %c0_27] : memref<1x2x2x16xf32, #tpu.memory_space<vmem>>, vector<1x1x1x16xf32>
    %20 = vector.shape_cast %19 : vector<1x1x1x16xf32> to vector<1x16xf32>
    %c1_28 = arith.constant 1 : index
    %c0_29 = arith.constant 0 : index
    %c0_30 = arith.constant 0 : index
    %c0_31 = arith.constant 0 : index
    %21 = vector.load %arg5[%c1_28, %c0_29, %c0_30, %c0_31] : memref<3x3x16x64xf32, #tpu.memory_space<vmem>>, vector<1x1x16x64xf32>
    %22 = vector.shape_cast %21 : vector<1x1x16x64xf32> to vector<16x64xf32>
    %cst_32 = arith.constant dense<0.000000e+00> : vector<1x64xf32>
    %23 = tpu.matmul %20, %22, %cst_32 {dimension_numbers = #tpu.dot_dimension_numbers<[1], [0], [0], [1], [0, 0, 1, 1], [], []>} : vector<1x16xf32>, vector<16x64xf32>, vector<1x64xf32> -> vector<1x64xf32>
    %24 = arith.addf %18, %23 : vector<1x64xf32>
    %c0_33 = arith.constant 0 : index
    %c0_34 = arith.constant 0 : index
    %c0_35 = arith.constant 0 : index
    %c0_36 = arith.constant 0 : index
    %25 = vector.load %arg4[%c0_33, %c0_34, %c0_35, %c0_36] : memref<1x2x2x16xf32, #tpu.memory_space<vmem>>, vector<1x1x1x16xf32>
    %26 = vector.shape_cast %25 : vector<1x1x1x16xf32> to vector<1x16xf32>
    %c1_37 = arith.constant 1 : index
    %c1_38 = arith.constant 1 : index
    %c0_39 = arith.constant 0 : index
    %c0_40 = arith.constant 0 : index
    %27 = vector.load %arg5[%c1_37, %c1_38, %c0_39, %c0_40] : memref<3x3x16x64xf32, #tpu.memory_space<vmem>>, vector<1x1x16x64xf32>
    %28 = vector.shape_cast %27 : vector<1x1x16x64xf32> to vector<16x64xf32>
    %cst_41 = arith.constant dense<0.000000e+00> : vector<1x64xf32>
    %29 = tpu.matmul %26, %28, %cst_41 {dimension_numbers = #tpu.dot_dimension_numbers<[1], [0], [0], [1], [0, 0, 1, 1], [], []>} : vector<1x16xf32>, vector<16x64xf32>, vector<1x64xf32> -> vector<1x64xf32>
    %30 = arith.addf %24, %29 : vector<1x64xf32>
    %c0_42 = arith.constant 0 : index
    %c0_43 = arith.constant 0 : index
    %c1_44 = arith.constant 1 : index
    %c0_45 = arith.constant 0 : index
    %31 = vector.load %arg3[%c0_42, %c0_43, %c1_44, %c0_45] : memref<1x2x2x16xf32, #tpu.memory_space<vmem>>, vector<1x1x1x16xf32>
    %32 = vector.shape_cast %31 : vector<1x1x1x16xf32> to vector<1x16xf32>
    %c1_46 = arith.constant 1 : index
    %c2_47 = arith.constant 2 : index
    %c0_48 = arith.constant 0 : index
    %c0_49 = arith.constant 0 : index
    %33 = vector.load %arg5[%c1_46, %c2_47, %c0_48, %c0_49] : memref<3x3x16x64xf32, #tpu.memory_space<vmem>>, vector<1x1x16x64xf32>
    %34 = vector.shape_cast %33 : vector<1x1x16x64xf32> to vector<16x64xf32>
    %cst_50 = arith.constant dense<0.000000e+00> : vector<1x64xf32>
    %35 = tpu.matmul %32, %34, %cst_50 {dimension_numbers = #tpu.dot_dimension_numbers<[1], [0], [0], [1], [0, 0, 1, 1], [], []>} : vector<1x16xf32>, vector<16x64xf32>, vector<1x64xf32> -> vector<1x64xf32>
    %36 = arith.addf %30, %35 : vector<1x64xf32>
    %c0_51 = arith.constant 0 : index
    %c1_52 = arith.constant 1 : index
    %c0_53 = arith.constant 0 : index
    %c0_54 = arith.constant 0 : index
    %37 = vector.load %arg1[%c0_51, %c1_52, %c0_53, %c0_54] : memref<1x2x2x16xf32, #tpu.memory_space<vmem>>, vector<1x1x1x16xf32>
    %38 = vector.shape_cast %37 : vector<1x1x1x16xf32> to vector<1x16xf32>
    %c2_55 = arith.constant 2 : index
    %c0_56 = arith.constant 0 : index
    %c0_57 = arith.constant 0 : index
    %c0_58 = arith.constant 0 : index
    %39 = vector.load %arg5[%c2_55, %c0_56, %c0_57, %c0_58] : memref<3x3x16x64xf32, #tpu.memory_space<vmem>>, vector<1x1x16x64xf32>
    %40 = vector.shape_cast %39 : vector<1x1x16x64xf32> to vector<16x64xf32>
    %cst_59 = arith.constant dense<0.000000e+00> : vector<1x64xf32>
    %41 = tpu.matmul %38, %40, %cst_59 {dimension_numbers = #tpu.dot_dimension_numbers<[1], [0], [0], [1], [0, 0, 1, 1], [], []>} : vector<1x16xf32>, vector<16x64xf32>, vector<1x64xf32> -> vector<1x64xf32>
    %42 = arith.addf %36, %41 : vector<1x64xf32>
    %c0_60 = arith.constant 0 : index
    %c1_61 = arith.constant 1 : index
    %c0_62 = arith.constant 0 : index
    %c0_63 = arith.constant 0 : index
    %43 = vector.load %arg2[%c0_60, %c1_61, %c0_62, %c0_63] : memref<1x2x2x16xf32, #tpu.memory_space<vmem>>, vector<1x1x1x16xf32>
    %44 = vector.shape_cast %43 : vector<1x1x1x16xf32> to vector<1x16xf32>
    %c2_64 = arith.constant 2 : index
    %c1_65 = arith.constant 1 : index
    %c0_66 = arith.constant 0 : index
    %c0_67 = arith.constant 0 : index
    %45 = vector.load %arg5[%c2_64, %c1_65, %c0_66, %c0_67] : memref<3x3x16x64xf32, #tpu.memory_space<vmem>>, vector<1x1x16x64xf32>
    %46 = vector.shape_cast %45 : vector<1x1x16x64xf32> to vector<16x64xf32>
    %cst_68 = arith.constant dense<0.000000e+00> : vector<1x64xf32>
    %47 = tpu.matmul %44, %46, %cst_68 {dimension_numbers = #tpu.dot_dimension_numbers<[1], [0], [0], [1], [0, 0, 1, 1], [], []>} : vector<1x16xf32>, vector<16x64xf32>, vector<1x64xf32> -> vector<1x64xf32>
    %48 = arith.addf %42, %47 : vector<1x64xf32>
    %c0_69 = arith.constant 0 : index
    %c1_70 = arith.constant 1 : index
    %c1_71 = arith.constant 1 : index
    %c0_72 = arith.constant 0 : index
    %49 = vector.load %arg1[%c0_69, %c1_70, %c1_71, %c0_72] : memref<1x2x2x16xf32, #tpu.memory_space<vmem>>, vector<1x1x1x16xf32>
    %50 = vector.shape_cast %49 : vector<1x1x1x16xf32> to vector<1x16xf32>
    %c2_73 = arith.constant 2 : index
    %c2_74 = arith.constant 2 : index
    %c0_75 = arith.constant 0 : index
    %c0_76 = arith.constant 0 : index
    %51 = vector.load %arg5[%c2_73, %c2_74, %c0_75, %c0_76] : memref<3x3x16x64xf32, #tpu.memory_space<vmem>>, vector<1x1x16x64xf32>
    %52 = vector.shape_cast %51 : vector<1x1x16x64xf32> to vector<16x64xf32>
    %cst_77 = arith.constant dense<0.000000e+00> : vector<1x64xf32>
    %53 = tpu.matmul %50, %52, %cst_77 {dimension_numbers = #tpu.dot_dimension_numbers<[1], [0], [0], [1], [0, 0, 1, 1], [], []>} : vector<1x16xf32>, vector<16x64xf32>, vector<1x64xf32> -> vector<1x64xf32>
    %54 = arith.addf %48, %53 : vector<1x64xf32>
    %55 = vector.extract_strided_slice %54 {offsets = [0, 0], sizes = [1, 32], strides = [1, 1]} : vector<1x64xf32> to vector<1x32xf32>
    %c0_78 = arith.constant 0 : index
    %c0_79 = arith.constant 0 : index
    %56 = vector.load %arg6[%c0_78, %c0_79] : memref<1x32xf32, #tpu.memory_space<vmem>>, vector<1x32xf32>
    %57 = arith.addf %55, %56 : vector<1x32xf32>
    %cst_80 = arith.constant 0.000000e+00 : f32
    %58 = vector.broadcast %cst_80 : f32 to vector<1x32xf32>
    %59 = arith.maximumf %57, %58 : vector<1x32xf32>
    %60 = vector.extract_strided_slice %54 {offsets = [0, 32], sizes = [1, 32], strides = [1, 1]} : vector<1x64xf32> to vector<1x32xf32>
    %cst_81 = arith.constant 0.000000e+00 : f32
    %61 = vector.broadcast %cst_81 : f32 to vector<1x1x8x32xf32>
    %c0_82 = arith.constant 0 : index
    %c0_83 = arith.constant 0 : index
    %c0_84 = arith.constant 0 : index
    %c0_85 = arith.constant 0 : index
    %62 = vector.load %arg10[%c0_82, %c0_83, %c0_84, %c0_85] : memref<1x3x8x32xf32, #tpu.memory_space<vmem>>, vector<1x1x8x32xf32>
    tpu.vector_store %arg10[%c0_82, %c0_83, %c0_84, %c0_85], %61 {strides = array<i32>} : memref<1x3x8x32xf32, #tpu.memory_space<vmem>>, vector<1x1x8x32xf32>,
    %cst_86 = arith.constant 0.000000e+00 : f32
    %63 = vector.broadcast %cst_86 : f32 to vector<1x1x8x32xf32>
    %c0_87 = arith.constant 0 : index
    %c2_88 = arith.constant 2 : index
    %c0_89 = arith.constant 0 : index
    %c0_90 = arith.constant 0 : index
    %64 = vector.load %arg10[%c0_87, %c2_88, %c0_89, %c0_90] : memref<1x3x8x32xf32, #tpu.memory_space<vmem>>, vector<1x1x8x32xf32>
    tpu.vector_store %arg10[%c0_87, %c2_88, %c0_89, %c0_90], %63 {strides = array<i32>} : memref<1x3x8x32xf32, #tpu.memory_space<vmem>>, vector<1x1x8x32xf32>,
    %cst_91 = arith.constant 0.000000e+00 : f32
    %65 = vector.broadcast %cst_91 : f32 to vector<1x3x1x32xf32>
    %c0_92 = arith.constant 0 : index
    %c0_93 = arith.constant 0 : index
    %c0_94 = arith.constant 0 : index
    %c0_95 = arith.constant 0 : index
    %66 = vector.load %arg10[%c0_92, %c0_93, %c0_94, %c0_95] : memref<1x3x8x32xf32, #tpu.memory_space<vmem>>, vector<1x3x1x32xf32>
    tpu.vector_store %arg10[%c0_92, %c0_93, %c0_94, %c0_95], %65 {strides = array<i32>} : memref<1x3x8x32xf32, #tpu.memory_space<vmem>>, vector<1x3x1x32xf32>,
    %cst_96 = arith.constant 0.000000e+00 : f32
    %67 = vector.broadcast %cst_96 : f32 to vector<1x3x1x32xf32>
    %c0_97 = arith.constant 0 : index
    %c0_98 = arith.constant 0 : index
    %c2_99 = arith.constant 2 : index
    %c0_100 = arith.constant 0 : index
    %68 = vector.load %arg10[%c0_97, %c0_98, %c2_99, %c0_100] : memref<1x3x8x32xf32, #tpu.memory_space<vmem>>, vector<1x3x1x32xf32>
    tpu.vector_store %arg10[%c0_97, %c0_98, %c2_99, %c0_100], %67 {strides = array<i32>} : memref<1x3x8x32xf32, #tpu.memory_space<vmem>>, vector<1x3x1x32xf32>,
    %69 = vector.shape_cast %59 : vector<1x32xf32> to vector<1x1x1x32xf32>
    %c0_101 = arith.constant 0 : index
    %c1_102 = arith.constant 1 : index
    %c1_103 = arith.constant 1 : index
    %c0_104 = arith.constant 0 : index
    %70 = vector.load %arg10[%c0_101, %c1_102, %c1_103, %c0_104] : memref<1x3x8x32xf32, #tpu.memory_space<vmem>>, vector<1x1x1x32xf32>
    tpu.vector_store %arg10[%c0_101, %c1_102, %c1_103, %c0_104], %69 {strides = array<i32>} : memref<1x3x8x32xf32, #tpu.memory_space<vmem>>, vector<1x1x1x32xf32>,
    %cst_105 = arith.constant 0.000000e+00 : f32
    %71 = vector.broadcast %cst_105 : f32 to vector<1x32xf32>
    %c0_106 = arith.constant 0 : index
    %c0_107 = arith.constant 0 : index
    %c0_108 = arith.constant 0 : index
    %c0_109 = arith.constant 0 : index
    %72 = vector.load %arg10[%c0_106, %c0_107, %c0_108, %c0_109] : memref<1x3x8x32xf32, #tpu.memory_space<vmem>>, vector<1x1x1x32xf32>
    %73 = vector.shape_cast %72 : vector<1x1x1x32xf32> to vector<1x32xf32>
    %c0_110 = arith.constant 0 : index
    %c0_111 = arith.constant 0 : index
    %c0_112 = arith.constant 0 : index
    %c0_113 = arith.constant 0 : index
    %74 = vector.load %arg7[%c0_110, %c0_111, %c0_112, %c0_113] : memref<3x3x32x32xf32, #tpu.memory_space<vmem>>, vector<1x1x32x32xf32>
    %75 = vector.shape_cast %74 : vector<1x1x32x32xf32> to vector<32x32xf32>
    %cst_114 = arith.constant dense<0.000000e+00> : vector<1x32xf32>
    %76 = tpu.matmul %73, %75, %cst_114 {dimension_numbers = #tpu.dot_dimension_numbers<[1], [0], [0], [1], [0, 0, 1, 1], [], []>} : vector<1x32xf32>, vector<32x32xf32>, vector<1x32xf32> -> vector<1x32xf32>
    %77 = arith.addf %71, %76 : vector<1x32xf32>
    %c0_115 = arith.constant 0 : index
    %c0_116 = arith.constant 0 : index
    %c1_117 = arith.constant 1 : index
    %c0_118 = arith.constant 0 : index
    %78 = vector.load %arg10[%c0_115, %c0_116, %c1_117, %c0_118] : memref<1x3x8x32xf32, #tpu.memory_space<vmem>>, vector<1x1x1x32xf32>
    %79 = vector.shape_cast %78 : vector<1x1x1x32xf32> to vector<1x32xf32>
    %c0_119 = arith.constant 0 : index
    %c1_120 = arith.constant 1 : index
    %c0_121 = arith.constant 0 : index
    %c0_122 = arith.constant 0 : index
    %80 = vector.load %arg7[%c0_119, %c1_120, %c0_121, %c0_122] : memref<3x3x32x32xf32, #tpu.memory_space<vmem>>, vector<1x1x32x32xf32>
    %81 = vector.shape_cast %80 : vector<1x1x32x32xf32> to vector<32x32xf32>
    %cst_123 = arith.constant dense<0.000000e+00> : vector<1x32xf32>
    %82 = tpu.matmul %79, %81, %cst_123 {dimension_numbers = #tpu.dot_dimension_numbers<[1], [0], [0], [1], [0, 0, 1, 1], [], []>} : vector<1x32xf32>, vector<32x32xf32>, vector<1x32xf32> -> vector<1x32xf32>
    %83 = arith.addf %77, %82 : vector<1x32xf32>
    %c0_124 = arith.constant 0 : index
    %c0_125 = arith.constant 0 : index
    %c2_126 = arith.constant 2 : index
    %c0_127 = arith.constant 0 : index
    %84 = vector.load %arg10[%c0_124, %c0_125, %c2_126, %c0_127] : memref<1x3x8x32xf32, #tpu.memory_space<vmem>>, vector<1x1x1x32xf32>
    %85 = vector.shape_cast %84 : vector<1x1x1x32xf32> to vector<1x32xf32>
    %c0_128 = arith.constant 0 : index
    %c2_129 = arith.constant 2 : index
    %c0_130 = arith.constant 0 : index
    %c0_131 = arith.constant 0 : index
    %86 = vector.load %arg7[%c0_128, %c2_129, %c0_130, %c0_131] : memref<3x3x32x32xf32, #tpu.memory_space<vmem>>, vector<1x1x32x32xf32>
    %87 = vector.shape_cast %86 : vector<1x1x32x32xf32> to vector<32x32xf32>
    %cst_132 = arith.constant dense<0.000000e+00> : vector<1x32xf32>
    %88 = tpu.matmul %85, %87, %cst_132 {dimension_numbers = #tpu.dot_dimension_numbers<[1], [0], [0], [1], [0, 0, 1, 1], [], []>} : vector<1x32xf32>, vector<32x32xf32>, vector<1x32xf32> -> vector<1x32xf32>
    %89 = arith.addf %83, %88 : vector<1x32xf32>
    %c0_133 = arith.constant 0 : index
    %c1_134 = arith.constant 1 : index
    %c0_135 = arith.constant 0 : index
    %c0_136 = arith.constant 0 : index
    %90 = vector.load %arg10[%c0_133, %c1_134, %c0_135, %c0_136] : memref<1x3x8x32xf32, #tpu.memory_space<vmem>>, vector<1x1x1x32xf32>
    %91 = vector.shape_cast %90 : vector<1x1x1x32xf32> to vector<1x32xf32>
    %c1_137 = arith.constant 1 : index
    %c0_138 = arith.constant 0 : index
    %c0_139 = arith.constant 0 : index
    %c0_140 = arith.constant 0 : index
    %92 = vector.load %arg7[%c1_137, %c0_138, %c0_139, %c0_140] : memref<3x3x32x32xf32, #tpu.memory_space<vmem>>, vector<1x1x32x32xf32>
    %93 = vector.shape_cast %92 : vector<1x1x32x32xf32> to vector<32x32xf32>
    %cst_141 = arith.constant dense<0.000000e+00> : vector<1x32xf32>
    %94 = tpu.matmul %91, %93, %cst_141 {dimension_numbers = #tpu.dot_dimension_numbers<[1], [0], [0], [1], [0, 0, 1, 1], [], []>} : vector<1x32xf32>, vector<32x32xf32>, vector<1x32xf32> -> vector<1x32xf32>
    %95 = arith.addf %89, %94 : vector<1x32xf32>
    %c0_142 = arith.constant 0 : index
    %c1_143 = arith.constant 1 : index
    %c1_144 = arith.constant 1 : index
    %c0_145 = arith.constant 0 : index
    %96 = vector.load %arg10[%c0_142, %c1_143, %c1_144, %c0_145] : memref<1x3x8x32xf32, #tpu.memory_space<vmem>>, vector<1x1x1x32xf32>
    %97 = vector.shape_cast %96 : vector<1x1x1x32xf32> to vector<1x32xf32>
    %c1_146 = arith.constant 1 : index
    %c1_147 = arith.constant 1 : index
    %c0_148 = arith.constant 0 : index
    %c0_149 = arith.constant 0 : index
    %98 = vector.load %arg7[%c1_146, %c1_147, %c0_148, %c0_149] : memref<3x3x32x32xf32, #tpu.memory_space<vmem>>, vector<1x1x32x32xf32>
    %99 = vector.shape_cast %98 : vector<1x1x32x32xf32> to vector<32x32xf32>
    %cst_150 = arith.constant dense<0.000000e+00> : vector<1x32xf32>
    %100 = tpu.matmul %97, %99, %cst_150 {dimension_numbers = #tpu.dot_dimension_numbers<[1], [0], [0], [1], [0, 0, 1, 1], [], []>} : vector<1x32xf32>, vector<32x32xf32>, vector<1x32xf32> -> vector<1x32xf32>
    %101 = arith.addf %95, %100 : vector<1x32xf32>
    %c0_151 = arith.constant 0 : index
    %c1_152 = arith.constant 1 : index
    %c2_153 = arith.constant 2 : index
    %c0_154 = arith.constant 0 : index
    %102 = vector.load %arg10[%c0_151, %c1_152, %c2_153, %c0_154] : memref<1x3x8x32xf32, #tpu.memory_space<vmem>>, vector<1x1x1x32xf32>
    %103 = vector.shape_cast %102 : vector<1x1x1x32xf32> to vector<1x32xf32>
    %c1_155 = arith.constant 1 : index
    %c2_156 = arith.constant 2 : index
    %c0_157 = arith.constant 0 : index
    %c0_158 = arith.constant 0 : index
    %104 = vector.load %arg7[%c1_155, %c2_156, %c0_157, %c0_158] : memref<3x3x32x32xf32, #tpu.memory_space<vmem>>, vector<1x1x32x32xf32>
    %105 = vector.shape_cast %104 : vector<1x1x32x32xf32> to vector<32x32xf32>
    %cst_159 = arith.constant dense<0.000000e+00> : vector<1x32xf32>
    %106 = tpu.matmul %103, %105, %cst_159 {dimension_numbers = #tpu.dot_dimension_numbers<[1], [0], [0], [1], [0, 0, 1, 1], [], []>} : vector<1x32xf32>, vector<32x32xf32>, vector<1x32xf32> -> vector<1x32xf32>
    %107 = arith.addf %101, %106 : vector<1x32xf32>
    %c0_160 = arith.constant 0 : index
    %c2_161 = arith.constant 2 : index
    %c0_162 = arith.constant 0 : index
    %c0_163 = arith.constant 0 : index
    %108 = vector.load %arg10[%c0_160, %c2_161, %c0_162, %c0_163] : memref<1x3x8x32xf32, #tpu.memory_space<vmem>>, vector<1x1x1x32xf32>
    %109 = vector.shape_cast %108 : vector<1x1x1x32xf32> to vector<1x32xf32>
    %c2_164 = arith.constant 2 : index
    %c0_165 = arith.constant 0 : index
    %c0_166 = arith.constant 0 : index
    %c0_167 = arith.constant 0 : index
    %110 = vector.load %arg7[%c2_164, %c0_165, %c0_166, %c0_167] : memref<3x3x32x32xf32, #tpu.memory_space<vmem>>, vector<1x1x32x32xf32>
    %111 = vector.shape_cast %110 : vector<1x1x32x32xf32> to vector<32x32xf32>
    %cst_168 = arith.constant dense<0.000000e+00> : vector<1x32xf32>
    %112 = tpu.matmul %109, %111, %cst_168 {dimension_numbers = #tpu.dot_dimension_numbers<[1], [0], [0], [1], [0, 0, 1, 1], [], []>} : vector<1x32xf32>, vector<32x32xf32>, vector<1x32xf32> -> vector<1x32xf32>
    %113 = arith.addf %107, %112 : vector<1x32xf32>
    %c0_169 = arith.constant 0 : index
    %c2_170 = arith.constant 2 : index
    %c1_171 = arith.constant 1 : index
    %c0_172 = arith.constant 0 : index
    %114 = vector.load %arg10[%c0_169, %c2_170, %c1_171, %c0_172] : memref<1x3x8x32xf32, #tpu.memory_space<vmem>>, vector<1x1x1x32xf32>
    %115 = vector.shape_cast %114 : vector<1x1x1x32xf32> to vector<1x32xf32>
    %c2_173 = arith.constant 2 : index
    %c1_174 = arith.constant 1 : index
    %c0_175 = arith.constant 0 : index
    %c0_176 = arith.constant 0 : index
    %116 = vector.load %arg7[%c2_173, %c1_174, %c0_175, %c0_176] : memref<3x3x32x32xf32, #tpu.memory_space<vmem>>, vector<1x1x32x32xf32>
    %117 = vector.shape_cast %116 : vector<1x1x32x32xf32> to vector<32x32xf32>
    %cst_177 = arith.constant dense<0.000000e+00> : vector<1x32xf32>
    %118 = tpu.matmul %115, %117, %cst_177 {dimension_numbers = #tpu.dot_dimension_numbers<[1], [0], [0], [1], [0, 0, 1, 1], [], []>} : vector<1x32xf32>, vector<32x32xf32>, vector<1x32xf32> -> vector<1x32xf32>
    %119 = arith.addf %113, %118 : vector<1x32xf32>
    %c0_178 = arith.constant 0 : index
    %c2_179 = arith.constant 2 : index
    %c2_180 = arith.constant 2 : index
    %c0_181 = arith.constant 0 : index
    %120 = vector.load %arg10[%c0_178, %c2_179, %c2_180, %c0_181] : memref<1x3x8x32xf32, #tpu.memory_space<vmem>>, vector<1x1x1x32xf32>
    %121 = vector.shape_cast %120 : vector<1x1x1x32xf32> to vector<1x32xf32>
    %c2_182 = arith.constant 2 : index
    %c2_183 = arith.constant 2 : index
    %c0_184 = arith.constant 0 : index
    %c0_185 = arith.constant 0 : index
    %122 = vector.load %arg7[%c2_182, %c2_183, %c0_184, %c0_185] : memref<3x3x32x32xf32, #tpu.memory_space<vmem>>, vector<1x1x32x32xf32>
    %123 = vector.shape_cast %122 : vector<1x1x32x32xf32> to vector<32x32xf32>
    %cst_186 = arith.constant dense<0.000000e+00> : vector<1x32xf32>
    %124 = tpu.matmul %121, %123, %cst_186 {dimension_numbers = #tpu.dot_dimension_numbers<[1], [0], [0], [1], [0, 0, 1, 1], [], []>} : vector<1x32xf32>, vector<32x32xf32>, vector<1x32xf32> -> vector<1x32xf32>
    %125 = arith.addf %119, %124 : vector<1x32xf32>
    %126 = arith.addf %125, %60 : vector<1x32xf32>
    %c0_187 = arith.constant 0 : index
    %c0_188 = arith.constant 0 : index
    %127 = vector.load %arg8[%c0_187, %c0_188] : memref<1x32xf32, #tpu.memory_space<vmem>>, vector<1x32xf32>
    %128 = arith.addf %126, %127 : vector<1x32xf32>
    %cst_189 = arith.constant 0.000000e+00 : f32
    %129 = vector.broadcast %cst_189 : f32 to vector<1x32xf32>
    %130 = arith.maximumf %128, %129 : vector<1x32xf32>
    %131 = vector.shape_cast %130 : vector<1x32xf32> to vector<1x1x1x32xf32>
    %c0_190 = arith.constant 0 : index
    %c0_191 = arith.constant 0 : index
    %c0_192 = arith.constant 0 : index
    %c0_193 = arith.constant 0 : index
    %132 = vector.load %arg9[%c0_190, %c0_191, %c0_192, %c0_193] : memref<1x1x1x32xf32, #tpu.memory_space<vmem>>, vector<1x1x1x32xf32>
    tpu.vector_store %arg9[%c0_190, %c0_191, %c0_192, %c0_193], %131 {strides = array<i32>} : memref<1x1x1x32xf32, #tpu.memory_space<vmem>>, vector<1x1x1x32xf32>,
    return
  }
  func.func @transform_0(%arg0: i32) -> (i32, i32, i32, i32) {
    %c0_i32 = arith.constant 0 : i32
    %c0_i32_0 = arith.constant 0 : i32
    %c0_i32_1 = arith.constant 0 : i32
    %c0_i32_2 = arith.constant 0 : i32
    return %arg0, %c0_i32, %c0_i32_0, %c0_i32_1 : i32, i32, i32, i32
  }
  func.func @transform_1(%arg0: i32) -> (i32, i32, i32, i32) {
    %c0_i32 = arith.constant 0 : i32
    %c0_i32_0 = arith.constant 0 : i32
    %c0_i32_1 = arith.constant 0 : i32
    %c0_i32_2 = arith.constant 0 : i32
    return %arg0, %c0_i32, %c0_i32_0, %c0_i32_1 : i32, i32, i32, i32
  }
  func.func @transform_2(%arg0: i32) -> (i32, i32, i32, i32) {
    %c0_i32 = arith.constant 0 : i32
    %c0_i32_0 = arith.constant 0 : i32
    %c0_i32_1 = arith.constant 0 : i32
    %c0_i32_2 = arith.constant 0 : i32
    return %arg0, %c0_i32, %c0_i32_0, %c0_i32_1 : i32, i32, i32, i32
  }
  func.func @transform_3(%arg0: i32) -> (i32, i32, i32, i32) {
    %c0_i32 = arith.constant 0 : i32
    %c0_i32_0 = arith.constant 0 : i32
    %c0_i32_1 = arith.constant 0 : i32
    %c0_i32_2 = arith.constant 0 : i32
    return %arg0, %c0_i32, %c0_i32_0, %c0_i32_1 : i32, i32, i32, i32
  }
  func.func @transform_4(%arg0: i32) -> (i32, i32, i32, i32) {
    %c0_i32 = arith.constant 0 : i32
    %c0_i32_0 = arith.constant 0 : i32
    %c0_i32_1 = arith.constant 0 : i32
    %c0_i32_2 = arith.constant 0 : i32
    %c0_i32_3 = arith.constant 0 : i32
    return %c0_i32, %c0_i32_0, %c0_i32_1, %c0_i32_2 : i32, i32, i32, i32
  }
  func.func @transform_5(%arg0: i32) -> (i32, i32) {
    %c0_i32 = arith.constant 0 : i32
    %c0_i32_0 = arith.constant 0 : i32
    %c0_i32_1 = arith.constant 0 : i32
    return %c0_i32, %c0_i32_0 : i32, i32
  }
  func.func @transform_6(%arg0: i32) -> (i32, i32, i32, i32) {
    %c0_i32 = arith.constant 0 : i32
    %c0_i32_0 = arith.constant 0 : i32
    %c0_i32_1 = arith.constant 0 : i32
    %c0_i32_2 = arith.constant 0 : i32
    %c0_i32_3 = arith.constant 0 : i32
    return %c0_i32, %c0_i32_0, %c0_i32_1, %c0_i32_2 : i32, i32, i32, i32
  }
  func.func @transform_7(%arg0: i32) -> (i32, i32) {
    %c0_i32 = arith.constant 0 : i32
    %c0_i32_0 = arith.constant 0 : i32
    %c0_i32_1 = arith.constant 0 : i32
    return %c0_i32, %c0_i32_0 : i32, i32
  }
  func.func @transform_8(%arg0: i32) -> (i32, i32, i32, i32) {
    %c0_i32 = arith.constant 0 : i32
    %c0_i32_0 = arith.constant 0 : i32
    %c0_i32_1 = arith.constant 0 : i32
    %c0_i32_2 = arith.constant 0 : i32
    return %arg0, %c0_i32, %c0_i32_0, %c0_i32_1 : i32, i32, i32, i32
  }
}

module attributes {stable_mosaic.version = 11 : i64} {
  func.func @_head_kernel(%arg0: memref<2x1x32xf32, #tpu.memory_space<vmem>>, %arg1: memref<32x32xf32, #tpu.memory_space<vmem>>, %arg2: memref<1x32xf32, #tpu.memory_space<vmem>>, %arg3: memref<2x32xf32, #tpu.memory_space<vmem>>) attributes {dimension_semantics = [], scalar_prefetch = 0 : i64, scratch_operands = 0 : i64, tpu.core_type = #tpu.core_type<tc>} {
    %c0 = arith.constant 0 : index
    %c0_0 = arith.constant 0 : index
    %c0_1 = arith.constant 0 : index
    %0 = vector.load %arg0[%c0, %c0_0, %c0_1] : memref<2x1x32xf32, #tpu.memory_space<vmem>>, vector<2x1x32xf32>
    %cst = arith.constant dense<0xFF800000> : vector<2x32xf32>
    %1 = vector.multi_reduction <maximumf>, %0, %cst [1] : vector<2x1x32xf32> to vector<2x32xf32>
    %c0_2 = arith.constant 0 : index
    %c0_3 = arith.constant 0 : index
    %2 = vector.load %arg1[%c0_2, %c0_3] : memref<32x32xf32, #tpu.memory_space<vmem>>, vector<32x32xf32>
    %cst_4 = arith.constant dense<0.000000e+00> : vector<2x32xf32>
    %3 = tpu.matmul %1, %2, %cst_4 {dimension_numbers = #tpu.dot_dimension_numbers<[1], [0], [0], [1], [0, 0, 1, 1], [], []>} : vector<2x32xf32>, vector<32x32xf32>, vector<2x32xf32> -> vector<2x32xf32>
    %c0_5 = arith.constant 0 : index
    %c0_6 = arith.constant 0 : index
    %4 = vector.load %arg2[%c0_5, %c0_6] : memref<1x32xf32, #tpu.memory_space<vmem>>, vector<1x32xf32>
    %5 = vector.broadcast %4 : vector<1x32xf32> to vector<2x32xf32>
    %6 = arith.addf %3, %5 : vector<2x32xf32>
    %cst_7 = arith.constant 0.000000e+00 : f32
    %7 = vector.broadcast %cst_7 : f32 to vector<2x32xf32>
    %8 = arith.maximumf %6, %7 : vector<2x32xf32>
    %c0_8 = arith.constant 0 : index
    %c0_9 = arith.constant 0 : index
    %9 = vector.load %arg3[%c0_8, %c0_9] : memref<2x32xf32, #tpu.memory_space<vmem>>, vector<2x32xf32>
    tpu.vector_store %arg3[%c0_8, %c0_9], %8 {strides = array<i32>} : memref<2x32xf32, #tpu.memory_space<vmem>>, vector<2x32xf32>,
    return
  }
}

</mosaic_0001>

<bundles_post_ra>
// kernel: shortchunk_forward.8
= control target key start
LH: loop header
LB: loop body
LE: loop exit
PB: predicated region body
PF: predicated region fallthrough
CT: control target
= control target key end

     0   :  { %s2320_s18 = smov 0   ;;  %s2565_s0 = inlined_call_operand.vmem [shape: f32[2,8,8,9], index: 0, kind: input, shape index: {}]   ;;  %s2566_s1 = inlined_call_operand.vmem [shape: f32[9,16], index: 1, kind: input, shape index: {}]   ;;  %s2567_s2 = inlined_call_operand.vmem [shape: f32[1,8], index: 2, kind: input, shape index: {}]   ;;  %s2568_s3 = inlined_call_operand.vmem [shape: f32[3,3,8,8], index: 3, kind: input, shape index: {}]   ;;  %s2569_s4 = inlined_call_operand.vmem [shape: f32[1,8], index: 4, kind: input, shape index: {}]   ;;  %s2570_s5 = inlined_call_operand.vmem [shape: f32[2,8,8,8], index: 5, kind: output, shape index: {}]  }
   0x1 LB: > { %s1861_s19 = sadd.s32 4294967295, %s2285_s18   ;;  %p1865_p0 = scmp.ge.s32.totalorder %s2285_s18, 1  ;;  %s2285_s18 = sphi %s2320_s18, %s15_s18  }
   0x2   : > { %p187_p1 = scmp.lt.s32.totalorder %s2285_s18, 3 }
   0x4   : > { %p188_p2 = pnand %p1865_p0, %p187_p1 }
   0x5   : > { %v233_v0 = vld [vmem:[%s2566_s1] sm:$0xff] (!%p188_p2)  ;;  %v234_v1 = vld [vmem:[%s2566_s1 + $0x8] sm:$0x1] (!%p188_p2)  ;;  %vm260_vm0 = vcmask (!%p188_p2), 1040384   ;;  %p215_p3 = scmp.lt.s32.totalorder (!%p188_p2), %s1861_s19, 1  ;;  %vm2287_vm1 = vmmov (!%p188_p2), 1  }
   0x6   : > { %191 = sbr.rel (%p188_p2) target bundleno = 543 (0x21f), region = 40  ;;  %v2198_v2 = vpack.c.bf16 (!%p188_p2), %v234_v1, %v233_v0  ;;  %vm2199_vm2 = vmpackc.low (!%p188_p2), %vm260_vm0, %vm2287_vm1  ;;  %vm235_vm3 = vcmask (!%p188_p2), 72704   ;;  %vm392_vm4 = vcmask (!%p188_p2), 64512   ;;  %v2288_v11 = vmov (!%p188_p2), 0.0   ;;  %v1880_v12 = vld [vmem:[%s2568_s3 + $0x8] sm:$0xff] (!%p188_p2)  ;;  %v1915_v13 = vld [vmem:[%s2568_s3 + $0x20] sm:$0xff] (!%p188_p2) }
   0x7   : > { %393 = vst.msk [vmem:[#allocation2] sm:$0xff] (!%p188_p2), %vm392_vm4, %v2288_v11  ;;  %394 = vst.msk [vmem:[#allocation2 + $0x8] sm:$0xff] (!%p188_p2), %vm392_vm4, %v2288_v11  ;;  %vm398_vm5 = vcmask (!%p188_p2), 57344   ;;  %2128 = vmatprep.subr.mxu1 (!%p188_p2), %v1915_v13  ;;  %v1924_v15 = vld [vmem:[%s2568_s3 + $0x28] sm:$0xff] (!%p188_p2)  ;;  %v436_v16 = vld [vmem:[%s2568_s3] sm:$0xff] (!%p188_p2)  ;;  %s2289_s13 = smov (!%p188_p2), 120  }
   0x8   : > { %2200 = vmatprep.subr.msk.bf16.mxu0 (!%p188_p2), %vm2199_vm2, %v2198_v2  ;;  %396 = vst.msk [vmem:[#allocation2 + $0x90] sm:$0xff] (!%p188_p2), %vm392_vm4, %v2288_v11  ;;  %397 = vst.msk [vmem:[#allocation2 + $0x98] sm:$0xff] (!%p188_p2), %vm392_vm4, %v2288_v11  ;;  %2129 = vmatpush3.msra.mxu1 (!%p188_p2), %v1915_v13  ;;  %v1879_v17 = vld [vmem:[%s2567_s2] ss:$0 sm:$0xff] (!%p188_p2)  ;;  %v1933_v44 = vld [vmem:[%s2568_s3 + $0x30] sm:$0xff] (!%p188_p2) }
   0x9   : > { %2203 = vmatpush3.bf16.msk.msra.mxu0 (!%p188_p2), %vm2199_vm2, %v2198_v2  ;;  %410 = vst.msk [vmem:[#allocation2 + $0x19] sm:$0x1] (!%p188_p2), %vm398_vm5, %v2288_v11  ;;  %399 = vst.msk [vmem:[#allocation2] sm:$0x1] (!%p188_p2), %vm398_vm5, %v2288_v11  ;;  %2142 = vmatprep.subr.mxu1 (!%p188_p2), %v1924_v15  ;;  %v1897_v46 = vld [vmem:[%s2568_s3 + $0x10] sm:$0xff] (!%p188_p2)  ;;  %v1906_v55 = vld [vmem:[%s2568_s3 + $0x18] sm:$0xff] (!%p188_p2) }
   0xa   : > { %400 = vst.msk [vmem:[#allocation2 + $0x10] sm:$0x1] (!%p188_p2), %vm398_vm5, %v2288_v11  ;;  %401 = vst.msk [vmem:[#allocation2 + $0x20] sm:$0x1] (!%p188_p2), %vm398_vm5, %v2288_v11  ;;  %2072 = vmatprep.subr.mxu0 (!%p188_p2), %v1880_v12  ;;  %v1942_v58 = vld [vmem:[%s2568_s3 + $0x38] sm:$0xff] (!%p188_p2) }
   0xb   : > { %402 = vst.msk [vmem:[#allocation2 + $0x30] sm:$0x1] (!%p188_p2), %vm398_vm5, %v2288_v11  ;;  %403 = vst.msk [vmem:[#allocation2 + $0x40] sm:$0x1] (!%p188_p2), %vm398_vm5, %v2288_v11 }
   0xc   : > { %404 = vst.msk [vmem:[#allocation2 + $0x50] sm:$0x1] (!%p188_p2), %vm398_vm5, %v2288_v11  ;;  %405 = vst.msk [vmem:[#allocation2 + $0x60] sm:$0x1] (!%p188_p2), %vm398_vm5, %v2288_v11 }
   0xd   : > { %s2572_s19 = smov (!%p215_p3, %s1861_s19), 1  ;;  %406 = vst.msk [vmem:[#allocation2 + $0x70] sm:$0x1] %vm398_vm5, %v2288_v11  ;;  %407 = vst.msk [vmem:[#allocation2 + $0x80] sm:$0x1] %vm398_vm5, %v2288_v11 }
   0xe   : > { %s1963_s24 = sshll.u32 %s2572_s19, 6  ;;  %408 = vst.msk [vmem:[#allocation2 + $0x90] sm:$0x1] %vm398_vm5, %v2288_v11  ;;  %409 = vst.msk [vmem:[#allocation2 + $0x9] sm:$0x1] %vm398_vm5, %v2288_v11  ;;  %v437_v14 = vld [vmem:[#allocation2 + $0x1] sm:$0xff] }
   0xf   : > { %s219_s27 = scalar_lea.vmem %s2565_s0, %s1963_s24  ;;  %411 = vst.msk [vmem:[#allocation2 + $0x29] sm:$0x1] %vm398_vm5, %v2288_v11  ;;  %412 = vst.msk [vmem:[#allocation2 + $0x39] sm:$0x1] %vm398_vm5, %v2288_v11  ;;  %s2544_s6 = scalar_lea.vmem %s2570_s5, %s1963_s24 }
  0x10   : > { %v225_v3 = vld [vmem:[%s219_s27] sm:$0xff]  ;;  %v226_v4 = vld [vmem:[%s219_s27 + $0x8] sm:$0xff]  ;;  %v227_v5 = vld [vmem:[%s219_s27 + $0x10] sm:$0xff]  ;;  %413 = vst.msk [vmem:[#allocation2 + $0x49] sm:$0x1] %vm398_vm5, %v2288_v11 }
  0x11   : > { %2060 = vmatprep.mubr.msk.f32.mxu0 %vm235_vm3, %v225_v3  ;;  %v228_v6 = vld [vmem:[%s219_s27 + $0x18] sm:$0xff]  ;;  %v229_v7 = vld [vmem:[%s219_s27 + $0x20] sm:$0xff]  ;;  %v230_v8 = vld [vmem:[%s219_s27 + $0x28] sm:$0xff]  ;;  %414 = vst.msk [vmem:[#allocation2 + $0x59] sm:$0x1] %vm398_vm5, %v2288_v11 }
  0x12   : > { %2061 = vmatmul.mubr.msk.f32.vlgmr.msra.gmra.mrb[0].mxu0 %vm235_vm3, %v226_v4  ;;  %v231_v9 = vld [vmem:[%s219_s27 + $0x30] sm:$0xff]  ;;  %v232_v10 = vld [vmem:[%s219_s27 + $0x38] sm:$0xff]  ;;  %415 = vst.msk [vmem:[#allocation2 + $0x69] sm:$0x1] %vm398_vm5, %v2288_v11  ;;  %416 = vst.msk [vmem:[#allocation2 + $0x79] sm:$0x1] %vm398_vm5, %v2288_v11 }
  0x13   : > { %2063 = vmatprep.mubr.msk.f32.mxu0 %vm235_vm3, %v227_v5  ;;  %417 = vst.msk [vmem:[#allocation2 + $0x89] sm:$0x1] %vm398_vm5, %v2288_v11  ;;  %418 = vst.msk [vmem:[#allocation2 + $0x99] sm:$0x1] %vm398_vm5, %v2288_v11  ;;  %2073 = vmatpush3.msra.mxu0 %v1880_v12  ;;  %v428_v50 = vld [vmem:[#allocation2] sm:$0xff] }
  0x14   : > { %2086 = vmatprep.subr.mxu0 %v436_v16 }
  0x15   : > { %v705_v4 = vld [vmem:[#allocation2 + $0x2] sm:$0xff] }
  0x16   : > { %2064 = vmatmul.mubr.msk.f32.gmra.mrb[2].mxu0 %vm235_vm3, %v228_v6 }
  0x17   : > { %2066 = vmatprep.mubr.msk.f32.mxu0 %vm235_vm3, %v229_v7  ;;  %v1951_v7 = vld [vmem:[%s2568_s3 + $0x40] sm:$0xff] }
  0x1a   : > { %2067 = vmatmul.mubr.msk.f32.gmra.mrb[4].mxu0 %vm235_vm3, %v230_v8  ;;  %v1595_v11 = vld [vmem:[#allocation2 + $0x92] sm:$0xff] }
  0x1b   : > { %2069 = vmatprep.mubr.msk.f32.mxu0 %vm235_vm3, %v231_v9  ;;  %v1301_v9 = vld [vmem:[#allocation2 + $0x90] sm:$0xff] }
  0x1e   : > { %2070 = vmatmul.mubr.msk.f32.gmra.mrb[6].mxu0 %vm235_vm3, %v232_v10  ;;  %v1448_v10 = vld [vmem:[#allocation2 + $0x91] sm:$0xff] }
  0x1f   : > { %2074 = vmatprep.mubr.msk.f32.mxu0 %vm392_vm4, %v437_v14 }
  0xe5   : > { %v2062_v18 = vpop.f32.mrb[0].mxu0 }
  0xe6   : > { %v377_v19 = vadd.f32 %v2062_v18, %v1879_v17  ;;  %1745 = vrot.lane.b32.xlu0 %v2062_v18, %s2289_s13  ;;  %v330_v20 = vpop.f32.mrb[1].mxu0 }
  0xe7   : > { %v376_v21 = vadd.f32 %v1879_v17, %v330_v20 }
  0xe8   : > { %v385_v22 = vmax.f32 %v377_v19, 0.0 }
  0xe9   : > { %v384_v23 = vmax.f32 %v376_v21, 0.0  ;;  %v2065_v24 = vpop.f32.mrb[2].mxu0 }
  0xea   : > { %421 = vst.msk [vmem:[#allocation2 + $0x21] sm:$0xff] %vm392_vm4, %v385_v22  ;;  %v379_v25 = vadd.f32 %v2065_v24, %v1879_v17  ;;  %1743 = vrot.lane.b32.xlu0 %v330_v20, %s2289_s13  ;;  %1749 = vrot.lane.b32.xlu1 %v2065_v24, %s2289_s13  ;;  %v340_v26 = vpop.f32.mrb[3].mxu0 }
  0xeb   : > { %420 = vst.msk [vmem:[#allocation2 + $0x11] sm:$0xff] %vm392_vm4, %v384_v23  ;;  %v378_v27 = vadd.f32 %v1879_v17, %v340_v26 }
  0xec   : > { %v387_v28 = vmax.f32 %v379_v25, 0.0 }
  0xed   : > { %v386_v29 = vmax.f32 %v378_v27, 0.0  ;;  %v2068_v30 = vpop.f32.mrb[4].mxu0 }
  0xee   : > { %423 = vst.msk [vmem:[#allocation2 + $0x41] sm:$0xff] %vm392_vm4, %v387_v28  ;;  %v381_v31 = vadd.f32 %v2068_v30, %v1879_v17  ;;  %1747 = vrot.lane.b32.xlu1 %v340_v26, %s2289_s13  ;;  %v350_v32 = vpop.f32.mrb[5].mxu0  ;;  %v1960_v26 = vld [vmem:[%s2569_s4] ss:$0 sm:$0xff] }
  0xef   : > { %422 = vst.msk [vmem:[#allocation2 + $0x31] sm:$0xff] %vm392_vm4, %v386_v29  ;;  %v380_v33 = vadd.f32 %v1879_v17, %v350_v32  ;;  %1751 = vrot.lane.b32.xlu0 %v350_v32, %s2289_s13 }
  0xf0   : > { %v389_v34 = vmax.f32 %v381_v31, 0.0 }
  0xf1   : > { %v388_v35 = vmax.f32 %v380_v33, 0.0  ;;  %v2071_v36 = vpop.f32.mrb[6].mxu0  ;;  %v2404_v41 = vld [vmem:[#allocation2 + $0x21] sm:$0xff] }
  0xf2   : > { %425 = vst.msk [vmem:[#allocation2 + $0x61] sm:$0xff] %vm392_vm4, %v389_v34  ;;  %v383_v37 = vadd.f32 %v2071_v36, %v1879_v17  ;;  %1753 = vrot.lane.b32.xlu1 %v2068_v30, %s2289_s13  ;;  %v360_v38 = vpop.f32.mrb[7].mxu0  ;;  %v438_v39 = vld [vmem:[#allocation2 + $0x11] sm:$0xff]  ;;  %v430_v56 = vld [vmem:[#allocation2 + $0x20] sm:$0xff] }
  0xf3   : > { %424 = vst.msk [vmem:[#allocation2 + $0x51] sm:$0xff] %vm392_vm4, %v388_v35  ;;  %v382_v40 = vadd.f32 %v1879_v17, %v360_v38  ;;  %2075 = vmatmul.mubr.msk.f32.vlgmr.msra.gmra.mrb[8].mxu0 %vm392_vm4, %v438_v39  ;;  %2130 = vmatprep.mubr.msk.f32.mxu1 %vm392_vm4, %v438_v39  ;;  %v1146_v53 = vld [vmem:[#allocation2 + $0x12] sm:$0xff]  ;;  %v2461_v57 = vld [vmem:[#allocation2 + $0x22] sm:$0xff] }
  0xf4   : > { %v391_v42 = vmax.f32 %v383_v37, 0.0  ;;  %1755 = vrot.lane.b32.xlu0 %v360_v38, %s2289_s13  ;;  %2077 = vmatprep.mubr.msk.f32.mxu0 %vm392_vm4, %v2404_v41  ;;  %v429_v54 = vld [vmem:[#allocation2 + $0x10] sm:$0xff] }
  0xf5   : > { %v390_v43 = vmax.f32 %v382_v40, 0.0  ;;  %2131 = vmatmul.mubr.msk.f32.vlgmr.msra.gmra.mrb[0].mxu1 %vm392_vm4, %v2404_v41  ;;  %2087 = vmatpush3.msra.mxu0 %v436_v16  ;;  %v2426_v47 = vld [vmem:[#allocation2 + $0x41] sm:$0xff] }
  0xf6   : > { %427 = vst.msk [vmem:[#allocation2 + $0x81] sm:$0xff] %vm392_vm4, %v391_v42  ;;  %2143 = vmatpush3.msra.mxu1 %v1924_v15  ;;  %1757 = vrot.lane.b32.xlu1 %v2071_v36, %s2289_s13  ;;  %v2416_v45 = vld [vmem:[#allocation2 + $0x31] sm:$0xff]  ;;  %v432_v61 = vld [vmem:[#allocation2 + $0x40] sm:$0xff] }
  0xf7   : > { %426 = vst.msk [vmem:[#allocation2 + $0x71] sm:$0xff] %vm392_vm4, %v390_v43  ;;  %2078 = vmatmul.mubr.msk.f32.gmra.mrb[10].mxu0 %vm392_vm4, %v2416_v45  ;;  %2133 = vmatprep.mubr.msk.f32.mxu1 %vm392_vm4, %v2416_v45  ;;  %v2468_v59 = vld [vmem:[#allocation2 + $0x32] sm:$0xff]  ;;  %v1149_v62 = vld [vmem:[#allocation2 + $0x42] sm:$0xff] }
  0xf8   : > { %2080 = vmatprep.mubr.msk.f32.mxu0 %vm392_vm4, %v2426_v47  ;;  %2156 = vmatprep.subr.mxu1 %v1933_v44  ;;  %v431_v60 = vld [vmem:[#allocation2 + $0x30] sm:$0xff] }
  0xf9   : > { %2134 = vmatmul.mubr.msk.f32.gmra.mrb[2].mxu1 %vm392_vm4, %v2426_v47  ;;  %2100 = vmatprep.subr.mxu0 %v1897_v46  ;;  %v2438_v49 = vld [vmem:[#allocation2 + $0x61] sm:$0xff] }
  0xfa   : > { %v2432_v48 = vld [vmem:[#allocation2 + $0x51] sm:$0xff]  ;;  %v434_v1 = vld [vmem:[#allocation2 + $0x60] sm:$0xff] }
  0xfb   : > { %2081 = vmatmul.mubr.msk.f32.gmra.mrb[12].mxu0 %vm392_vm4, %v2432_v48  ;;  %2136 = vmatprep.mubr.msk.f32.mxu1 %vm392_vm4, %v2432_v48  ;;  %v1150_v63 = vld [vmem:[#allocation2 + $0x52] sm:$0xff]  ;;  %v1151_v2 = vld [vmem:[#allocation2 + $0x62] sm:$0xff] }
  0xfc   : > { %2083 = vmatprep.mubr.msk.f32.mxu0 %vm392_vm4, %v2438_v49  ;;  %v433_v0 = vld [vmem:[#allocation2 + $0x50] sm:$0xff] }
  0xfd   : > { %2137 = vmatmul.mubr.msk.f32.gmra.mrb[4].mxu1 %vm392_vm4, %v2438_v49  ;;  %v2450_v52 = vld [vmem:[#allocation2 + $0x81] sm:$0xff] }
  0xfe   : > { %v2444_v51 = vld [vmem:[#allocation2 + $0x71] sm:$0xff]  ;;  %v1153_v6 = vld [vmem:[#allocation2 + $0x82] sm:$0xff] }
  0xff   : > { %2084 = vmatmul.mubr.msk.f32.gmra.mrb[14].mxu0 %vm392_vm4, %v2444_v51  ;;  %2139 = vmatprep.mubr.msk.f32.mxu1 %vm392_vm4, %v2444_v51  ;;  %v1152_v3 = vld [vmem:[#allocation2 + $0x72] sm:$0xff]  ;;  %v1300_v8 = vld [vmem:[#allocation2 + $0x80] sm:$0xff] }
 0x100   : > { %2088 = vmatprep.mubr.msk.f32.mxu0 %vm392_vm4, %v428_v50  ;;  %v435_v5 = vld [vmem:[#allocation2 + $0x70] sm:$0xff] }
 0x101   : > { %2140 = vmatmul.mubr.msk.f32.gmra.mrb[6].mxu1 %vm392_vm4, %v2450_v52 }
 0x102   : > { %2144 = vmatprep.mubr.msk.f32.mxu1 %vm392_vm4, %v1146_v53 }
 0x103   : > { %2089 = vmatmul.mubr.msk.f32.vlgmr.msra.gmra.mrb[8].mxu0 %vm392_vm4, %v429_v54 }
 0x104   : > { %2091 = vmatprep.mubr.msk.f32.mxu0 %vm392_vm4, %v430_v56  ;;  %2101 = vmatpush3.msra.mxu0 %v1897_v46 }
 0x105   : > { %2145 = vmatmul.mubr.msk.f32.vlgmr.msra.gmra.mrb[0].mxu1 %vm392_vm4, %v2461_v57  ;;  %2114 = vmatprep.subr.mxu0 %v1906_v55 }
 0x106   : > { %2157 = vmatpush3.msra.mxu1 %v1933_v44  ;;  %2147 = vmatprep.mubr.msk.f32.mxu1 %vm392_vm4, %v2468_v59 }
 0x107   : > { %2092 = vmatmul.mubr.msk.f32.gmra.mrb[10].mxu0 %vm392_vm4, %v431_v60  ;;  %2170 = vmatprep.subr.mxu1 %v1942_v58 }
 0x108   : > { %2094 = vmatprep.mubr.msk.f32.mxu0 %vm392_vm4, %v432_v61 }
 0x109   : > { %2148 = vmatmul.mubr.msk.f32.gmra.mrb[2].mxu1 %vm392_vm4, %v1149_v62 }
 0x10a   : > { %2150 = vmatprep.mubr.msk.f32.mxu1 %vm392_vm4, %v1150_v63 }
 0x10b   : > { %2095 = vmatmul.mubr.msk.f32.gmra.mrb[12].mxu0 %vm392_vm4, %v433_v0 }
 0x10c   : > { %2097 = vmatprep.mubr.msk.f32.mxu0 %vm392_vm4, %v434_v1 }
 0x10d   : > { %2151 = vmatmul.mubr.msk.f32.gmra.mrb[4].mxu1 %vm392_vm4, %v1151_v2 }
 0x10e   : > { %2153 = vmatprep.mubr.msk.f32.mxu1 %vm392_vm4, %v1152_v3 }
 0x10f   : > { %2098 = vmatmul.mubr.msk.f32.gmra.mrb[14].mxu0 %vm392_vm4, %v435_v5 }
 0x110   : > { %2102 = vmatprep.mubr.msk.f32.mxu0 %vm392_vm4, %v705_v4 }
 0x111   : > { %2154 = vmatmul.mubr.msk.f32.gmra.mrb[6].mxu1 %vm392_vm4, %v1153_v6 }
 0x112   : > { %2158 = vmatprep.mubr.msk.f32.mxu1 %vm392_vm4, %v430_v56 }
 0x113   : > { %2103 = vmatmul.mubr.msk.f32.vlgmr.msra.gmra.mrb[8].mxu0 %vm392_vm4, %v1146_v53 }
 0x114   : > { %2105 = vmatprep.mubr.msk.f32.mxu0 %vm392_vm4, %v2461_v57  ;;  %2115 = vmatpush3.msra.mxu0 %v1906_v55 }
 0x115   : > { %2159 = vmatmul.mubr.msk.f32.vlgmr.msra.gmra.mrb[0].mxu1 %vm392_vm4, %v431_v60 }
 0x116   : > { %2171 = vmatpush3.msra.mxu1 %v1942_v58  ;;  %2161 = vmatprep.mubr.msk.f32.mxu1 %vm392_vm4, %v432_v61 }
 0x117   : > { %2106 = vmatmul.mubr.msk.f32.gmra.mrb[10].mxu0 %vm392_vm4, %v2468_v59  ;;  %2184 = vmatprep.subr.mxu1 %v1951_v7 }
 0x118   : > { %2108 = vmatprep.mubr.msk.f32.mxu0 %vm392_vm4, %v1149_v62 }
 0x119   : > { %2162 = vmatmul.mubr.msk.f32.gmra.mrb[2].mxu1 %vm392_vm4, %v433_v0 }
 0x11a   : > { %2164 = vmatprep.mubr.msk.f32.mxu1 %vm392_vm4, %v434_v1 }
 0x11b   : > { %2109 = vmatmul.mubr.msk.f32.gmra.mrb[12].mxu0 %vm392_vm4, %v1150_v63 }
 0x11c   : > { %2111 = vmatprep.mubr.msk.f32.mxu0 %vm392_vm4, %v1151_v2 }
 0x11d   : > { %2165 = vmatmul.mubr.msk.f32.gmra.mrb[4].mxu1 %vm392_vm4, %v435_v5 }
 0x11e   : > { %2167 = vmatprep.mubr.msk.f32.mxu1 %vm392_vm4, %v1300_v8 }
 0x11f   : > { %2112 = vmatmul.mubr.msk.f32.gmra.mrb[14].mxu0 %vm392_vm4, %v1152_v3 }
 0x120   : > { %2116 = vmatprep.mubr.msk.f32.mxu0 %vm392_vm4, %v429_v54 }
 0x121   : > { %2168 = vmatmul.mubr.msk.f32.gmra.mrb[6].mxu1 %vm392_vm4, %v1301_v9 }
 0x122   : > { %2172 = vmatprep.mubr.msk.f32.mxu1 %vm392_vm4, %v2404_v41 }
 0x123   : > { %2117 = vmatmul.mubr.msk.f32.vlgmr.msra.gmra.mrb[8].mxu0 %vm392_vm4, %v430_v56 }
 0x124   : > { %2119 = vmatprep.mubr.msk.f32.mxu0 %vm392_vm4, %v431_v60 }
 0x125   : > { %2173 = vmatmul.mubr.msk.f32.vlgmr.msra.gmra.mrb[0].mxu1 %vm392_vm4, %v2416_v45 }
 0x126   : > { %2185 = vmatpush3.msra.mxu1 %v1951_v7  ;;  %2175 = vmatprep.mubr.msk.f32.mxu1 %vm392_vm4, %v2426_v47 }
 0x127   : > { %2120 = vmatmul.mubr.msk.f32.gmra.mrb[10].mxu0 %vm392_vm4, %v432_v61 }
 0x128   : > { %2122 = vmatprep.mubr.msk.f32.mxu0 %vm392_vm4, %v433_v0 }
 0x129   : > { %2176 = vmatmul.mubr.msk.f32.gmra.mrb[2].mxu1 %vm392_vm4, %v2432_v48 }
 0x12a   : > { %2178 = vmatprep.mubr.msk.f32.mxu1 %vm392_vm4, %v2438_v49 }
 0x12b   : > { %2123 = vmatmul.mubr.msk.f32.gmra.mrb[12].mxu0 %vm392_vm4, %v434_v1 }
 0x12c   : > { %2125 = vmatprep.mubr.msk.f32.mxu0 %vm392_vm4, %v435_v5 }
 0x12d   : > { %2179 = vmatmul.mubr.msk.f32.gmra.mrb[4].mxu1 %vm392_vm4, %v2444_v51 }
 0x12e   : > { %2181 = vmatprep.mubr.msk.f32.mxu1 %vm392_vm4, %v2450_v52 }
 0x12f   : > { %2126 = vmatmul.mubr.msk.f32.gmra.mrb[14].mxu0 %vm392_vm4, %v1300_v8 }
 0x131   : > { %2182 = vmatmul.mubr.msk.f32.gmra.mrb[6].mxu1 %vm392_vm4, %v1448_v10 }
 0x132   : > { %2186 = vmatprep.mubr.msk.f32.mxu1 %vm392_vm4, %v2461_v57 }
 0x135   : > { %2187 = vmatmul.mubr.msk.f32.vlgmr.msra.gmra.mrb[0].mxu1 %vm392_vm4, %v2468_v59 }
 0x136   : > { %2189 = vmatprep.mubr.msk.f32.mxu1 %vm392_vm4, %v1149_v62 }
 0x139   : > { %2190 = vmatmul.mubr.msk.f32.gmra.mrb[2].mxu1 %vm392_vm4, %v1150_v63 }
 0x13a   : > { %2192 = vmatprep.mubr.msk.f32.mxu1 %vm392_vm4, %v1151_v2 }
 0x13d   : > { %2193 = vmatmul.mubr.msk.f32.gmra.mrb[4].mxu1 %vm392_vm4, %v1152_v3 }
 0x13e   : > { %2195 = vmatprep.mubr.msk.f32.mxu1 %vm392_vm4, %v1153_v6 }
 0x141   : > { %2196 = vmatmul.mubr.msk.f32.gmra.mrb[6].mxu1 %vm392_vm4, %v1595_v11 }
 0x158   : > { %v1746_v21 = vpop.permute.xlu0 %1745 }
 0x15c   : > { %v1750_v20 = vpop.permute.xlu1 %1749  ;;  %v1744_v28 = vpop.permute.xlu0 %1743 }
 0x160   : > { %v1748_v25 = vpop.permute.xlu1 %1747 }
 0x161   : > { %v1752_v43 = vpop.permute.xlu0 %1751 }
 0x164   : > { %v1754_v39 = vpop.permute.xlu1 %1753 }
 0x166   : > { %v1756_v60 = vpop.permute.xlu0 %1755 }
 0x168   : > { %v1758_v57 = vpop.permute.xlu1 %1757 }
 0x1f6   : > { %v2118_v12 = vpop.f32.mrb[8].mxu0 }
 0x1f7   : > { %v952_v13 = vpop.f32.mrb[9].mxu0 }
 0x1fa   : > { %v2121_v14 = vpop.f32.mrb[10].mxu0 }
 0x1fb   : > { %v962_v15 = vpop.f32.mrb[11].mxu0 }
 0x1fe   : > { %v2124_v16 = vpop.f32.mrb[12].mxu0 }
 0x1ff   : > { %v972_v17 = vpop.f32.mrb[13].mxu0 }
 0x202   : > { %v2127_v18 = vpop.f32.mrb[14].mxu0 }
 0x203   : > { %v982_v19 = vpop.f32.mrb[15].mxu0 }
 0x208   : > { %v2188_v22 = vpop.f32.mrb[0].mxu1 }
 0x209   : > { %v2204_v23 = vadd.f32 %v2188_v22, %v2118_v12  ;;  %v1688_v24 = vpop.f32.mrb[1].mxu1 }
 0x20a   : > { %v2205_v27 = vadd.f32 %v1688_v24, %v952_v13 }
 0x20b   : > { %v1768_v29 = vadd.f32 %v2204_v23, %v1746_v21 }
 0x20c   : > { %v1767_v30 = vadd.f32 %v2205_v27, %v1744_v28  ;;  %v2191_v31 = vpop.f32.mrb[2].mxu1 }
 0x20d   : > { %v1783_v32 = vadd.f32 %v1960_v26, %v1768_v29  ;;  %v2206_v33 = vadd.f32 %v2191_v31, %v2121_v14  ;;  %v1698_v34 = vpop.f32.mrb[3].mxu1 }
 0x20e   : > { %v1782_v35 = vadd.f32 %v1960_v26, %v1767_v30  ;;  %v2207_v36 = vadd.f32 %v1698_v34, %v962_v15 }
 0x20f   : > { %v1791_v37 = vmax.f32 %v1783_v32, 0.0  ;;  %v1770_v38 = vadd.f32 %v2206_v33, %v1750_v20 }
 0x210   : > { %v1790_v40 = vmax.f32 %v1782_v35, 0.0  ;;  %v1769_v41 = vadd.f32 %v2207_v36, %v1748_v25  ;;  %v2194_v42 = vpop.f32.mrb[4].mxu1 }
 0x211   : > { %1799 = vst.msk [vmem:[%s2544_s6 + $0x8] sm:$0xff] %vm392_vm4, %v1791_v37  ;;  %v1785_v44 = vadd.f32 %v1960_v26, %v1770_v38  ;;  %v2208_v45 = vadd.f32 %v2194_v42, %v2124_v16  ;;  %v1708_v46 = vpop.f32.mrb[5].mxu1 }
 0x212   : > { %1798 = vst.msk [vmem:[%s2544_s6] sm:$0xff] %vm392_vm4, %v1790_v40  ;;  %v1784_v47 = vadd.f32 %v1960_v26, %v1769_v41  ;;  %v2209_v48 = vadd.f32 %v1708_v46, %v972_v17 }
 0x213   : > { %v1793_v49 = vmax.f32 %v1785_v44, 0.0  ;;  %v1772_v50 = vadd.f32 %v2208_v45, %v1754_v39 }
 0x214   : > { %v1792_v51 = vmax.f32 %v1784_v47, 0.0  ;;  %v1771_v52 = vadd.f32 %v2209_v48, %v1752_v43  ;;  %v2197_v53 = vpop.f32.mrb[6].mxu1 }
 0x215   : > { %1801 = vst.msk [vmem:[%s2544_s6 + $0x18] sm:$0xff] %vm392_vm4, %v1793_v49  ;;  %v1787_v54 = vadd.f32 %v1960_v26, %v1772_v50  ;;  %v2210_v55 = vadd.f32 %v2197_v53, %v2127_v18  ;;  %v1718_v56 = vpop.f32.mrb[7].mxu1 }
 0x216   : > { %1800 = vst.msk [vmem:[%s2544_s6 + $0x10] sm:$0xff] %vm392_vm4, %v1792_v51  ;;  %v1786_v58 = vadd.f32 %v1960_v26, %v1771_v52  ;;  %v2211_v59 = vadd.f32 %v1718_v56, %v982_v19 }
 0x217   : > { %v1795_v61 = vmax.f32 %v1787_v54, 0.0  ;;  %v1774_v62 = vadd.f32 %v2210_v55, %v1758_v57 }
 0x218   : > { %v1794_v63 = vmax.f32 %v1786_v58, 0.0  ;;  %v1773_v0 = vadd.f32 %v2211_v59, %v1756_v60 }
 0x219   : > { %1803 = vst.msk [vmem:[%s2544_s6 + $0x28] sm:$0xff] %vm392_vm4, %v1795_v61  ;;  %v1789_v1 = vadd.f32 %v1960_v26, %v1774_v62 }
 0x21a   : > { %1802 = vst.msk [vmem:[%s2544_s6 + $0x20] sm:$0xff] %vm392_vm4, %v1794_v63  ;;  %v1788_v2 = vadd.f32 %v1960_v26, %v1773_v0 }
 0x21b   : > { %v1797_v3 = vmax.f32 %v1789_v1, 0.0 }
 0x21c   : > { %v1796_v4 = vmax.f32 %v1788_v2, 0.0 }
 0x21d   : > { %1805 = vst.msk [vmem:[%s2544_s6 + $0x38] sm:$0xff] %vm392_vm4, %v1797_v3 }
 0x21e   : > { %1804 = vst.msk [vmem:[%s2544_s6 + $0x30] sm:$0xff] %vm392_vm4, %v1796_v4 }
 0x21f PF: > { %s15_s18 = sadd.s32 1, %s2285_s18  }
 0x220   : > { %p12_p4 = scmp.ge.s32.totalorder %s15_s18, 4  }
 0x222   :  { %14 = sbr.rel (!%p12_p4) target bundleno = 1 (0x1), region = 81 }

// kernel: shortchunk_forward.10
= control target key start
LH: loop header
LB: loop body
LE: loop exit
PB: predicated region body
PF: predicated region fallthrough
CT: control target
= control target key end

     0   :  { %s2453_s27 = smov 0   ;;  %s2681_s0 = inlined_call_operand.vmem [shape: f32[2,3,3,8], index: 0, kind: input, shape index: {}]   ;;  %s2682_s1 = inlined_call_operand.vmem [shape: f32[2,3,3,8], index: 1, kind: input, shape index: {}]   ;;  %s2683_s2 = inlined_call_operand.vmem [shape: f32[2,3,3,8], index: 2, kind: input, shape index: {}]   ;;  %s2684_s3 = inlined_call_operand.vmem [shape: f32[2,3,3,8], index: 3, kind: input, shape index: {}]   ;;  %s2685_s4 = inlined_call_operand.vmem [shape: f32[3,3,8,32], index: 4, kind: input, shape index: {}]   ;;  %s2686_s5 = inlined_call_operand.vmem [shape: f32[1,16], index: 5, kind: input, shape index: {}]   ;;  %s2687_s6 = inlined_call_operand.vmem [shape: f32[3,3,16,16], index: 6, kind: input, shape index: {}]   ;;  %s2688_s7 = inlined_call_operand.vmem [shape: f32[1,16], index: 7, kind: input, shape index: {}]   ;;  %s2689_s8 = inlined_call_operand.vmem [shape: f32[2,2,2,16], index: 8, kind: output, shape index: {}]  }
   0x1 LB: > { %s2094_s28 = sadd.s32 4294967295, %s2401_s27   ;;  %p2098_p0 = scmp.ge.s32.totalorder %s2401_s27, 1  ;;  %s2401_s27 = sphi %s2453_s27, %s18_s27  }
   0x2   : > { %p292_p1 = scmp.lt.s32.totalorder %s2401_s27, 3 }
   0x4   : > { %p293_p2 = pnand %p2098_p0, %p292_p1 }
   0x5   : > { %v2105_v0 = vld [vmem:[%s2685_s4 + $0x8] sm:$0xff] (!%p293_p2)  ;;  %p341_p3 = scmp.lt.s32.totalorder (!%p293_p2), %s2094_s28, 1  ;;  %v379_v1 = vlaneseq (!%p293_p2)  ;;  %v2403_v2 = vmov (!%p293_p2), 0.0   ;;  %vm2404_vm0 = vmmov (!%p293_p2), 0   ;;  %v2405_v3 = vmov (!%p293_p2), 1983009808  }
   0x6   : > { %296 = sbr.rel (%p293_p2) target bundleno = 567 (0x237), region = 52  ;;  %2203 = vmatprep.subr.mxu0 (!%p293_p2), %v2403_v2  ;;  %2205 = vmatprep.mubr.msk.f32.mxu0 (!%p293_p2), %vm2404_vm0, %v2403_v2  ;;  %v377_v4 = vunpack.c.l.s4 (!%p293_p2), %v2405_v3  ;;  %vm383_vm1 = vcmask (!%p293_p2), 64512   ;;  %v368_v9 = vld [vmem:[%s2685_s4] sm:$0xff] (!%p293_p2)  ;;  %v2108_v11 = vld [vmem:[%s2685_s4 + $0x10] sm:$0xff] (!%p293_p2)  ;;  %v2110_v13 = vld [vmem:[%s2685_s4 + $0x18] sm:$0xff] (!%p293_p2)  ;;  %vm1158_vm2 = vcmask (!%p293_p2), 130048  }
   0x7   : > { %2204 = vmatpush3.msra.mxu0 (!%p293_p2), %v2105_v0  ;;  %v380_v5 = vshrl.u32 (!%p293_p2), %v379_v1, 7  ;;  %2252 = vmatprep.mubr.msk.f32.mxu1 (!%p293_p2), %vm2404_vm0, %v2403_v2  ;;  %v2112_v15 = vld [vmem:[%s2685_s4 + $0x20] sm:$0xff] (!%p293_p2)  ;;  %v2114_v17 = vld [vmem:[%s2685_s4 + $0x28] sm:$0xff] (!%p293_p2)  ;;  %v2118_v19 = vld [vmem:[%s2685_s4 + $0x30] sm:$0xff] (!%p293_p2)  ;;  %1159 = vst.msk [vmem:[#allocation2] sm:$0xff] (!%p293_p2), %vm1158_vm2, %v2403_v2  ;;  %vm1162_vm3 = vcmask (!%p293_p2), 122880  }
   0x8   : > { %2208 = vmatprep.subr.mxu0 (!%p293_p2), %v2403_v2  ;;  %v378_v6 = vunpack.c.0.s8 (!%p293_p2), %v377_v4  ;;  %v2122_v21 = vld [vmem:[%s2685_s4 + $0x38] sm:$0xff] (!%p293_p2)  ;;  %v2126_v23 = vld [vmem:[%s2685_s4 + $0x40] sm:$0xff] (!%p293_p2)  ;;  %1161 = vst.msk [vmem:[#allocation2 + $0x18] sm:$0xff] (!%p293_p2), %vm1158_vm2, %v2403_v2  ;;  %v2129_v25 = vld [vmem:[%s2687_s6 + $0x10] sm:$0xff] (!%p293_p2)  ;;  %v2406_v27 = vmov (!%p293_p2), 0.0|0.0   ;;  %s2407_s24 = smov (!%p293_p2), 112  }
   0x9   : > { %1163 = vst.msk [vmem:[#allocation2] sm:$0x1] (!%p293_p2), %vm1162_vm3, %v2403_v2  ;;  %1164 = vst.msk [vmem:[#allocation2 + $0x8] sm:$0x1] (!%p293_p2), %vm1162_vm3, %v2403_v2  ;;  %v2130_v26 = vld [vmem:[%s2687_s6 + $0x18] sm:$0xff] (!%p293_p2)  ;;  %2311 = vmatprep.subr.bf16.mxu1 (!%p293_p2), %v2406_v27  ;;  %vm1183_vm4 = vcmask (!%p293_p2), 123904  }
   0xa   : > { %v2473_v7 = vsub.s32 (!%p293_p2), %v378_v6, %v380_v5  ;;  %1165 = vst.msk [vmem:[#allocation2 + $0x10] sm:$0x1] (!%p293_p2), %vm1162_vm3, %v2403_v2  ;;  %1166 = vst.msk [vmem:[#allocation2 + $0x18] sm:$0x1] (!%p293_p2), %vm1162_vm3, %v2403_v2  ;;  %v2312_v28 = vpack.c.bf16 (!%p293_p2), %v2130_v26, %v2129_v25  ;;  %v2128_v29 = vld [vmem:[%s2686_s5] ss:$0 sm:$0xff] (!%p293_p2) }
   0xb   : > { %1167 = vst.msk [vmem:[#allocation2 + $0x3] sm:$0x1] (!%p293_p2), %vm1162_vm3, %v2403_v2  ;;  %1168 = vst.msk [vmem:[#allocation2 + $0xb] sm:$0x1] (!%p293_p2), %vm1162_vm3, %v2403_v2  ;;  %v1188_v36 = vld [vmem:[%s2687_s6] sm:$0xff] (!%p293_p2)  ;;  %v1189_v37 = vld [vmem:[%s2687_s6 + $0x8] sm:$0xff] (!%p293_p2) }
   0xc   : > { %1169 = vst.msk [vmem:[#allocation2 + $0x13] sm:$0x1] (!%p293_p2), %vm1162_vm3, %v2403_v2  ;;  %1170 = vst.msk [vmem:[#allocation2 + $0x1b] sm:$0x1] (!%p293_p2), %vm1162_vm3, %v2403_v2  ;;  %2313 = vmatpush3.bf16.msra.mxu1 (!%p293_p2), %v2312_v28  ;;  %v2315_v39 = vpack.c.bf16 (!%p293_p2), %v1189_v37, %v1188_v36  ;;  %v2133_v40 = vld [vmem:[%s2687_s6 + $0x20] sm:$0xff] (!%p293_p2)  ;;  %v2134_v43 = vld [vmem:[%s2687_s6 + $0x28] sm:$0xff] (!%p293_p2) }
   0xd   : > { %s2691_s28 = smov (!%p341_p3, %s2094_s28), 1  ;;  %2314 = vmatprep.subr.bf16.mxu1 %v2406_v27  ;;  %v2318_v44 = vpack.c.bf16 %v2134_v43, %v2133_v40  ;;  %v2136_v45 = vld [vmem:[%s2687_s6 + $0x30] sm:$0xff]  ;;  %v2137_v48 = vld [vmem:[%s2687_s6 + $0x38] sm:$0xff]  ;;  %v2139_v52 = vld [vmem:[%s2687_s6 + $0x40] sm:$0xff] }
   0xe   : > { %s2354_s9 = smul.u32 12, %s2691_s28  ;;  %v2321_v49 = vpack.c.bf16 %v2137_v48, %v2136_v45  ;;  %v2140_v53 = vld [vmem:[%s2687_s6 + $0x48] sm:$0xff]  ;;  %v2142_v57 = vld [vmem:[%s2687_s6 + $0x50] sm:$0xff]  ;;  %v2143_v58 = vld [vmem:[%s2687_s6 + $0x58] sm:$0xff] }
   0xf   : > { %v2324_v54 = vpack.c.bf16 %v2140_v53, %v2139_v52  ;;  %v2327_v59 = vpack.c.bf16 %v2143_v58, %v2142_v57  ;;  %v2145_v62 = vld [vmem:[%s2687_s6 + $0x60] sm:$0xff]  ;;  %v2146_v63 = vld [vmem:[%s2687_s6 + $0x68] sm:$0xff]  ;;  %v2148_v4 = vld [vmem:[%s2687_s6 + $0x70] sm:$0xff] }
  0x10   : > { %s2478_s12 = scalar_lea.vmem %s2682_s1, %s2354_s9  ;;  %s2483_s15 = scalar_lea.vmem %s2681_s0, %s2354_s9  ;;  %v2330_v0 = vpack.c.bf16 %v2146_v63, %v2145_v62  ;;  %v2149_v5 = vld [vmem:[%s2687_s6 + $0x78] sm:$0xff] }
  0x11   : > { %v2386_v8 = vld.sshfl [vmem:[%s2478_s12] sm:$0xf pattern:$0x76325410]  ;;  %s355_s20 = scalar_lea.vmem %s2683_s2, %s2354_s9  ;;  %s360_s23 = scalar_lea.vmem %s2684_s3, %s2354_s9  ;;  %v2333_v6 = vpack.c.bf16 %v2149_v5, %v2148_v4 }
  0x12   : > { %2206 = vmatmul.mubr.msk.f32.vlgmr.msra.gmra.mrb[0].mxu0 %vm383_vm1, %v2386_v8  ;;  %v2387_v10 = vld.sshfl [vmem:[%s2483_s15] sm:$0xf pattern:$0x76325410] }
  0x13   : > { %2209 = vmatpush3.msra.mxu0 %v368_v9  ;;  %2210 = vmatprep.mubr.msk.f32.mxu0 %vm2404_vm0, %v2403_v2  ;;  %v2388_v12 = vld.sshfl [vmem:[%s2483_s15 + $0x1] sm:$0xf pattern:$0x76325410] }
  0x14   : > { %2213 = vmatprep.subr.mxu0 %v2403_v2  ;;  %v2389_v14 = vld.sshfl [vmem:[%s355_s20] sm:$0xf pattern:$0x76325410] }
  0x15   : > { %v2390_v16 = vld.sshfl [vmem:[%s360_s23] sm:$0xf pattern:$0x76325410] }
  0x16   : > { %v2391_v18 = vld.sshfl [vmem:[%s355_s20 + $0x1] sm:$0xf pattern:$0x76325410] }
  0x17   : > { %v2392_v20 = vld.sshfl [vmem:[%s2483_s15 + $0x4] sm:$0xf pattern:$0x76325410] }
  0x18   : > { %v2393_v22 = vld.sshfl [vmem:[%s2478_s12 + $0x4] sm:$0xf pattern:$0x76325410] }
  0x19   : > { %v2394_v24 = vld.sshfl [vmem:[%s2483_s15 + $0x5] sm:$0xf pattern:$0x76325410]  ;;  %s2157_s15 = sshll.u32 %s2691_s28, 2 }
  0x1a   : > { %2211 = vmatmul.mubr.msk.f32.vlgmr.msra.gmra.mrb[0].mxu0 %vm383_vm1, %v2387_v10  ;;  %v2151_v10 = vld [vmem:[%s2687_s6 + $0x80] sm:$0xff]  ;;  %s365_s22 = scalar_lea.vmem %s2689_s8, %s2157_s15 }
  0x1b   : > { %2214 = vmatpush3.msra.mxu0 %v2108_v11  ;;  %2215 = vmatprep.mubr.msk.f32.mxu0 %vm2404_vm0, %v2403_v2  ;;  %v2152_v11 = vld [vmem:[%s2687_s6 + $0x88] sm:$0xff] }
  0x1c   : > { %2218 = vmatprep.subr.mxu0 %v2403_v2 }
  0x22   : > { %2216 = vmatmul.mubr.msk.f32.vlgmr.msra.gmra.mrb[0].mxu0 %vm383_vm1, %v2388_v12  ;;  %v2336_v12 = vpack.c.bf16 %v2152_v11, %v2151_v10 }
  0x23   : > { %2219 = vmatpush3.msra.mxu0 %v2110_v13  ;;  %2220 = vmatprep.mubr.msk.f32.mxu0 %vm2404_vm0, %v2403_v2 }
  0x24   : > { %2223 = vmatprep.subr.mxu0 %v2403_v2 }
  0x2a   : > { %2221 = vmatmul.mubr.msk.f32.vlgmr.msra.gmra.mrb[0].mxu0 %vm383_vm1, %v2389_v14 }
  0x2b   : > { %2224 = vmatpush3.msra.mxu0 %v2112_v15  ;;  %2225 = vmatprep.mubr.msk.f32.mxu0 %vm2404_vm0, %v2403_v2 }
  0x2c   : > { %2228 = vmatprep.subr.mxu0 %v2403_v2 }
  0x32   : > { %2226 = vmatmul.mubr.msk.f32.vlgmr.msra.gmra.mrb[0].mxu0 %vm383_vm1, %v2390_v16 }
  0x33   : > { %2229 = vmatpush3.msra.mxu0 %v2114_v17  ;;  %2230 = vmatprep.mubr.msk.f32.mxu0 %vm2404_vm0, %v2403_v2 }
  0x34   : > { %2233 = vmatprep.subr.mxu0 %v2403_v2 }
  0x3a   : > { %2231 = vmatmul.mubr.msk.f32.vlgmr.msra.gmra.mrb[0].mxu0 %vm383_vm1, %v2391_v18 }
  0x3b   : > { %2234 = vmatpush3.msra.mxu0 %v2118_v19  ;;  %2235 = vmatprep.mubr.msk.f32.mxu0 %vm2404_vm0, %v2403_v2 }
  0x3c   : > { %2238 = vmatprep.subr.mxu0 %v2403_v2 }
  0x42   : > { %2236 = vmatmul.mubr.msk.f32.vlgmr.msra.gmra.mrb[0].mxu0 %vm383_vm1, %v2392_v20 }
  0x43   : > { %2239 = vmatpush3.msra.mxu0 %v2122_v21  ;;  %2240 = vmatprep.mubr.msk.f32.mxu0 %vm2404_vm0, %v2403_v2 }
  0x44   : > { %2243 = vmatprep.subr.mxu0 %v2403_v2 }
  0x4a   : > { %2241 = vmatmul.mubr.msk.f32.vlgmr.msra.gmra.mrb[0].mxu0 %vm383_vm1, %v2393_v22 }
  0x4b   : > { %2244 = vmatpush3.msra.mxu0 %v2126_v23  ;;  %2245 = vmatprep.mubr.msk.f32.mxu0 %vm2404_vm0, %v2403_v2 }
  0x52   : > { %2246 = vmatmul.mubr.msk.f32.vlgmr.msra.gmra.mrb[0].mxu0 %vm383_vm1, %v2394_v24 }
 0x125   : > { %v1144_v30 = vpop.f32.mrb[0].mxu0 }
 0x126   : > { %v1156_v31 = vadd.f32 %v2128_v29, %v1144_v30  ;;  %v2247_v32 = vpop.f32.mrb[1].mxu0  ;;  %1977 = vrot.lane.b32.xlu0 %v1144_v30, %s2407_s24 }
 0x128   : > { %v1157_v33 = vmax.f32 %v1156_v31, 0.0 }
 0x12a   : > { %v1178_v34 = vrot.slane %v1157_v33, %v2473_v7 }
 0x12c   : > { %v1179_v35 = vcombine.high %v1178_v34, %v1178_v34  ;;  %1184 = vst.msk [vmem:[#allocation2 + $0x9] sm:$0x3] %vm1183_vm4, %v1178_v34 }
 0x12e   : > { %1185 = vst.msk [vmem:[#allocation2 + $0x11] sm:$0x3] %vm1183_vm4, %v1179_v35 }
 0x133   : > { %v2377_v38 = vld [vmem:[#allocation2 + $0x1] ss:$8 sps:$4 sm:$0x33]  }
 0x134   : > { %v1204_v41 = vrot.slane %v2377_v38, %v2473_v7  ;;  %v2378_v42 = vld [vmem:[#allocation2] ss:$8 sps:$4 sm:$0x33]   ;;  %v2379_v47 = vld [vmem:[#allocation2 + $0x2] ss:$8 sps:$4 sm:$0x33]  }
 0x135   : > { %v1286_v46 = vrot.slane %v2378_v42, %v2473_v7  ;;  %v1373_v50 = vrot.slane %v2379_v47, %v2473_v7  ;;  %v2380_v51 = vld [vmem:[#allocation2 + $0x8] ss:$8 sps:$4 sm:$0x33]   ;;  %v2382_v61 = vld [vmem:[#allocation2 + $0xa] ss:$8 sps:$4 sm:$0x33]  }
 0x136   : > { %2253 = vmatmul.mubr.msk.f32.vlgmr.msra.gmra.mrb[0].mxu1 %vm1158_vm2, %v1204_v41  ;;  %v1461_v55 = vrot.slane %v2380_v51, %v2473_v7  ;;  %v2381_v56 = vld [vmem:[#allocation2 + $0x9] ss:$8 sps:$4 sm:$0x33]   ;;  %v1637_v1 = vrot.slane %v2382_v61, %v2473_v7  ;;  %v2154_v42 = vld [vmem:[%s2688_s7] ss:$0 sm:$0xff] }
 0x137   : > { %2316 = vmatpush3.bf16.msra.mxu1 %v2315_v39  ;;  %2259 = vmatprep.mubr.msk.f32.mxu1 %vm2404_vm0, %v2403_v2  ;;  %v1549_v60 = vrot.slane %v2381_v56, %v2473_v7  ;;  %v2383_v3 = vld [vmem:[#allocation2 + $0x10] ss:$8 sps:$4 sm:$0x33]   ;;  %v2385_v14 = vld [vmem:[#allocation2 + $0x12] ss:$8 sps:$4 sm:$0x33]  }
 0x138   : > { %2317 = vmatprep.subr.bf16.mxu1 %v2406_v27  ;;  %v1726_v8 = vrot.slane %v2383_v3, %v2473_v7  ;;  %v2384_v9 = vld [vmem:[#allocation2 + $0x11] ss:$8 sps:$4 sm:$0x33]   ;;  %v1902_v15 = vrot.slane %v2385_v14, %v2473_v7 }
 0x139   : > { %v1814_v13 = vrot.slane %v2384_v9, %v2473_v7 }
 0x13a   : > { %2260 = vmatmul.mubr.msk.f32.vlgmr.msra.gmra.mrb[2].mxu1 %vm1158_vm2, %v1286_v46 }
 0x13b   : > { %2319 = vmatpush3.bf16.msra.mxu1 %v2318_v44  ;;  %2266 = vmatprep.mubr.msk.f32.mxu1 %vm2404_vm0, %v2403_v2 }
 0x13c   : > { %2320 = vmatprep.subr.bf16.mxu1 %v2406_v27 }
 0x13e   : > { %2267 = vmatmul.mubr.msk.f32.vlgmr.msra.gmra.mrb[4].mxu1 %vm1158_vm2, %v1373_v50 }
 0x13f   : > { %2322 = vmatpush3.bf16.msra.mxu1 %v2321_v49  ;;  %2273 = vmatprep.mubr.msk.f32.mxu1 %vm2404_vm0, %v2403_v2 }
 0x140   : > { %2323 = vmatprep.subr.bf16.mxu1 %v2406_v27 }
 0x142   : > { %2274 = vmatmul.mubr.msk.f32.vlgmr.msra.gmra.mrb[6].mxu1 %vm1158_vm2, %v1461_v55 }
 0x143   : > { %2325 = vmatpush3.bf16.msra.mxu1 %v2324_v54  ;;  %2280 = vmatprep.mubr.msk.f32.mxu1 %vm2404_vm0, %v2403_v2 }
 0x144   : > { %2326 = vmatprep.subr.bf16.mxu1 %v2406_v27 }
 0x146   : > { %2281 = vmatmul.mubr.msk.f32.vlgmr.msra.gmra.mrb[8].mxu1 %vm1158_vm2, %v1549_v60 }
 0x147   : > { %2328 = vmatpush3.bf16.msra.mxu1 %v2327_v59  ;;  %2287 = vmatprep.mubr.msk.f32.mxu1 %vm2404_vm0, %v2403_v2 }
 0x148   : > { %2329 = vmatprep.subr.bf16.mxu1 %v2406_v27 }
 0x14a   : > { %2288 = vmatmul.mubr.msk.f32.vlgmr.msra.gmra.mrb[10].mxu1 %vm1158_vm2, %v1637_v1 }
 0x14b   : > { %2331 = vmatpush3.bf16.msra.mxu1 %v2330_v0  ;;  %2294 = vmatprep.mubr.msk.f32.mxu1 %vm2404_vm0, %v2403_v2 }
 0x14c   : > { %2332 = vmatprep.subr.bf16.mxu1 %v2406_v27 }
 0x14e   : > { %2295 = vmatmul.mubr.msk.f32.vlgmr.msra.gmra.mrb[12].mxu1 %vm1158_vm2, %v1726_v8 }
 0x14f   : > { %2334 = vmatpush3.bf16.msra.mxu1 %v2333_v6  ;;  %2301 = vmatprep.mubr.msk.f32.mxu1 %vm2404_vm0, %v2403_v2 }
 0x150   : > { %2335 = vmatprep.subr.bf16.mxu1 %v2406_v27 }
 0x152   : > { %2302 = vmatmul.mubr.msk.f32.vlgmr.msra.gmra.mrb[14].mxu1 %vm1158_vm2, %v1814_v13 }
 0x153   : > { %2337 = vmatpush3.bf16.msra.mxu1 %v2336_v12  ;;  %2308 = vmatprep.mubr.msk.f32.mxu1 %vm2404_vm0, %v2403_v2 }
 0x156   : > { %2309 = vmatmul.mubr.msk.f32.vlgmr.msra.gmra.mrb[16].mxu1 %vm1158_vm2, %v1902_v15 }
 0x198   : > { %v1978_v41 = vpop.permute.xlu0 %1977 }
 0x209   : > { %v1273_v16 = vpop.f32.mrb[0].mxu1 }
 0x20a   : > { %v2254_v17 = vpop.f32.mrb[1].mxu1 }
 0x20d   : > { %v1355_v18 = vpop.f32.mrb[2].mxu1 }
 0x20e   : > { %v1356_v19 = vadd.f32 %v1355_v18, %v1273_v16  ;;  %v2261_v20 = vpop.f32.mrb[3].mxu1 }
 0x211   : > { %v1442_v21 = vpop.f32.mrb[4].mxu1 }
 0x212   : > { %v1446_v22 = vadd.f32 %v1442_v21, %v1356_v19  ;;  %v2268_v23 = vpop.f32.mrb[5].mxu1 }
 0x215   : > { %v1530_v24 = vpop.f32.mrb[6].mxu1 }
 0x216   : > { %v1534_v25 = vadd.f32 %v1530_v24, %v1446_v22  ;;  %v2275_v26 = vpop.f32.mrb[7].mxu1 }
 0x219   : > { %v1618_v27 = vpop.f32.mrb[8].mxu1 }
 0x21a   : > { %v1622_v28 = vadd.f32 %v1618_v27, %v1534_v25  ;;  %v2282_v29 = vpop.f32.mrb[9].mxu1 }
 0x21d   : > { %v1706_v2 = vpop.f32.mrb[10].mxu1 }
 0x21e   : > { %v1710_v30 = vadd.f32 %v1706_v2, %v1622_v28  ;;  %v2289_v31 = vpop.f32.mrb[11].mxu1 }
 0x221   : > { %v1795_v32 = vpop.f32.mrb[12].mxu1 }
 0x222   : > { %v1799_v33 = vadd.f32 %v1795_v32, %v1710_v30  ;;  %v2296_v34 = vpop.f32.mrb[13].mxu1 }
 0x225   : > { %v1883_v35 = vpop.f32.mrb[14].mxu1 }
 0x226   : > { %v1887_v36 = vadd.f32 %v1883_v35, %v1799_v33  ;;  %v2303_v37 = vpop.f32.mrb[15].mxu1 }
 0x229   : > { %v1971_v38 = vpop.f32.mrb[16].mxu1 }
 0x22a   : > { %v1975_v39 = vadd.f32 %v1971_v38, %v1887_v36  ;;  %v2310_v40 = vpop.f32.mrb[17].mxu1 }
 0x22c   : > { %v1980_v43 = vadd.f32 %v1978_v41, %v1975_v39 }
 0x22e   : > { %v1988_v44 = vadd.f32 %v2154_v42, %v1980_v43 }
 0x230   : > { %v1989_v45 = vmax.f32 %v1988_v44, 0.0 }
 0x232   : > { %v1997_v46 = vrot.slane %v1989_v45, %v2473_v7 }
 0x234   : > { %v1998_v47 = vcombine.high %v1997_v46, %v1997_v46  ;;  %2001 = vst.msk [vmem:[%s365_s22] sm:$0x3] %vm1183_vm4, %v1997_v46 }
 0x236   : > { %2002 = vst.msk [vmem:[%s365_s22 + $0x2] sm:$0x3] %vm1183_vm4, %v1998_v47 }
 0x237 PF: > { %s18_s27 = sadd.s32 1, %s2401_s27  }
 0x238   : > { %p15_p4 = scmp.ge.s32.totalorder %s18_s27, 4  }
 0x23a   :  { %17 = sbr.rel (!%p15_p4) target bundleno = 1 (0x1), region = 112 }

// kernel: shortchunk_forward.9
= control target key start
LH: loop header
LB: loop body
LE: loop exit
PB: predicated region body
PF: predicated region fallthrough
CT: control target
= control target key end

     0   :  { %s2553_s27 = smov 0   ;;  %s2705_s0 = inlined_call_operand.vmem [shape: f32[2,5,5,8], index: 0, kind: input, shape index: {}]   ;;  %s2706_s1 = inlined_call_operand.vmem [shape: f32[2,5,5,8], index: 1, kind: input, shape index: {}]   ;;  %s2707_s2 = inlined_call_operand.vmem [shape: f32[2,5,5,8], index: 2, kind: input, shape index: {}]   ;;  %s2708_s3 = inlined_call_operand.vmem [shape: f32[2,5,5,8], index: 3, kind: input, shape index: {}]   ;;  %s2709_s4 = inlined_call_operand.vmem [shape: f32[3,3,8,16], index: 4, kind: input, shape index: {}]   ;;  %s2710_s5 = inlined_call_operand.vmem [shape: f32[1,8], index: 5, kind: input, shape index: {}]   ;;  %s2711_s6 = inlined_call_operand.vmem [shape: f32[3,3,8,8], index: 6, kind: input, shape index: {}]   ;;  %s2712_s7 = inlined_call_operand.vmem [shape: f32[1,8], index: 7, kind: input, shape index: {}]   ;;  %s2713_s8 = inlined_call_operand.vmem [shape: f32[2,4,4,8], index: 8, kind: output, shape index: {}]  }
   0x1 LB: > { %s2195_s28 = sadd.s32 4294967295, %s2504_s27   ;;  %p2199_p0 = scmp.ge.s32.totalorder %s2504_s27, 1  ;;  %s2504_s27 = sphi %s2553_s27, %s18_s27  }
   0x2   : > { %p292_p1 = scmp.lt.s32.totalorder %s2504_s27, 3 }
   0x4   : > { %p293_p2 = pnand %p2199_p0, %p292_p1 }
   0x5   : > { %v2206_v0 = vld [vmem:[%s2709_s4 + $0x8] sm:$0xff] (!%p293_p2)  ;;  %p341_p3 = scmp.lt.s32.totalorder (!%p293_p2), %s2195_s28, 1  ;;  %v370_v1 = vld [vmem:[%s2709_s4] sm:$0xff] (!%p293_p2)  ;;  %vm383_vm0 = vcmask (!%p293_p2), 64512   ;;  %v2211_v3 = vld [vmem:[%s2709_s4 + $0x10] sm:$0xff] (!%p293_p2)  ;;  %vm1215_vm1 = vcmask (!%p293_p2), 57344  }
   0x6   : > { %296 = sbr.rel (%p293_p2) target bundleno = 596 (0x254), region = 52  ;;  %2329 = vmatprep.subr.mxu0 (!%p293_p2), %v2206_v0  ;;  %v2214_v8 = vld [vmem:[%s2709_s4 + $0x18] sm:$0xff] (!%p293_p2)  ;;  %v2217_v11 = vld [vmem:[%s2709_s4 + $0x20] sm:$0xff] (!%p293_p2)  ;;  %v2220_v14 = vld [vmem:[%s2709_s4 + $0x28] sm:$0xff] (!%p293_p2)  ;;  %v2506_v27 = vmov (!%p293_p2), 0.0   ;;  %vm1235_vm2 = vcmask (!%p293_p2), 60416  }
   0x7   : > { %2330 = vmatpush3.msra.mxu0 (!%p293_p2), %v2206_v0  ;;  %v2227_v17 = vld [vmem:[%s2709_s4 + $0x30] sm:$0xff] (!%p293_p2)  ;;  %v2234_v20 = vld [vmem:[%s2709_s4 + $0x38] sm:$0xff] (!%p293_p2)  ;;  %v2241_v23 = vld [vmem:[%s2709_s4 + $0x40] sm:$0xff] (!%p293_p2)  ;;  %1212 = vst.msk [vmem:[#allocation2] sm:$0xff] (!%p293_p2), %vm383_vm0, %v2506_v27  ;;  %s2507_s24 = smov (!%p293_p2), 120  }
   0x8   : > { %2334 = vmatprep.subr.mxu0 (!%p293_p2), %v370_v1  ;;  %1214 = vst.msk [vmem:[#allocation2 + $0x28] sm:$0xff] (!%p293_p2), %vm383_vm0, %v2506_v27  ;;  %v2245_v28 = vld [vmem:[%s2711_s6 + $0x8] sm:$0xff] (!%p293_p2)  ;;  %v1244_v29 = vld [vmem:[%s2711_s6] sm:$0xff] (!%p293_p2)  ;;  %v2250_v42 = vld [vmem:[%s2711_s6 + $0x10] sm:$0xff] (!%p293_p2) }
   0x9   : > { %1217 = vst.msk [vmem:[#allocation2 + $0x8] sm:$0x1] (!%p293_p2), %vm1215_vm1, %v2506_v27  ;;  %1218 = vst.msk [vmem:[#allocation2 + $0x10] sm:$0x1] (!%p293_p2), %vm1215_vm1, %v2506_v27  ;;  %2374 = vmatprep.subr.mxu1 (!%p293_p2), %v2245_v28  ;;  %v2244_v30 = vld [vmem:[%s2710_s5] ss:$0 sm:$0xff] (!%p293_p2) }
   0xa   : > { %1219 = vst.msk [vmem:[#allocation2 + $0x18] sm:$0x1] (!%p293_p2), %vm1215_vm1, %v2506_v27  ;;  %1220 = vst.msk [vmem:[#allocation2 + $0x20] sm:$0x1] (!%p293_p2), %vm1215_vm1, %v2506_v27  ;;  %2375 = vmatpush3.msra.mxu1 (!%p293_p2), %v2245_v28  ;;  %v2253_v43 = vld [vmem:[%s2711_s6 + $0x18] sm:$0xff] (!%p293_p2)  ;;  %v2256_v48 = vld [vmem:[%s2711_s6 + $0x20] sm:$0xff] (!%p293_p2) }
   0xb   : > { %1223 = vst.msk [vmem:[#allocation2 + $0xd] sm:$0x1] (!%p293_p2), %vm1215_vm1, %v2506_v27  ;;  %1224 = vst.msk [vmem:[#allocation2 + $0x15] sm:$0x1] (!%p293_p2), %vm1215_vm1, %v2506_v27  ;;  %2379 = vmatprep.subr.mxu1 (!%p293_p2), %v1244_v29  ;;  %v2259_v51 = vld [vmem:[%s2711_s6 + $0x28] sm:$0xff] (!%p293_p2)  ;;  %v2262_v54 = vld [vmem:[%s2711_s6 + $0x30] sm:$0xff] (!%p293_p2) }
   0xc   : > { %1225 = vst.msk [vmem:[#allocation2 + $0x1d] sm:$0x1] (!%p293_p2), %vm1215_vm1, %v2506_v27  ;;  %1226 = vst.msk [vmem:[#allocation2 + $0x25] sm:$0x1] (!%p293_p2), %vm1215_vm1, %v2506_v27  ;;  %v2265_v57 = vld [vmem:[%s2711_s6 + $0x38] sm:$0xff] (!%p293_p2)  ;;  %v2268_v60 = vld [vmem:[%s2711_s6 + $0x40] sm:$0xff] (!%p293_p2) }
   0xd   : > { %s2715_s28 = smov (!%p341_p3, %s2195_s28), 1  ;;  %1216 = vst.msk [vmem:[#allocation2] sm:$0x1] %vm1215_vm1, %v2506_v27  ;;  %1221 = vst.msk [vmem:[#allocation2 + $0x28] sm:$0x1] %vm1215_vm1, %v2506_v27 }
   0xe   : > { %s2451_s11 = smul.u32 40, %s2715_s28  ;;  %1222 = vst.msk [vmem:[#allocation2 + $0x5] sm:$0x1] %vm1215_vm1, %v2506_v27  ;;  %1227 = vst.msk [vmem:[#allocation2 + $0x2d] sm:$0x1] %vm1215_vm1, %v2506_v27  ;;  %s2274_s21 = sshll.u32 %s2715_s28, 4 }
  0x10   : > { %s2573_s14 = scalar_lea.vmem %s2705_s0, %s2451_s11  ;;  %s2578_s17 = scalar_lea.vmem %s2706_s1, %s2451_s11 }
  0x11   : > { %v2462_v2 = vld [vmem:[%s2578_s17] ss:$8 sps:$4 sm:$0xff]   ;;  %v2463_v4 = vld [vmem:[%s2578_s17 + $0x10] ss:$8 sps:$4 sm:$0xff]   ;;  %s355_s22 = scalar_lea.vmem %s2707_s2, %s2451_s11  ;;  %s360_s25 = scalar_lea.vmem %s2708_s3, %s2451_s11 }
  0x12   : > { %2331 = vmatprep.mubr.msk.f32.mxu0 %vm383_vm0, %v2462_v2  ;;  %v2464_v5 = vld [vmem:[%s2573_s14] ss:$8 sps:$4 sm:$0xff]   ;;  %v2465_v6 = vld [vmem:[%s2573_s14 + $0x10] ss:$8 sps:$4 sm:$0xff]  }
  0x13   : > { %2332 = vmatmul.mubr.msk.f32.vlgmr.msra.gmra.mrb[0].mxu0 %vm383_vm0, %v2463_v4  ;;  %v2466_v7 = vld [vmem:[%s2573_s14 + $0x1] ss:$8 sps:$4 sm:$0xff]   ;;  %v2467_v9 = vld [vmem:[%s2573_s14 + $0x11] ss:$8 sps:$4 sm:$0xff]  }
  0x14   : > { %2335 = vmatpush3.msra.mxu0 %v370_v1  ;;  %2336 = vmatprep.mubr.msk.f32.mxu0 %vm383_vm0, %v2464_v5  ;;  %v2468_v10 = vld [vmem:[%s355_s22] ss:$8 sps:$4 sm:$0xff]   ;;  %v2469_v12 = vld [vmem:[%s355_s22 + $0x10] ss:$8 sps:$4 sm:$0xff]  }
  0x15   : > { %2339 = vmatprep.subr.mxu0 %v2211_v3  ;;  %v2470_v13 = vld [vmem:[%s360_s25] ss:$8 sps:$4 sm:$0xff]   ;;  %v2471_v15 = vld [vmem:[%s360_s25 + $0x10] ss:$8 sps:$4 sm:$0xff]  }
  0x16   : > { %v2472_v16 = vld [vmem:[%s355_s22 + $0x1] ss:$8 sps:$4 sm:$0xff]   ;;  %v2473_v18 = vld [vmem:[%s355_s22 + $0x11] ss:$8 sps:$4 sm:$0xff]  }
  0x17   : > { %v2474_v19 = vld [vmem:[%s2573_s14 + $0x8] ss:$8 sps:$4 sm:$0xff]   ;;  %v2475_v21 = vld [vmem:[%s2573_s14 + $0x18] ss:$8 sps:$4 sm:$0xff]  }
  0x18   : > { %v2476_v22 = vld [vmem:[%s2578_s17 + $0x8] ss:$8 sps:$4 sm:$0xff]   ;;  %v2477_v24 = vld [vmem:[%s2578_s17 + $0x18] ss:$8 sps:$4 sm:$0xff]  }
  0x19   : > { %v2478_v25 = vld [vmem:[%s2573_s14 + $0x9] ss:$8 sps:$4 sm:$0xff]   ;;  %v2479_v26 = vld [vmem:[%s2573_s14 + $0x19] ss:$8 sps:$4 sm:$0xff]  }
  0x1b   : > { %2337 = vmatmul.mubr.msk.f32.vlgmr.msra.gmra.mrb[0].mxu0 %vm383_vm0, %v2465_v6 }
  0x1c   : > { %2340 = vmatpush3.msra.mxu0 %v2211_v3  ;;  %2341 = vmatprep.mubr.msk.f32.mxu0 %vm383_vm0, %v2466_v7  ;;  %v2271_v3 = vld [vmem:[%s2712_s7] ss:$0 sm:$0xff] }
  0x1d   : > { %2344 = vmatprep.subr.mxu0 %v2214_v8 }
  0x23   : > { %2342 = vmatmul.mubr.msk.f32.vlgmr.msra.gmra.mrb[0].mxu0 %vm383_vm0, %v2467_v9 }
  0x24   : > { %2345 = vmatpush3.msra.mxu0 %v2214_v8  ;;  %2346 = vmatprep.mubr.msk.f32.mxu0 %vm383_vm0, %v2468_v10 }
  0x25   : > { %2349 = vmatprep.subr.mxu0 %v2217_v11 }
  0x2b   : > { %2347 = vmatmul.mubr.msk.f32.vlgmr.msra.gmra.mrb[0].mxu0 %vm383_vm0, %v2469_v12 }
  0x2c   : > { %2350 = vmatpush3.msra.mxu0 %v2217_v11  ;;  %2351 = vmatprep.mubr.msk.f32.mxu0 %vm383_vm0, %v2470_v13 }
  0x2d   : > { %2354 = vmatprep.subr.mxu0 %v2220_v14 }
  0x33   : > { %2352 = vmatmul.mubr.msk.f32.vlgmr.msra.gmra.mrb[0].mxu0 %vm383_vm0, %v2471_v15 }
  0x34   : > { %2355 = vmatpush3.msra.mxu0 %v2220_v14  ;;  %2356 = vmatprep.mubr.msk.f32.mxu0 %vm383_vm0, %v2472_v16 }
  0x35   : > { %2359 = vmatprep.subr.mxu0 %v2227_v17 }
  0x3b   : > { %2357 = vmatmul.mubr.msk.f32.vlgmr.msra.gmra.mrb[0].mxu0 %vm383_vm0, %v2473_v18 }
  0x3c   : > { %2360 = vmatpush3.msra.mxu0 %v2227_v17  ;;  %2361 = vmatprep.mubr.msk.f32.mxu0 %vm383_vm0, %v2474_v19 }
  0x3d   : > { %2364 = vmatprep.subr.mxu0 %v2234_v20 }
  0x43   : > { %2362 = vmatmul.mubr.msk.f32.vlgmr.msra.gmra.mrb[0].mxu0 %vm383_vm0, %v2475_v21 }
  0x44   : > { %2365 = vmatpush3.msra.mxu0 %v2234_v20  ;;  %2366 = vmatprep.mubr.msk.f32.mxu0 %vm383_vm0, %v2476_v22 }
  0x45   : > { %2369 = vmatprep.subr.mxu0 %v2241_v23 }
  0x4b   : > { %2367 = vmatmul.mubr.msk.f32.vlgmr.msra.gmra.mrb[0].mxu0 %vm383_vm0, %v2477_v24 }
  0x4c   : > { %2370 = vmatpush3.msra.mxu0 %v2241_v23  ;;  %2371 = vmatprep.mubr.msk.f32.mxu0 %vm383_vm0, %v2478_v25 }
  0x53   : > { %2372 = vmatmul.mubr.msk.f32.vlgmr.msra.gmra.mrb[0].mxu0 %vm383_vm0, %v2479_v26 }
 0x126   : > { %v2373_v31 = vpop.f32.mrb[0].mxu0 }
 0x127   : > { %v1190_v32 = vpop.f32.mrb[1].mxu0  ;;  %v1209_v33 = vadd.f32 %v2373_v31, %v2244_v30 }
 0x128   : > { %v1208_v34 = vadd.f32 %v2244_v30, %v1190_v32  ;;  %2075 = vrot.lane.b32.xlu0 %v1190_v32, %s2507_s24 }
 0x129   : > { %v1211_v35 = vmax.f32 %v1209_v33, 0.0 }
 0x12a   : > { %v1210_v36 = vmax.f32 %v1208_v34, 0.0 }
 0x12b   : > { %v1231_v37 = vcombine.high %v1211_v35, %v1211_v35  ;;  %1238 = vst.msk [vmem:[#allocation2 + $0x19] sm:$0xf] %vm1235_vm2, %v1211_v35 }
 0x12c   : > { %v1230_v38 = vcombine.high %v1210_v36, %v1210_v36  ;;  %1236 = vst.msk [vmem:[#allocation2 + $0x9] sm:$0xf] %vm1235_vm2, %v1210_v36  ;;  %2077 = vrot.lane.b32.xlu0 %v2373_v31, %s2507_s24  ;;  %s365_s24 = scalar_lea.vmem %s2713_s8, %s2274_s21 }
 0x12d   : > { %1239 = vst.msk [vmem:[#allocation2 + $0x21] sm:$0xf] %vm1235_vm2, %v1231_v37 }
 0x12e   : > { %1237 = vst.msk [vmem:[#allocation2 + $0x11] sm:$0xf] %vm1235_vm2, %v1230_v38 }
 0x133   : > { %v2480_v39 = vld [vmem:[#allocation2 + $0x1] ss:$8 sps:$4 sm:$0xff]  }
 0x134   : > { %2376 = vmatprep.mubr.msk.f32.mxu1 %vm383_vm0, %v2480_v39  ;;  %v2482_v41 = vld [vmem:[#allocation2] ss:$8 sps:$4 sm:$0xff]  }
 0x135   : > { %v2481_v40 = vld [vmem:[#allocation2 + $0x11] ss:$8 sps:$4 sm:$0xff]   ;;  %v2484_v45 = vld [vmem:[#allocation2 + $0x2] ss:$8 sps:$4 sm:$0xff]  }
 0x136   : > { %2377 = vmatmul.mubr.msk.f32.vlgmr.msra.gmra.mrb[0].mxu1 %vm383_vm0, %v2481_v40  ;;  %v2483_v44 = vld [vmem:[#allocation2 + $0x10] ss:$8 sps:$4 sm:$0xff]   ;;  %v2493_v58 = vld [vmem:[#allocation2 + $0x20] ss:$8 sps:$4 sm:$0xff]  }
 0x137   : > { %2380 = vmatpush3.msra.mxu1 %v1244_v29  ;;  %2381 = vmatprep.mubr.msk.f32.mxu1 %vm383_vm0, %v2482_v41  ;;  %v2485_v46 = vld [vmem:[#allocation2 + $0x12] ss:$8 sps:$4 sm:$0xff]   ;;  %v2495_v61 = vld [vmem:[#allocation2 + $0x21] ss:$8 sps:$4 sm:$0xff]  }
 0x138   : > { %2384 = vmatprep.subr.mxu1 %v2250_v42  ;;  %v2486_v47 = vld [vmem:[#allocation2 + $0x8] ss:$8 sps:$4 sm:$0xff]   ;;  %v2487_v49 = vld [vmem:[#allocation2 + $0x18] ss:$8 sps:$4 sm:$0xff]  }
 0x139   : > { %v2488_v50 = vld [vmem:[#allocation2 + $0x9] ss:$8 sps:$4 sm:$0xff]   ;;  %v2489_v52 = vld [vmem:[#allocation2 + $0x19] ss:$8 sps:$4 sm:$0xff]  }
 0x13a   : > { %v2490_v53 = vld [vmem:[#allocation2 + $0xa] ss:$8 sps:$4 sm:$0xff]   ;;  %v2491_v55 = vld [vmem:[#allocation2 + $0x1a] ss:$8 sps:$4 sm:$0xff]  }
 0x13b   : > { %v2492_v56 = vld [vmem:[#allocation2 + $0x10] ss:$8 sps:$4 sm:$0xff]   ;;  %v2497_v63 = vld [vmem:[#allocation2 + $0x22] ss:$8 sps:$4 sm:$0xff]  }
 0x13c   : > { %v2494_v59 = vld [vmem:[#allocation2 + $0x11] ss:$8 sps:$4 sm:$0xff]  }
 0x13d   : > { %v2496_v62 = vld [vmem:[#allocation2 + $0x12] ss:$8 sps:$4 sm:$0xff]  }
 0x13e   : > { %2382 = vmatmul.mubr.msk.f32.vlgmr.msra.gmra.mrb[0].mxu1 %vm383_vm0, %v2483_v44 }
 0x13f   : > { %2385 = vmatpush3.msra.mxu1 %v2250_v42  ;;  %2386 = vmatprep.mubr.msk.f32.mxu1 %vm383_vm0, %v2484_v45 }
 0x140   : > { %2389 = vmatprep.subr.mxu1 %v2253_v43 }
 0x146   : > { %2387 = vmatmul.mubr.msk.f32.vlgmr.msra.gmra.mrb[0].mxu1 %vm383_vm0, %v2485_v46 }
 0x147   : > { %2390 = vmatpush3.msra.mxu1 %v2253_v43  ;;  %2391 = vmatprep.mubr.msk.f32.mxu1 %vm383_vm0, %v2486_v47 }
 0x148   : > { %2394 = vmatprep.subr.mxu1 %v2256_v48 }
 0x14e   : > { %2392 = vmatmul.mubr.msk.f32.vlgmr.msra.gmra.mrb[0].mxu1 %vm383_vm0, %v2487_v49 }
 0x14f   : > { %2395 = vmatpush3.msra.mxu1 %v2256_v48  ;;  %2396 = vmatprep.mubr.msk.f32.mxu1 %vm383_vm0, %v2488_v50 }
 0x150   : > { %2399 = vmatprep.subr.mxu1 %v2259_v51 }
 0x156   : > { %2397 = vmatmul.mubr.msk.f32.vlgmr.msra.gmra.mrb[0].mxu1 %vm383_vm0, %v2489_v52 }
 0x157   : > { %2400 = vmatpush3.msra.mxu1 %v2259_v51  ;;  %2401 = vmatprep.mubr.msk.f32.mxu1 %vm383_vm0, %v2490_v53 }
 0x158   : > { %2404 = vmatprep.subr.mxu1 %v2262_v54 }
 0x15e   : > { %2402 = vmatmul.mubr.msk.f32.vlgmr.msra.gmra.mrb[0].mxu1 %vm383_vm0, %v2491_v55 }
 0x15f   : > { %2405 = vmatpush3.msra.mxu1 %v2262_v54  ;;  %2406 = vmatprep.mubr.msk.f32.mxu1 %vm383_vm0, %v2492_v56 }
 0x160   : > { %2409 = vmatprep.subr.mxu1 %v2265_v57 }
 0x166   : > { %2407 = vmatmul.mubr.msk.f32.vlgmr.msra.gmra.mrb[0].mxu1 %vm383_vm0, %v2493_v58 }
 0x167   : > { %2410 = vmatpush3.msra.mxu1 %v2265_v57  ;;  %2411 = vmatprep.mubr.msk.f32.mxu1 %vm383_vm0, %v2494_v59 }
 0x168   : > { %2414 = vmatprep.subr.mxu1 %v2268_v60 }
 0x16e   : > { %2412 = vmatmul.mubr.msk.f32.vlgmr.msra.gmra.mrb[0].mxu1 %vm383_vm0, %v2495_v61 }
 0x16f   : > { %2415 = vmatpush3.msra.mxu1 %v2268_v60  ;;  %2416 = vmatprep.mubr.msk.f32.mxu1 %vm383_vm0, %v2496_v62 }
 0x176   : > { %2417 = vmatmul.mubr.msk.f32.vlgmr.msra.gmra.mrb[0].mxu1 %vm383_vm0, %v2497_v63 }
 0x19a   : > { %v2076_v0 = vpop.permute.xlu0 %2075 }
 0x19e   : > { %v2078_v1 = vpop.permute.xlu0 %2077 }
 0x249   : > { %v2418_v2 = vpop.f32.mrb[0].mxu1 }
 0x24a   : > { %v2082_v4 = vadd.f32 %v2418_v2, %v2078_v1  ;;  %v2062_v5 = vpop.f32.mrb[1].mxu1 }
 0x24b   : > { %v2081_v6 = vadd.f32 %v2076_v0, %v2062_v5 }
 0x24c   : > { %v2091_v7 = vadd.f32 %v2271_v3, %v2082_v4 }
 0x24d   : > { %v2090_v8 = vadd.f32 %v2271_v3, %v2081_v6 }
 0x24e   : > { %v2093_v9 = vmax.f32 %v2091_v7, 0.0 }
 0x24f   : > { %v2092_v10 = vmax.f32 %v2090_v8, 0.0 }
 0x250   : > { %v2097_v11 = vcombine.high %v2093_v9, %v2093_v9  ;;  %2102 = vst.msk [vmem:[%s365_s24 + $0x8] sm:$0xf] %vm1235_vm2, %v2093_v9 }
 0x251   : > { %v2096_v12 = vcombine.high %v2092_v10, %v2092_v10  ;;  %2100 = vst.msk [vmem:[%s365_s24] sm:$0xf] %vm1235_vm2, %v2092_v10 }
 0x252   : > { %2103 = vst.msk [vmem:[%s365_s24 + $0xc] sm:$0xf] %vm1235_vm2, %v2097_v11 }
 0x253   : > { %2101 = vst.msk [vmem:[%s365_s24 + $0x4] sm:$0xf] %vm1235_vm2, %v2096_v12 }
 0x254 PF: > { %s18_s27 = sadd.s32 1, %s2504_s27  }
 0x255   : > { %p15_p4 = scmp.ge.s32.totalorder %s18_s27, 4  }
 0x257   :  { %17 = sbr.rel (!%p15_p4) target bundleno = 1 (0x1), region = 112 }

// kernel: shortchunk_forward.11
= control target key start
LH: loop header
LB: loop body
LE: loop exit
PB: predicated region body
PF: predicated region fallthrough
CT: control target
= control target key end

     0   :  { %s2261_s27 = smov 0   ;;  %s2511_s0 = inlined_call_operand.vmem [shape: f32[2,2,2,16], index: 0, kind: input, shape index: {}]   ;;  %s2512_s1 = inlined_call_operand.vmem [shape: f32[2,2,2,16], index: 1, kind: input, shape index: {}]   ;;  %s2513_s2 = inlined_call_operand.vmem [shape: f32[2,2,2,16], index: 2, kind: input, shape index: {}]   ;;  %s2514_s3 = inlined_call_operand.vmem [shape: f32[2,2,2,16], index: 3, kind: input, shape index: {}]   ;;  %s2515_s4 = inlined_call_operand.vmem [shape: f32[3,3,16,32], index: 4, kind: input, shape index: {}]   ;;  %s2516_s5 = inlined_call_operand.vmem [shape: f32[1,16], index: 5, kind: input, shape index: {}]   ;;  %s2517_s6 = inlined_call_operand.vmem [shape: f32[3,3,16,16], index: 6, kind: input, shape index: {}]   ;;  %s2518_s7 = inlined_call_operand.vmem [shape: f32[1,16], index: 7, kind: input, shape index: {}]   ;;  %s2519_s8 = inlined_call_operand.vmem [shape: f32[2,1,1,16], index: 8, kind: output, shape index: {}]  }
   0x1 LB: > { %s1870_s28 = sadd.s32 4294967295, %s2210_s27   ;;  %p1874_p0 = scmp.ge.s32.totalorder %s2210_s27, 1  ;;  %s2210_s27 = sphi %s2261_s27, %s18_s27  }
   0x2   : > { %p292_p1 = scmp.lt.s32.totalorder %s2210_s27, 3 }
   0x4   : > { %p293_p2 = pnand %p1874_p0, %p292_p1 }
   0x5   : > { %v1883_v0 = vld [vmem:[%s2515_s4 + $0x10] sm:$0xff] (!%p293_p2)  ;;  %v1884_v1 = vld [vmem:[%s2515_s4 + $0x18] sm:$0xff] (!%p293_p2)  ;;  %p339_p3 = scmp.lt.s32.totalorder (!%p293_p2), %s1870_s28, 1  ;;  %v2212_v2 = vmov (!%p293_p2), 0.0|0.0   ;;  %vm2213_vm0 = vmmov (!%p293_p2), 0   ;;  %v2214_v4 = vmov (!%p293_p2), 0.0  }
   0x6   : > { %296 = sbr.rel (%p293_p2) target bundleno = 542 (0x21e), region = 52  ;;  %2122 = vmatprep.subr.bf16.mxu0 (!%p293_p2), %v2212_v2  ;;  %v2123_v3 = vpack.c.bf16 (!%p293_p2), %v1884_v1, %v1883_v0  ;;  %2000 = vmatprep.mubr.msk.f32.mxu0 (!%p293_p2), %vm2213_vm0, %v2214_v4  ;;  %vm369_vm1 = vcmask (!%p293_p2), 130048   ;;  %v363_v5 = vld [vmem:[%s2515_s4] sm:$0xff] (!%p293_p2)  ;;  %v364_v6 = vld [vmem:[%s2515_s4 + $0x8] sm:$0xff] (!%p293_p2)  ;;  %vm1070_vm2 = vcmask (!%p293_p2), 122880   ;;  %v1911_v11 = vld [vmem:[%s2517_s6 + $0x10] sm:$0xff] (!%p293_p2) }
   0x7   : > { %1067 = vst.msk [vmem:[#allocation2] sm:$0xff] (!%p293_p2), %vm369_vm1, %v2214_v4  ;;  %1069 = vst.msk [vmem:[#allocation2 + $0x10] sm:$0xff] (!%p293_p2), %vm369_vm1, %v2214_v4  ;;  %2149 = vmatprep.subr.bf16.mxu1 (!%p293_p2), %v2212_v2  ;;  %2063 = vmatprep.mubr.msk.f32.mxu1 (!%p293_p2), %vm2213_vm0, %v2214_v4  ;;  %v2126_v7 = vpack.c.bf16 (!%p293_p2), %v364_v6, %v363_v5  ;;  %v1887_v9 = vld [vmem:[%s2515_s4 + $0x20] sm:$0xff] (!%p293_p2)  ;;  %v1888_v10 = vld [vmem:[%s2515_s4 + $0x28] sm:$0xff] (!%p293_p2)  ;;  %s2215_s24 = smov (!%p293_p2), 112  }
   0x8   : > { %1072 = vst.msk [vmem:[#allocation2 + $0x8] sm:$0x1] (!%p293_p2), %vm1070_vm2, %v2214_v4  ;;  %1075 = vst.msk [vmem:[#allocation2 + $0xa] sm:$0x1] (!%p293_p2), %vm1070_vm2, %v2214_v4  ;;  %2124 = vmatpush3.bf16.msra.mxu0 (!%p293_p2), %v2123_v3  ;;  %v1912_v12 = vld [vmem:[%s2517_s6 + $0x18] sm:$0xff] (!%p293_p2)  ;;  %v1080_v14 = vld [vmem:[%s2517_s6] sm:$0xff] (!%p293_p2)  ;;  %v2129_v17 = vpack.c.bf16 (!%p293_p2), %v1888_v10, %v1887_v9 }
   0x9   : > { %1071 = vst.msk [vmem:[#allocation2] sm:$0x1] (!%p293_p2), %vm1070_vm2, %v2214_v4  ;;  %1073 = vst.msk [vmem:[#allocation2 + $0x10] sm:$0x1] (!%p293_p2), %vm1070_vm2, %v2214_v4  ;;  %2125 = vmatprep.subr.bf16.mxu0 (!%p293_p2), %v2212_v2  ;;  %v2150_v13 = vpack.c.bf16 (!%p293_p2), %v1912_v12, %v1911_v11  ;;  %v1081_v15 = vld [vmem:[%s2517_s6 + $0x8] sm:$0xff] (!%p293_p2)  ;;  %v1915_v20 = vld [vmem:[%s2517_s6 + $0x20] sm:$0xff] (!%p293_p2) }
   0xa   : > { %1074 = vst.msk [vmem:[#allocation2 + $0x2] sm:$0x1] (!%p293_p2), %vm1070_vm2, %v2214_v4  ;;  %1076 = vst.msk [vmem:[#allocation2 + $0x12] sm:$0x1] (!%p293_p2), %vm1070_vm2, %v2214_v4  ;;  %v2153_v19 = vpack.c.bf16 (!%p293_p2), %v1081_v15, %v1080_v14  ;;  %v1916_v21 = vld [vmem:[%s2517_s6 + $0x28] sm:$0xff] (!%p293_p2)  ;;  %v1890_v22 = vld [vmem:[%s2515_s4 + $0x30] sm:$0xff] (!%p293_p2) }
   0xb   : > { %2151 = vmatpush3.bf16.msra.mxu1 (!%p293_p2), %v2150_v13  ;;  %v1891_v23 = vld [vmem:[%s2515_s4 + $0x38] sm:$0xff] (!%p293_p2)  ;;  %v2156_v25 = vpack.c.bf16 (!%p293_p2), %v1916_v21, %v1915_v20  ;;  %v1918_v26 = vld [vmem:[%s2517_s6 + $0x30] sm:$0xff] (!%p293_p2)  ;;  %v1893_v32 = vld [vmem:[%s2515_s4 + $0x40] sm:$0xff] (!%p293_p2) }
   0xc   : > { %2152 = vmatprep.subr.bf16.mxu1 (!%p293_p2), %v2212_v2  ;;  %v1919_v27 = vld [vmem:[%s2517_s6 + $0x38] sm:$0xff] (!%p293_p2)  ;;  %v2132_v29 = vpack.c.bf16 (!%p293_p2), %v1891_v23, %v1890_v22  ;;  %v1894_v33 = vld [vmem:[%s2515_s4 + $0x48] sm:$0xff] (!%p293_p2)  ;;  %v1896_v36 = vld [vmem:[%s2515_s4 + $0x50] sm:$0xff] (!%p293_p2) }
   0xd   : > { %s2521_s28 = smov (!%p339_p3, %s1870_s28), 1  ;;  %v2159_v31 = vpack.c.bf16 %v1919_v27, %v1918_v26  ;;  %v2135_v35 = vpack.c.bf16 %v1894_v33, %v1893_v32  ;;  %v1897_v37 = vld [vmem:[%s2515_s4 + $0x58] sm:$0xff]  ;;  %v1900_v40 = vld [vmem:[%s2515_s4 + $0x60] sm:$0xff]  ;;  %v1901_v41 = vld [vmem:[%s2515_s4 + $0x68] sm:$0xff] }
   0xe   : > { %s2307_s15 = sshll.u32 %s2521_s28, 2  ;;  %v1082_v18 = vld [vmem:[#allocation2 + $0x1] sm:$0x1]  ;;  %v2138_v39 = vpack.c.bf16 %v1897_v37, %v1896_v36  ;;  %v2141_v43 = vpack.c.bf16 %v1901_v41, %v1900_v40  ;;  %v1904_v44 = vld [vmem:[%s2515_s4 + $0x70] sm:$0xff]  ;;  %v1905_v45 = vld [vmem:[%s2515_s4 + $0x78] sm:$0xff]  ;;  %s361_s25 = scalar_lea.vmem %s2519_s8, %s2521_s28 }
   0xf   : > { %s2313_s18 = scalar_lea.vmem %s2512_s1, %s2307_s15  ;;  %s2327_s23 = scalar_lea.vmem %s2511_s0, %s2307_s15  ;;  %2064 = vmatmul.mubr.msk.f32.vlgmr.msra.gmra.mrb[0].mxu1 %vm369_vm1, %v1082_v18  ;;  %v2144_v47 = vpack.c.bf16 %v1905_v45, %v1904_v44  ;;  %v1908_v48 = vld [vmem:[%s2515_s4 + $0x80] sm:$0xff]  ;;  %v1909_v49 = vld [vmem:[%s2515_s4 + $0x88] sm:$0xff]  ;;  %v1925_v9 = vld [vmem:[%s2517_s6 + $0x58] sm:$0xff] }
  0x10   : > { %v365_v8 = vld [vmem:[%s2313_s18] sm:$0x1]  ;;  %2154 = vmatpush3.bf16.msra.mxu1 %v2153_v19  ;;  %2070 = vmatprep.mubr.msk.f32.mxu1 %vm2213_vm0, %v2214_v4  ;;  %v516_v28 = vld [vmem:[%s2327_s23 + $0x1] sm:$0x1]  ;;  %s353_s11 = scalar_lea.vmem %s2513_s2, %s2307_s15  ;;  %s358_s20 = scalar_lea.vmem %s2514_s3, %s2307_s15  ;;  %v1899_v46 = vld [vmem:[%s2327_s23 + $0x2] sm:$0x1]  ;;  %v2147_v51 = vpack.c.bf16 %v1909_v49, %v1908_v48 }
  0x11   : > { %2001 = vmatmul.mubr.msk.f32.vlgmr.msra.gmra.mrb[0].mxu0 %vm369_vm1, %v365_v8  ;;  %v362_v16 = vld [vmem:[%s2327_s23] sm:$0x1]  ;;  %2155 = vmatprep.subr.bf16.mxu1 %v2212_v2  ;;  %v1232_v30 = vld [vmem:[#allocation2 + $0x2] sm:$0x1]  ;;  %v750_v42 = vld [vmem:[%s353_s11 + $0x1] sm:$0x1] }
  0x12   : > { %2127 = vmatpush3.bf16.msra.mxu0 %v2126_v7  ;;  %2007 = vmatprep.mubr.msk.f32.mxu0 %vm2213_vm0, %v2214_v4  ;;  %v1079_v24 = vld [vmem:[#allocation2] sm:$0x1]  ;;  %v1903_v50 = vld [vmem:[%s2313_s18 + $0x2] sm:$0x1]  ;;  %v1907_v52 = vld [vmem:[%s2327_s23 + $0x3] sm:$0x1] }
  0x13   : > { %2128 = vmatprep.subr.bf16.mxu0 %v2212_v2  ;;  %2071 = vmatmul.mubr.msk.f32.vlgmr.msra.gmra.mrb[2].mxu1 %vm369_vm1, %v1079_v24  ;;  %v594_v34 = vld [vmem:[%s353_s11] sm:$0x1]  ;;  %v1310_v53 = vld [vmem:[#allocation2 + $0x8] sm:$0x1]  ;;  %v1924_v8 = vld [vmem:[%s2517_s6 + $0x50] sm:$0xff] }
  0x14   : > { %2157 = vmatpush3.bf16.msra.mxu1 %v2156_v25  ;;  %2077 = vmatprep.mubr.msk.f32.mxu1 %vm2213_vm0, %v2214_v4  ;;  %v672_v38 = vld [vmem:[%s358_s20] sm:$0x1]  ;;  %v1922_v55 = vld [vmem:[%s2517_s6 + $0x48] sm:$0xff]  ;;  %v2165_v10 = vpack.c.bf16 %v1925_v9, %v1924_v8  ;;  %v1544_v18 = vld [vmem:[#allocation2 + $0x10] sm:$0x1] }
  0x15   : > { %2158 = vmatprep.subr.bf16.mxu1 %v2212_v2  ;;  %v1921_v54 = vld [vmem:[%s2517_s6 + $0x40] sm:$0xff]  ;;  %v1928_v12 = vld [vmem:[%s2517_s6 + $0x68] sm:$0xff]  ;;  %v1622_v22 = vld [vmem:[#allocation2 + $0x11] sm:$0x1] }
  0x16   : > { %v2162_v56 = vpack.c.bf16 %v1922_v55, %v1921_v54  ;;  %v1064_v1 = vld [vmem:[%s2516_s5] sm:$0x1]  ;;  %v1466_v14 = vld [vmem:[#allocation2 + $0xa] sm:$0x1]  ;;  %v1700_v24 = vld [vmem:[#allocation2 + $0x12] sm:$0x1] }
  0x17   : > { %2078 = vmatmul.mubr.msk.f32.vlgmr.msra.gmra.mrb[4].mxu1 %vm369_vm1, %v1232_v30  ;;  %v1927_v11 = vld [vmem:[%s2517_s6 + $0x60] sm:$0xff]  ;;  %v1934_v21 = vld [vmem:[%s2517_s6 + $0x88] sm:$0xff] }
  0x18   : > { %2160 = vmatpush3.bf16.msra.mxu1 %v2159_v31  ;;  %2084 = vmatprep.mubr.msk.f32.mxu1 %vm2213_vm0, %v2214_v4  ;;  %v2168_v15 = vpack.c.bf16 %v1928_v12, %v1927_v11  ;;  %v1933_v20 = vld [vmem:[%s2517_s6 + $0x80] sm:$0xff] }
  0x19   : > { %2008 = vmatmul.mubr.msk.f32.vlgmr.msra.gmra.mrb[0].mxu0 %vm369_vm1, %v362_v16  ;;  %2161 = vmatprep.subr.bf16.mxu1 %v2212_v2  ;;  %v1930_v16 = vld [vmem:[%s2517_s6 + $0x70] sm:$0xff]  ;;  %v2174_v23 = vpack.c.bf16 %v1934_v21, %v1933_v20 }
  0x1a   : > { %2130 = vmatpush3.bf16.msra.mxu0 %v2129_v17  ;;  %2014 = vmatprep.mubr.msk.f32.mxu0 %vm2213_vm0, %v2214_v4  ;;  %v1931_v17 = vld [vmem:[%s2517_s6 + $0x78] sm:$0xff] }
  0x1b   : > { %2131 = vmatprep.subr.bf16.mxu0 %v2212_v2  ;;  %2085 = vmatmul.mubr.msk.f32.vlgmr.msra.gmra.mrb[6].mxu1 %vm369_vm1, %v1310_v53  ;;  %v2171_v19 = vpack.c.bf16 %v1931_v17, %v1930_v16 }
  0x1c   : > { %2091 = vmatprep.mubr.msk.f32.mxu1 %vm2213_vm0, %v2214_v4  ;;  %2163 = vmatpush3.bf16.msra.mxu1 %v2162_v56 }
  0x1d   : > { %2164 = vmatprep.subr.bf16.mxu1 %v2212_v2 }
  0x21   : > { %2015 = vmatmul.mubr.msk.f32.vlgmr.msra.gmra.mrb[0].mxu0 %vm369_vm1, %v516_v28 }
  0x22   : > { %2133 = vmatpush3.bf16.msra.mxu0 %v2132_v29  ;;  %2021 = vmatprep.mubr.msk.f32.mxu0 %vm2213_vm0, %v2214_v4 }
  0x23   : > { %2134 = vmatprep.subr.bf16.mxu0 %v2212_v2 }
  0x29   : > { %2022 = vmatmul.mubr.msk.f32.vlgmr.msra.gmra.mrb[0].mxu0 %vm369_vm1, %v594_v34 }
  0x2a   : > { %2136 = vmatpush3.bf16.msra.mxu0 %v2135_v35  ;;  %2028 = vmatprep.mubr.msk.f32.mxu0 %vm2213_vm0, %v2214_v4 }
  0x2b   : > { %2137 = vmatprep.subr.bf16.mxu0 %v2212_v2 }
  0x31   : > { %2029 = vmatmul.mubr.msk.f32.vlgmr.msra.gmra.mrb[0].mxu0 %vm369_vm1, %v672_v38 }
  0x32   : > { %2139 = vmatpush3.bf16.msra.mxu0 %v2138_v39  ;;  %2035 = vmatprep.mubr.msk.f32.mxu0 %vm2213_vm0, %v2214_v4 }
  0x33   : > { %2140 = vmatprep.subr.bf16.mxu0 %v2212_v2 }
  0x39   : > { %2036 = vmatmul.mubr.msk.f32.vlgmr.msra.gmra.mrb[0].mxu0 %vm369_vm1, %v750_v42  ;;  %v1783_v42 = vld [vmem:[%s2518_s7] sm:$0x1] }
  0x3a   : > { %2142 = vmatpush3.bf16.msra.mxu0 %v2141_v43  ;;  %2042 = vmatprep.mubr.msk.f32.mxu0 %vm2213_vm0, %v2214_v4 }
  0x3b   : > { %2143 = vmatprep.subr.bf16.mxu0 %v2212_v2 }
  0x41   : > { %2043 = vmatmul.mubr.msk.f32.vlgmr.msra.gmra.mrb[0].mxu0 %vm369_vm1, %v1899_v46 }
  0x42   : > { %2145 = vmatpush3.bf16.msra.mxu0 %v2144_v47  ;;  %2049 = vmatprep.mubr.msk.f32.mxu0 %vm2213_vm0, %v2214_v4 }
  0x43   : > { %2146 = vmatprep.subr.bf16.mxu0 %v2212_v2 }
  0x49   : > { %2050 = vmatmul.mubr.msk.f32.vlgmr.msra.gmra.mrb[0].mxu0 %vm369_vm1, %v1903_v50 }
  0x4a   : > { %2148 = vmatpush3.bf16.msra.mxu0 %v2147_v51  ;;  %2056 = vmatprep.mubr.msk.f32.mxu0 %vm2213_vm0, %v2214_v4 }
  0x51   : > { %2057 = vmatmul.mubr.msk.f32.vlgmr.msra.gmra.mrb[0].mxu0 %vm369_vm1, %v1907_v52 }
  0xe2   : > { %v1155_v57 = vpop.f32.mrb[0].mxu1 }
  0xe3   : > { %v2065_v58 = vpop.f32.mrb[1].mxu1 }
  0xe6   : > { %v1228_v59 = vpop.f32.mrb[2].mxu1 }
  0xe7   : > { %v1229_v60 = vadd.f32 %v1228_v59, %v1155_v57  ;;  %v2072_v61 = vpop.f32.mrb[3].mxu1 }
  0xea   : > { %v1305_v62 = vpop.f32.mrb[4].mxu1 }
  0xeb   : > { %v1309_v63 = vadd.f32 %v1305_v62, %v1229_v60  ;;  %v2079_v0 = vpop.f32.mrb[5].mxu1 }
  0xee   : > { %v1383_v25 = vpop.f32.mrb[6].mxu1 }
  0xef   : > { %v1387_v26 = vadd.f32 %v1383_v25, %v1309_v63  ;;  %v2086_v27 = vpop.f32.mrb[7].mxu1 }
 0x124   : > { %v1059_v3 = vpop.f32.mrb[0].mxu0 }
 0x125   : > { %v1065_v5 = vadd.f32 %v1064_v1, %v1059_v3  ;;  %v2058_v6 = vpop.f32.mrb[1].mxu0  ;;  %1779 = vrot.lane.b32.xlu0 %v1059_v3, %s2215_s24 }
 0x127   : > { %v1066_v7 = vmax.f32 %v1065_v5, 0.0 }
 0x129   : > { %1078 = vst.msk [vmem:[#allocation2 + $0x9] sm:$0x1] %vm1070_vm2, %v1066_v7 }
 0x130   : > { %v1388_v13 = vld [vmem:[#allocation2 + $0x9] sm:$0x1] }
 0x131   : > { %2092 = vmatmul.mubr.msk.f32.vlgmr.msra.gmra.mrb[8].mxu1 %vm369_vm1, %v1388_v13 }
 0x132   : > { %2166 = vmatpush3.bf16.msra.mxu1 %v2165_v10  ;;  %2098 = vmatprep.mubr.msk.f32.mxu1 %vm2213_vm0, %v2214_v4 }
 0x133   : > { %2167 = vmatprep.subr.bf16.mxu1 %v2212_v2 }
 0x135   : > { %2099 = vmatmul.mubr.msk.f32.vlgmr.msra.gmra.mrb[10].mxu1 %vm369_vm1, %v1466_v14 }
 0x136   : > { %2169 = vmatpush3.bf16.msra.mxu1 %v2168_v15  ;;  %2105 = vmatprep.mubr.msk.f32.mxu1 %vm2213_vm0, %v2214_v4 }
 0x137   : > { %2170 = vmatprep.subr.bf16.mxu1 %v2212_v2 }
 0x139   : > { %2106 = vmatmul.mubr.msk.f32.vlgmr.msra.gmra.mrb[12].mxu1 %vm369_vm1, %v1544_v18 }
 0x13a   : > { %2172 = vmatpush3.bf16.msra.mxu1 %v2171_v19  ;;  %2112 = vmatprep.mubr.msk.f32.mxu1 %vm2213_vm0, %v2214_v4 }
 0x13b   : > { %2173 = vmatprep.subr.bf16.mxu1 %v2212_v2 }
 0x13d   : > { %2113 = vmatmul.mubr.msk.f32.vlgmr.msra.gmra.mrb[14].mxu1 %vm369_vm1, %v1622_v22 }
 0x13e   : > { %2175 = vmatpush3.bf16.msra.mxu1 %v2174_v23  ;;  %2119 = vmatprep.mubr.msk.f32.mxu1 %vm2213_vm0, %v2214_v4 }
 0x141   : > { %2120 = vmatmul.mubr.msk.f32.vlgmr.msra.gmra.mrb[16].mxu1 %vm369_vm1, %v1700_v24 }
 0x197   : > { %v1780_v41 = vpop.permute.xlu0 %1779 }
 0x204   : > { %v1461_v28 = vpop.f32.mrb[8].mxu1 }
 0x205   : > { %v1465_v29 = vadd.f32 %v1461_v28, %v1387_v26  ;;  %v2093_v30 = vpop.f32.mrb[9].mxu1 }
 0x208   : > { %v1539_v31 = vpop.f32.mrb[10].mxu1 }
 0x209   : > { %v1543_v32 = vadd.f32 %v1539_v31, %v1465_v29  ;;  %v2100_v33 = vpop.f32.mrb[11].mxu1 }
 0x20c   : > { %v1617_v2 = vpop.f32.mrb[12].mxu1 }
 0x20d   : > { %v1621_v34 = vadd.f32 %v1617_v2, %v1543_v32  ;;  %v2107_v35 = vpop.f32.mrb[13].mxu1 }
 0x210   : > { %v1695_v36 = vpop.f32.mrb[14].mxu1 }
 0x211   : > { %v1699_v37 = vadd.f32 %v1695_v36, %v1621_v34  ;;  %v2114_v38 = vpop.f32.mrb[15].mxu1 }
 0x214   : > { %v1773_v4 = vpop.f32.mrb[16].mxu1 }
 0x215   : > { %v1777_v39 = vadd.f32 %v1773_v4, %v1699_v37  ;;  %v2121_v40 = vpop.f32.mrb[17].mxu1 }
 0x217   : > { %v1782_v43 = vadd.f32 %v1780_v41, %v1777_v39 }
 0x219   : > { %v1784_v44 = vadd.f32 %v1783_v42, %v1782_v43 }
 0x21b   : > { %v1785_v45 = vmax.f32 %v1784_v44, 0.0 }
 0x21d   : > { %1786 = vst.msk [vmem:[%s361_s25] sm:$0x1] %vm1070_vm2, %v1785_v45 }
 0x21e PF: > { %s18_s27 = sadd.s32 1, %s2210_s27  }
 0x21f   : > { %p15_p4 = scmp.ge.s32.totalorder %s18_s27, 4  }
 0x221   :  { %17 = sbr.rel (!%p15_p4) target bundleno = 1 (0x1), region = 111 }

// kernel: shortchunk_forward.15
= control target key start
LH: loop header
LB: loop body
LE: loop exit
PB: predicated region body
PF: predicated region fallthrough
CT: control target
= control target key end

     0   :  { %v34_v3 = vlaneseq  ;;  %v188_v4 = vmov 0.0|0.0   ;;  %vm189_vm0 = vmmov 0   ;;  %v190_v7 = vmov 0.0   ;;  %s246_s0 = inlined_call_operand.vmem [shape: f32[2,1,32], index: 0, kind: input, shape index: {}]   ;;  %s247_s1 = inlined_call_operand.vmem [shape: f32[32,32], index: 1, kind: input, shape index: {}]   ;;  %s248_s2 = inlined_call_operand.vmem [shape: f32[1,32], index: 2, kind: input, shape index: {}]   ;;  %s249_s3 = inlined_call_operand.hbm [shape: f32[2,32], index: 3, kind: output, shape index: {}]  }
   0x1   :  { %v17_v0 = vld [vmem:[%s247_s1] sm:$0xff]  ;;  %v18_v1 = vld [vmem:[%s247_s1 + $0x8] sm:$0xff]  ;;  %v19_v2 = vld [vmem:[%s247_s1 + $0x10] sm:$0xff]  ;;  %153 = vmatprep.subr.bf16.mxu0 %v188_v4  ;;  %150 = vmatprep.mubr.msk.f32.mxu0 %vm189_vm0, %v190_v7  ;;  %v191_v11 = vmov 1966171168  }
   0x2   :  { %v154_v5 = vpack.c.bf16 %v18_v1, %v17_v0  ;;  %v20_v6 = vld [vmem:[%s247_s1 + $0x18] sm:$0xff]  ;;  %v15_v8 = vld [vmem:[%s246_s0] sm:$0x1]  ;;  %v16_v9 = vld [vmem:[%s246_s0 + $0x1] sm:$0x1]  ;;  %v32_v12 = vunpack.c.l.s4 %v191_v11  ;;  %v35_v13 = vshrl.u32 %v34_v3, 7 }
   0x3   :  { %v157_v10 = vpack.c.bf16 %v20_v6, %v19_v2 }
   0x4   :  { %155 = vmatpush3.bf16.msra.mxu0 %v154_v5 }
   0x5   :  { %8 = vsyncpa [#allocation3], 0  ;;  %156 = vmatprep.subr.bf16.mxu0 %v188_v4  ;;  %v30_v14 = vcombine.low %v15_v8, %v16_v9  ;;  %v33_v15 = vunpack.c.0.s8 %v32_v12  ;;  %vm45_vm1 = vcmask 261120   ;;  %v135_v19 = vld [vmem:[%s248_s2] ss:$0 sm:$0xff]  ;;  %s192_s0 = smov [#allocation2]  }
   0x6   :  { %s127_s25 = sshll.u32 %s192_s0, 4  ;;  %vm119_vm2 = vcmask 254976   ;;  %s128_s25 = int_to_ptr.vmem [resolvable:$true] %s127_s25 }
   0x7   :  { %v36_v16 = vsub.s32 %v33_v15, %v35_v13  ;;  %s164_s26 = scalar_lea.vmem %s128_s25, 32  ;;  %p169_p1 = scmp.lt.s32.totalorder %s128_s25, %s128_s25 }
   0x8   :  { %158 = vmatpush3.bf16.msra.mxu0 %v157_v10  ;;  %p165_p0 = scmp.ne.s32.totalorder %s128_s25, %s164_s26  ;;  %p170_p2 = scmp.lt.s32.totalorder %s164_s26, %s164_s26 }
   0x9   :  { %v37_v17 = vrot.slane %v30_v14, %v36_v16 }
   0xa   :  { %p171_p3 = por %p170_p2, %p169_p1 }
   0xb   :  { %v44_v18 = vrot.slane %v37_v17, %v36_v16 }
   0xc   :  { %p172_p4 = pnand %p171_p3, %p165_p0 }
   0xd   :  { %151 = vmatmul.mubr.msk.f32.vlgmr.msra.gmra.mrb[0].mxu0 %vm45_vm1, %v44_v18 }
  0xe0   :  { %v114_v20 = vpop.f32.mrb[0].mxu0 }
  0xe1   :  { %v115_v21 = vadd.f32 %v135_v19, %v114_v20  ;;  %v152_v22 = vpop.f32.mrb[1].mxu0 }
  0xe3   :  { %v118_v23 = vmax.f32 %v115_v21, 0.0 }
  0xe5   :  { %120 = vst.msk [vmem:[#allocation2] sm:$0x3] %vm119_vm2, %v118_v23 }
  0xe6   :  { %175 = shalt.err (!%p172_p4)
}
  0xe7   :  { %s176_s2 = scalar_lea.hbm %s249_s3, 32 }
  0xe8   :  { %p177_p5 = scmp.ne.s32.totalorder %s249_s3, %s176_s2  ;;  %p180_p6 = scmp.lt.u32.totalorder %s176_s2, %s249_s3 }
  0xea   :  { %p182_p7 = pnand %p180_p6, %p177_p5 }
  0xec   :  { %185 = shalt.err (!%p182_p7)
}
  0xed   :  { %130 = dma.vmem_to_hbm [thread:$0]  %s128_s25, 32, %s249_s3, [#allocation3]  }
  0xee   :  { %186 = dma.done.wait [#allocation3], 32  }
  0xef   :  { %187 = vsyncadd [#allocation3], 4294967264 }
  0xf0   :  { %134 = vsyncpa [#allocation3], 1 }

// kernel: shortchunk_forward.14
= control target key start
LH: loop header
LB: loop body
LE: loop exit
PB: predicated region body
PF: predicated region fallthrough
CT: control target
= control target key end

     0   :  { %s2377_s27 = smov 0   ;;  %s2694_s0 = inlined_call_operand.vmem [shape: f32[2,2,2,16], index: 0, kind: input, shape index: {}]   ;;  %s2695_s1 = inlined_call_operand.vmem [shape: f32[2,2,2,16], index: 1, kind: input, shape index: {}]   ;;  %s2696_s2 = inlined_call_operand.vmem [shape: f32[2,2,2,16], index: 2, kind: input, shape index: {}]   ;;  %s2697_s3 = inlined_call_operand.vmem [shape: f32[2,2,2,16], index: 3, kind: input, shape index: {}]   ;;  %s2698_s4 = inlined_call_operand.vmem [shape: f32[3,3,16,64], index: 4, kind: input, shape index: {}]   ;;  %s2699_s5 = inlined_call_operand.vmem [shape: f32[1,32], index: 5, kind: input, shape index: {}]   ;;  %s2700_s6 = inlined_call_operand.vmem [shape: f32[3,3,32,32], index: 6, kind: input, shape index: {}]   ;;  %s2701_s7 = inlined_call_operand.vmem [shape: f32[1,32], index: 7, kind: input, shape index: {}]   ;;  %s2702_s8 = inlined_call_operand.vmem [shape: f32[2,1,1,32], index: 8, kind: output, shape index: {}]  }
   0x1 LB: > { %s1889_s28 = sadd.s32 4294967295, %s2326_s27   ;;  %p1893_p0 = scmp.ge.s32.totalorder %s2326_s27, 1  ;;  %s2326_s27 = sphi %s2377_s27, %s18_s27  }
   0x2   : > { %p292_p1 = scmp.lt.s32.totalorder %s2326_s27, 3 }
   0x4   : > { %p293_p2 = pnand %p1893_p0, %p292_p1 }
   0x5   : > { %v1902_v0 = vld [vmem:[%s2698_s4 + $0x10] sm:$0xff] (!%p293_p2)  ;;  %v1903_v1 = vld [vmem:[%s2698_s4 + $0x18] sm:$0xff] (!%p293_p2)  ;;  %p339_p3 = scmp.lt.s32.totalorder (!%p293_p2), %s1889_s28, 1  ;;  %v2328_v2 = vmov (!%p293_p2), 0.0|0.0   ;;  %vm2329_vm0 = vmmov (!%p293_p2), 0   ;;  %v2330_v4 = vmov (!%p293_p2), 0.0  }
   0x6   : > { %296 = sbr.rel (%p293_p2) target bundleno = 542 (0x21e), region = 52  ;;  %2211 = vmatprep.subr.bf16.mxu0 (!%p293_p2), %v2328_v2  ;;  %v2212_v3 = vpack.c.bf16 (!%p293_p2), %v1903_v1, %v1902_v0  ;;  %2053 = vmatprep.mubr.msk.f32.mxu0 (!%p293_p2), %vm2329_vm0, %v2330_v4  ;;  %v363_v5 = vld [vmem:[%s2698_s4] sm:$0xff] (!%p293_p2)  ;;  %v364_v6 = vld [vmem:[%s2698_s4 + $0x8] sm:$0xff] (!%p293_p2)  ;;  %vm1067_vm1 = vcmask (!%p293_p2), 261120   ;;  %vm1071_vm2 = vcmask (!%p293_p2), 253952   ;;  %vm369_vm3 = vcmask (!%p293_p2), 130048  }
   0x7   : > { %2238 = vmatprep.subr.bf16.mxu1 (!%p293_p2), %v2328_v2  ;;  %2120 = vmatprep.mubr.msk.f32.mxu1 (!%p293_p2), %vm2329_vm0, %v2330_v4  ;;  %1068 = vst.msk [vmem:[#allocation2] sm:$0xff] (!%p293_p2), %vm1067_vm1, %v2330_v4  ;;  %1070 = vst.msk [vmem:[#allocation2 + $0x10] sm:$0xff] (!%p293_p2), %vm1067_vm1, %v2330_v4  ;;  %v2215_v7 = vpack.c.bf16 (!%p293_p2), %v364_v6, %v363_v5  ;;  %v1906_v9 = vld [vmem:[%s2698_s4 + $0x20] sm:$0xff] (!%p293_p2)  ;;  %v1907_v10 = vld [vmem:[%s2698_s4 + $0x28] sm:$0xff] (!%p293_p2)  ;;  %s2331_s25 = smov (!%p293_p2), 96  }
   0x8   : > { %1073 = vst.msk [vmem:[#allocation2 + $0x8] sm:$0x1] (!%p293_p2), %vm1071_vm2, %v2330_v4  ;;  %1076 = vst.msk [vmem:[#allocation2 + $0xa] sm:$0x1] (!%p293_p2), %vm1071_vm2, %v2330_v4  ;;  %2213 = vmatpush3.bf16.msra.mxu0 (!%p293_p2), %v2212_v3  ;;  %v1930_v11 = vld [vmem:[%s2700_s6 + $0x20] sm:$0xff] (!%p293_p2)  ;;  %v1931_v12 = vld [vmem:[%s2700_s6 + $0x28] sm:$0xff] (!%p293_p2)  ;;  %v2218_v17 = vpack.c.bf16 (!%p293_p2), %v1907_v10, %v1906_v9 }
   0x9   : > { %1072 = vst.msk [vmem:[#allocation2] sm:$0x1] (!%p293_p2), %vm1071_vm2, %v2330_v4  ;;  %1074 = vst.msk [vmem:[#allocation2 + $0x10] sm:$0x1] (!%p293_p2), %vm1071_vm2, %v2330_v4  ;;  %2214 = vmatprep.subr.bf16.mxu0 (!%p293_p2), %v2328_v2  ;;  %v2239_v13 = vpack.c.bf16 (!%p293_p2), %v1931_v12, %v1930_v11  ;;  %v1932_v14 = vld [vmem:[%s2700_s6 + $0x30] sm:$0xff] (!%p293_p2)  ;;  %v1933_v15 = vld [vmem:[%s2700_s6 + $0x38] sm:$0xff] (!%p293_p2) }
   0xa   : > { %1075 = vst.msk [vmem:[#allocation2 + $0x2] sm:$0x1] (!%p293_p2), %vm1071_vm2, %v2330_v4  ;;  %1077 = vst.msk [vmem:[#allocation2 + $0x12] sm:$0x1] (!%p293_p2), %vm1071_vm2, %v2330_v4  ;;  %v2242_v18 = vpack.c.bf16 (!%p293_p2), %v1933_v15, %v1932_v14  ;;  %v1081_v19 = vld [vmem:[%s2700_s6] sm:$0xff] (!%p293_p2)  ;;  %v1082_v20 = vld [vmem:[%s2700_s6 + $0x8] sm:$0xff] (!%p293_p2) }
   0xb   : > { %2240 = vmatpush3.bf16.msra.mxu1 (!%p293_p2), %v2239_v13  ;;  %v1909_v21 = vld [vmem:[%s2698_s4 + $0x30] sm:$0xff] (!%p293_p2)  ;;  %v1910_v22 = vld [vmem:[%s2698_s4 + $0x38] sm:$0xff] (!%p293_p2)  ;;  %v2245_v24 = vpack.c.bf16 (!%p293_p2), %v1082_v20, %v1081_v19  ;;  %v1936_v30 = vld [vmem:[%s2700_s6 + $0x40] sm:$0xff] (!%p293_p2) }
   0xc   : > { %2241 = vmatprep.subr.bf16.mxu1 (!%p293_p2), %v2328_v2  ;;  %v1083_v25 = vld [vmem:[%s2700_s6 + $0x10] sm:$0xff] (!%p293_p2)  ;;  %v1084_v26 = vld [vmem:[%s2700_s6 + $0x18] sm:$0xff] (!%p293_p2)  ;;  %v2221_v28 = vpack.c.bf16 (!%p293_p2), %v1910_v22, %v1909_v21  ;;  %v1937_v31 = vld [vmem:[%s2700_s6 + $0x48] sm:$0xff] (!%p293_p2) }
   0xd   : > { %s2704_s28 = smov (!%p339_p3, %s1889_s28), 1  ;;  %v2248_v29 = vpack.c.bf16 %v1084_v26, %v1083_v25  ;;  %v1912_v32 = vld [vmem:[%s2698_s4 + $0x40] sm:$0xff]  ;;  %v1913_v33 = vld [vmem:[%s2698_s4 + $0x48] sm:$0xff]  ;;  %v2251_v35 = vpack.c.bf16 %v1937_v31, %v1936_v30  ;;  %v1938_v36 = vld [vmem:[%s2700_s6 + $0x50] sm:$0xff] }
   0xe   : > { %s2423_s15 = sshll.u32 %s2704_s28, 2  ;;  %v1085_v23 = vld [vmem:[#allocation2 + $0x1] sm:$0x1]  ;;  %v1939_v37 = vld [vmem:[%s2700_s6 + $0x58] sm:$0xff]  ;;  %v2224_v39 = vpack.c.bf16 %v1913_v33, %v1912_v32  ;;  %v1942_v42 = vld [vmem:[%s2700_s6 + $0x68] sm:$0xff] }
   0xf   : > { %s2429_s18 = scalar_lea.vmem %s2695_s1, %s2423_s15  ;;  %s2443_s23 = scalar_lea.vmem %s2694_s0, %s2423_s15  ;;  %2243 = vmatpush3.bf16.msra.mxu1 %v2242_v18  ;;  %v2254_v40 = vpack.c.bf16 %v1939_v37, %v1938_v36  ;;  %v1941_v41 = vld [vmem:[%s2700_s6 + $0x60] sm:$0xff]  ;;  %v1915_v43 = vld [vmem:[%s2698_s4 + $0x50] sm:$0xff]  ;;  %v1916_v44 = vld [vmem:[%s2698_s4 + $0x58] sm:$0xff] }
  0x10   : > { %v365_v8 = vld [vmem:[%s2429_s18] sm:$0x1]  ;;  %2244 = vmatprep.subr.bf16.mxu1 %v2328_v2  ;;  %v516_v27 = vld [vmem:[%s2443_s23 + $0x1] sm:$0x1]  ;;  %s2504_s16 = scalar_lea.vmem %s2696_s2, %s2423_s15  ;;  %s358_s13 = scalar_lea.vmem %s2697_s3, %s2423_s15  ;;  %v2257_v46 = vpack.c.bf16 %v1942_v42, %v1941_v41  ;;  %v1943_v47 = vld [vmem:[%s2700_s6 + $0x70] sm:$0xff]  ;;  %v2227_v50 = vpack.c.bf16 %v1916_v44, %v1915_v43 }
  0x11   : > { %2054 = vmatmul.mubr.msk.f32.vlgmr.msra.gmra.mrb[0].mxu0 %vm369_vm3, %v365_v8  ;;  %v362_v16 = vld [vmem:[%s2443_s23] sm:$0x1]  ;;  %v1237_v45 = vld [vmem:[#allocation2 + $0x2] sm:$0x1]  ;;  %v1944_v48 = vld [vmem:[%s2700_s6 + $0x78] sm:$0xff] }
  0x12   : > { %2216 = vmatpush3.bf16.msra.mxu0 %v2215_v7  ;;  %2060 = vmatprep.mubr.msk.f32.mxu0 %vm2329_vm0, %v2330_v4  ;;  %v1080_v34 = vld [vmem:[#allocation2] sm:$0x1]  ;;  %v2260_v51 = vpack.c.bf16 %v1944_v48, %v1943_v47  ;;  %v1920_v53 = vld [vmem:[%s2698_s4 + $0x68] sm:$0xff]  ;;  %v750_v55 = vld [vmem:[%s2504_s16 + $0x1] sm:$0x1] }
  0x13   : > { %2217 = vmatprep.subr.bf16.mxu0 %v2328_v2  ;;  %2121 = vmatmul.mubr.msk.f32.vlgmr.msra.gmra.mrb[0].mxu1 %vm1067_vm1, %v1085_v23  ;;  %v594_v38 = vld [vmem:[%s2504_s16] sm:$0x1]  ;;  %v1317_v54 = vld [vmem:[#allocation2 + $0x8] sm:$0x1]  ;;  %v1923_v57 = vld [vmem:[%s2698_s4 + $0x70] sm:$0xff] }
  0x14   : > { %2246 = vmatpush3.bf16.msra.mxu1 %v2245_v24  ;;  %2131 = vmatprep.mubr.msk.f32.mxu1 %vm2329_vm0, %v2330_v4  ;;  %v672_v49 = vld [vmem:[%s358_s13] sm:$0x1]  ;;  %v1924_v58 = vld [vmem:[%s2698_s4 + $0x78] sm:$0xff]  ;;  %v1918_v59 = vld [vmem:[%s2443_s23 + $0x2] sm:$0x1] }
  0x15   : > { %2247 = vmatprep.subr.bf16.mxu1 %v2328_v2  ;;  %v1919_v52 = vld [vmem:[%s2698_s4 + $0x60] sm:$0xff]  ;;  %v2233_v60 = vpack.c.bf16 %v1924_v58, %v1923_v57  ;;  %v1928_v62 = vld [vmem:[%s2698_s4 + $0x88] sm:$0xff]  ;;  %v1948_v10 = vld [vmem:[%s2700_s6 + $0x90] sm:$0xff] }
  0x16   : > { %v2230_v56 = vpack.c.bf16 %v1920_v53, %v1919_v52  ;;  %v1927_v61 = vld [vmem:[%s2698_s4 + $0x80] sm:$0xff]  ;;  %v1947_v5 = vld [vmem:[%s2700_s6 + $0x88] sm:$0xff]  ;;  %v1949_v11 = vld [vmem:[%s2700_s6 + $0x98] sm:$0xff] }
  0x17   : > { %v1922_v63 = vld [vmem:[%s2429_s18 + $0x2] sm:$0x1]  ;;  %v2236_v0 = vpack.c.bf16 %v1928_v62, %v1927_v61  ;;  %v1926_v1 = vld [vmem:[%s2443_s23 + $0x3] sm:$0x1]  ;;  %v1952_v8 = vld [vmem:[%s2700_s6 + $0xa8] sm:$0xff]  ;;  %v2266_v13 = vpack.c.bf16 %v1949_v11, %v1948_v10  ;;  %s361_s23 = scalar_lea.vmem %s2702_s8, %s2704_s28 }
  0x18   : > { %2249 = vmatpush3.bf16.msra.mxu1 %v2248_v29  ;;  %v1946_v3 = vld [vmem:[%s2700_s6 + $0x80] sm:$0xff]  ;;  %v1953_v12 = vld [vmem:[%s2700_s6 + $0xb0] sm:$0xff]  ;;  %v1954_v14 = vld [vmem:[%s2700_s6 + $0xb8] sm:$0xff] }
  0x19   : > { %2061 = vmatmul.mubr.msk.f32.vlgmr.msra.gmra.mrb[0].mxu0 %vm369_vm3, %v362_v16  ;;  %2250 = vmatprep.subr.bf16.mxu1 %v2328_v2  ;;  %v2263_v6 = vpack.c.bf16 %v1947_v5, %v1946_v3  ;;  %v1951_v7 = vld [vmem:[%s2700_s6 + $0xa0] sm:$0xff]  ;;  %v2272_v15 = vpack.c.bf16 %v1954_v14, %v1953_v12  ;;  %v1477_v18 = vld [vmem:[#allocation2 + $0xa] sm:$0x1]  ;;  %v1963_v20 = vld [vmem:[%s2700_s6 + $0xf0] sm:$0xff] }
  0x1a   : > { %2219 = vmatpush3.bf16.msra.mxu0 %v2218_v17  ;;  %2067 = vmatprep.mubr.msk.f32.mxu0 %vm2329_vm0, %v2330_v4  ;;  %v2269_v9 = vpack.c.bf16 %v1952_v8, %v1951_v7  ;;  %v1961_v16 = vld [vmem:[%s2700_s6 + $0xe0] sm:$0xff]  ;;  %v1962_v17 = vld [vmem:[%s2700_s6 + $0xe8] sm:$0xff]  ;;  %v1964_v21 = vld [vmem:[%s2700_s6 + $0xf8] sm:$0xff] }
  0x1b   : > { %2220 = vmatprep.subr.bf16.mxu0 %v2328_v2  ;;  %2132 = vmatmul.mubr.msk.f32.vlgmr.msra.gmra.mrb[2].mxu1 %vm1067_vm1, %v1080_v34  ;;  %v2281_v19 = vpack.c.bf16 %v1962_v17, %v1961_v16  ;;  %v2284_v22 = vpack.c.bf16 %v1964_v21, %v1963_v20  ;;  %v1637_v23 = vld [vmem:[#allocation2 + $0x11] sm:$0x1]  ;;  %v1957_v41 = vld [vmem:[%s2700_s6 + $0xc8] sm:$0xff]  ;;  %v1959_v44 = vld [vmem:[%s2700_s6 + $0xd8] sm:$0xff] }
  0x1c   : > { %2252 = vmatpush3.bf16.msra.mxu1 %v2251_v35  ;;  %2142 = vmatprep.mubr.msk.f32.mxu1 %vm2329_vm0, %v2330_v4  ;;  %v1064_v35 = vld [vmem:[%s2699_s5] sm:$0x1]  ;;  %v1958_v43 = vld [vmem:[%s2700_s6 + $0xd0] sm:$0xff]  ;;  %v1967_v48 = vld [vmem:[%s2700_s6 + $0x108] sm:$0xff] }
  0x1d   : > { %2253 = vmatprep.subr.bf16.mxu1 %v2328_v2  ;;  %v1966_v47 = vld [vmem:[%s2700_s6 + $0x100] sm:$0xff]  ;;  %v1969_v52 = vld [vmem:[%s2700_s6 + $0x118] sm:$0xff] }
  0x1e   : > { %v1802_v7 = vld [vmem:[%s2701_s7] sm:$0x1] }
  0x20   : > { %2255 = vmatpush3.bf16.msra.mxu1 %v2254_v40  ;;  %v1956_v40 = vld [vmem:[%s2700_s6 + $0xc0] sm:$0xff] }
  0x21   : > { %2068 = vmatmul.mubr.msk.f32.vlgmr.msra.gmra.mrb[0].mxu0 %vm369_vm3, %v516_v27  ;;  %2256 = vmatprep.subr.bf16.mxu1 %v2328_v2  ;;  %v2275_v42 = vpack.c.bf16 %v1957_v41, %v1956_v40 }
  0x22   : > { %2222 = vmatpush3.bf16.msra.mxu0 %v2221_v28  ;;  %2074 = vmatprep.mubr.msk.f32.mxu0 %vm2329_vm0, %v2330_v4 }
  0x23   : > { %2223 = vmatprep.subr.bf16.mxu0 %v2328_v2  ;;  %2143 = vmatmul.mubr.msk.f32.vlgmr.msra.gmra.mrb[4].mxu1 %vm1067_vm1, %v1237_v45 }
  0x24   : > { %2258 = vmatpush3.bf16.msra.mxu1 %v2257_v46  ;;  %2153 = vmatprep.mubr.msk.f32.mxu1 %vm2329_vm0, %v2330_v4  ;;  %v2278_v46 = vpack.c.bf16 %v1959_v44, %v1958_v43 }
  0x25   : > { %2259 = vmatprep.subr.bf16.mxu1 %v2328_v2 }
  0x28   : > { %2261 = vmatpush3.bf16.msra.mxu1 %v2260_v51  ;;  %v1968_v51 = vld [vmem:[%s2700_s6 + $0x110] sm:$0xff] }
  0x29   : > { %2075 = vmatmul.mubr.msk.f32.vlgmr.msra.gmra.mrb[0].mxu0 %vm369_vm3, %v594_v38  ;;  %2262 = vmatprep.subr.bf16.mxu1 %v2328_v2  ;;  %v2290_v53 = vpack.c.bf16 %v1969_v52, %v1968_v51 }
  0x2a   : > { %2225 = vmatpush3.bf16.msra.mxu0 %v2224_v39  ;;  %2081 = vmatprep.mubr.msk.f32.mxu0 %vm2329_vm0, %v2330_v4 }
  0x2b   : > { %2226 = vmatprep.subr.bf16.mxu0 %v2328_v2  ;;  %2154 = vmatmul.mubr.msk.f32.vlgmr.msra.gmra.mrb[6].mxu1 %vm1067_vm1, %v1317_v54  ;;  %v1717_v54 = vld [vmem:[#allocation2 + $0x12] sm:$0x1] }
  0x2c   : > { %2164 = vmatprep.mubr.msk.f32.mxu1 %vm2329_vm0, %v2330_v4  ;;  %2264 = vmatpush3.bf16.msra.mxu1 %v2263_v6 }
  0x2d   : > { %2265 = vmatprep.subr.bf16.mxu1 %v2328_v2 }
  0x30   : > { %2267 = vmatpush3.bf16.msra.mxu1 %v2266_v13 }
  0x31   : > { %2082 = vmatmul.mubr.msk.f32.vlgmr.msra.gmra.mrb[0].mxu0 %vm369_vm3, %v672_v49  ;;  %2274 = vmatprep.subr.bf16.mxu1 %v2328_v2  ;;  %v1557_v49 = vld [vmem:[#allocation2 + $0x10] sm:$0x1] }
  0x32   : > { %2228 = vmatpush3.bf16.msra.mxu0 %v2227_v50  ;;  %2088 = vmatprep.mubr.msk.f32.mxu0 %vm2329_vm0, %v2330_v4  ;;  %v2287_v50 = vpack.c.bf16 %v1967_v48, %v1966_v47 }
  0x33   : > { %2229 = vmatprep.subr.bf16.mxu0 %v2328_v2 }
  0x39   : > { %2089 = vmatmul.mubr.msk.f32.vlgmr.msra.gmra.mrb[0].mxu0 %vm369_vm3, %v750_v55 }
  0x3a   : > { %2231 = vmatpush3.bf16.msra.mxu0 %v2230_v56  ;;  %2095 = vmatprep.mubr.msk.f32.mxu0 %vm2329_vm0, %v2330_v4 }
  0x3b   : > { %2232 = vmatprep.subr.bf16.mxu0 %v2328_v2 }
  0x41   : > { %2096 = vmatmul.mubr.msk.f32.vlgmr.msra.gmra.mrb[0].mxu0 %vm369_vm3, %v1918_v59 }
  0x42   : > { %2234 = vmatpush3.bf16.msra.mxu0 %v2233_v60  ;;  %2102 = vmatprep.mubr.msk.f32.mxu0 %vm2329_vm0, %v2330_v4 }
  0x43   : > { %2235 = vmatprep.subr.bf16.mxu0 %v2328_v2 }
  0x49   : > { %2103 = vmatmul.mubr.msk.f32.vlgmr.msra.gmra.mrb[0].mxu0 %vm369_vm3, %v1922_v63 }
  0x4a   : > { %2237 = vmatpush3.bf16.msra.mxu0 %v2236_v0  ;;  %2109 = vmatprep.mubr.msk.f32.mxu0 %vm2329_vm0, %v2330_v4 }
  0x4b   : > { %2268 = vmatprep.subr.bf16.mxu0 %v2328_v2 }
  0x51   : > { %2110 = vmatmul.mubr.msk.f32.vlgmr.msra.gmra.mrb[0].mxu0 %vm369_vm3, %v1926_v1 }
  0x52   : > { %2175 = vmatprep.mubr.msk.f32.mxu0 %vm2329_vm0, %v2330_v4  ;;  %2270 = vmatpush3.bf16.msra.mxu0 %v2269_v9 }
  0x53   : > { %2271 = vmatprep.subr.bf16.mxu0 %v2328_v2 }
  0x56   : > { %2273 = vmatpush3.bf16.msra.mxu0 %v2272_v15 }
  0x57   : > { %2280 = vmatprep.subr.bf16.mxu0 %v2328_v2 }
  0x59   : > { %2176 = vmatmul.mubr.msk.f32.vlgmr.msra.gmra.mrb[2].mxu0 %vm1067_vm1, %v1477_v18 }
  0x5a   : > { %2282 = vmatpush3.bf16.msra.mxu0 %v2281_v19  ;;  %2197 = vmatprep.mubr.msk.f32.mxu0 %vm2329_vm0, %v2330_v4 }
  0x5b   : > { %2283 = vmatprep.subr.bf16.mxu0 %v2328_v2 }
  0x5e   : > { %2285 = vmatpush3.bf16.msra.mxu0 %v2284_v22 }
  0x61   : > { %2198 = vmatmul.mubr.msk.f32.vlgmr.msra.gmra.mrb[4].mxu0 %vm1067_vm1, %v1637_v23 }
  0xe6   : > { %v1160_v24 = vpop.f32.mrb[0].mxu1 }
  0xe7   : > { %v2122_v25 = vpop.f32.mrb[1].mxu1 }
  0xee   : > { %v1233_v26 = vpop.f32.mrb[2].mxu1 }
  0xef   : > { %v1234_v27 = vadd.f32 %v1233_v26, %v1160_v24  ;;  %v2133_v28 = vpop.f32.mrb[3].mxu1 }
  0xf6   : > { %v1312_v29 = vpop.f32.mrb[4].mxu1 }
  0xf7   : > { %v1316_v30 = vadd.f32 %v1312_v29, %v1234_v27  ;;  %v2144_v31 = vpop.f32.mrb[5].mxu1 }
  0xfe   : > { %v1392_v32 = vpop.f32.mrb[6].mxu1 }
  0xff   : > { %v1396_v33 = vadd.f32 %v1392_v32, %v1316_v30  ;;  %v2155_v34 = vpop.f32.mrb[7].mxu1 }
 0x124   : > { %v1059_v36 = vpop.f32.mrb[0].mxu0 }
 0x125   : > { %v1065_v37 = vadd.f32 %v1064_v35, %v1059_v36  ;;  %v2111_v38 = vpop.f32.mrb[1].mxu0  ;;  %1798 = vrot.lane.b32.xlu0 %v1059_v36, %s2331_s25 }
 0x127   : > { %v1066_v39 = vmax.f32 %v1065_v37, 0.0 }
 0x129   : > { %1079 = vst.msk [vmem:[#allocation2 + $0x9] sm:$0x1] %vm1071_vm2, %v1066_v39 }
 0x12c   : > { %v1552_v55 = vpop.f32.mrb[2].mxu0 }
 0x12d   : > { %v2177_v56 = vpop.f32.mrb[3].mxu0 }
 0x130   : > { %v1397_v45 = vld [vmem:[#allocation2 + $0x9] sm:$0x1] }
 0x131   : > { %2165 = vmatmul.mubr.msk.f32.vlgmr.msra.gmra.mrb[8].mxu1 %vm1067_vm1, %v1397_v45 }
 0x132   : > { %2276 = vmatpush3.bf16.msra.mxu1 %v2275_v42  ;;  %2186 = vmatprep.mubr.msk.f32.mxu1 %vm2329_vm0, %v2330_v4 }
 0x133   : > { %2277 = vmatprep.subr.bf16.mxu1 %v2328_v2 }
 0x134   : > { %v1712_v57 = vpop.f32.mrb[4].mxu0 }
 0x135   : > { %v2199_v58 = vpop.f32.mrb[5].mxu0 }
 0x136   : > { %2279 = vmatpush3.bf16.msra.mxu1 %v2278_v46 }
 0x137   : > { %2286 = vmatprep.subr.bf16.mxu1 %v2328_v2 }
 0x139   : > { %2187 = vmatmul.mubr.msk.f32.vlgmr.msra.gmra.mrb[10].mxu1 %vm1067_vm1, %v1557_v49 }
 0x13a   : > { %2288 = vmatpush3.bf16.msra.mxu1 %v2287_v50  ;;  %2208 = vmatprep.mubr.msk.f32.mxu1 %vm2329_vm0, %v2330_v4 }
 0x13b   : > { %2289 = vmatprep.subr.bf16.mxu1 %v2328_v2 }
 0x13e   : > { %2291 = vmatpush3.bf16.msra.mxu1 %v2290_v53 }
 0x141   : > { %2209 = vmatmul.mubr.msk.f32.vlgmr.msra.gmra.mrb[12].mxu1 %vm1067_vm1, %v1717_v54 }
 0x197   : > { %v1799_v6 = vpop.permute.xlu0 %1798 }
 0x204   : > { %v1472_v59 = vpop.f32.mrb[8].mxu1 }
 0x205   : > { %v1476_v60 = vadd.f32 %v1472_v59, %v1396_v33  ;;  %v2166_v61 = vpop.f32.mrb[9].mxu1 }
 0x207   : > { %v1556_v62 = vadd.f32 %v1552_v55, %v1476_v60 }
 0x20c   : > { %v1632_v63 = vpop.f32.mrb[10].mxu1 }
 0x20d   : > { %v1636_v0 = vadd.f32 %v1632_v63, %v1556_v62  ;;  %v2188_v1 = vpop.f32.mrb[11].mxu1 }
 0x20f   : > { %v1716_v3 = vadd.f32 %v1712_v57, %v1636_v0 }
 0x214   : > { %v1792_v4 = vpop.f32.mrb[12].mxu1 }
 0x215   : > { %v1796_v5 = vadd.f32 %v1792_v4, %v1716_v3  ;;  %v2210_v2 = vpop.f32.mrb[13].mxu1 }
 0x217   : > { %v1801_v8 = vadd.f32 %v1799_v6, %v1796_v5 }
 0x219   : > { %v1803_v9 = vadd.f32 %v1802_v7, %v1801_v8 }
 0x21b   : > { %v1804_v10 = vmax.f32 %v1803_v9, 0.0 }
 0x21d   : > { %1805 = vst.msk [vmem:[%s361_s23] sm:$0x1] %vm1071_vm2, %v1804_v10 }
 0x21e PF: > { %s18_s27 = sadd.s32 1, %s2326_s27  }
 0x21f   : > { %p15_p4 = scmp.ge.s32.totalorder %s18_s27, 4  }
 0x221   :  { %17 = sbr.rel (!%p15_p4) target bundleno = 1 (0x1), region = 111 }

</bundles_post_ra>
